<compile_context>
chip_gen: v6e
topology: v6e:2x2x1
jax: 0.10.0
libtpu: 0.0.40
codegen_flags: <defaults>
</compile_context>

<pallas_src>
import functools
import math

import jax
import jax.numpy as jnp
from jax.experimental import pallas as pl
from jax.experimental.pallas import tpu as pltpu


def _elu(x):
    # ELU(alpha=1):  x if x > 0 else exp(x) - 1
    return jnp.where(x > 0, x, jnp.exp(jnp.minimum(x, 0.0)) - 1.0)


def _bnn_kernel(p_ref, w_ref, out_ref, h2a_ref, *, B, n_w, m):
    f32 = jnp.float32
    HI = jax.lax.Precision.HIGHEST

    # --- static row offsets into the packed weight blob (must match _pack_weight_blob) ---
    o0 = 0
    o1 = o0 + 32 * m          # conv1 weights (+bias column)
    o2 = o1 + 2 * m           # conv2 block-diagonal
    o3 = o2 + 2 * m           # conv2 bias column
    o4 = o3 + 64 * m          # fc1 block-diagonal
    o5 = o4 + 1               # fc1 bias row
    o6 = o5 + 30 * m          # fc2 block-diagonal
    o7 = o6 + 1               # fc2 bias row
    o8 = o7 + 8 * m           # softmax block-sum matrix
    w1_aug = w_ref[o0:o1, 0:13]                  # (32m, 13)
    w2t_blk = w_ref[o1:o2, 0:32 * m]             # (2m, 32m)
    b2_col = w_ref[o2:o3, 0:1]                   # (2m, 1)
    fw1_blk = w_ref[o3:o4, 0:30 * m]             # (64m, 30m)
    fb1_row = w_ref[o4:o5, 0:30 * m]             # (1, 30m)
    fw2_blk = w_ref[o5:o6, 0:8 * m]              # (30m, 8m)
    fb2_row = w_ref[o6:o7, 0:8 * m]              # (1, 8m)
    ones_blk = w_ref[o7:o8, 0:8 * m]             # (8m, 8m)
    avg_mat = w_ref[o8:o8 + 8 * m, 0:8]          # (8m, 8)

    # ---- conv1 (BayesConv2d 1->16, k=(2,3), stride=(1,2)) for ALL m samples ----
    # bias is folded in via the trailing ones row of the patch matrix.
    # rows = 32j + 16*parity + channel, lanes = 32b + w
    h1 = _elu(jnp.dot(w1_aug, p_ref[...], preferred_element_type=f32, precision=HI))

    # ---- conv2 (16->2, k=(1,2), stride=2) as one block-diagonal MXU matmul ----
    # rows = 2j + out_channel, lanes = 32b + w
    h2 = _elu(jnp.dot(w2t_blk, h1, preferred_element_type=f32, precision=HI) + b2_col)

    # ---- relayout to torch flatten order [c0 w0..31, c1 w0..31] per sample ----
    # (j,c)-rows x (b,w)-lanes  ->  (B, 64m) with lane = 64j + 32c + w, via VMEM scratch.
    for b in range(B):
        for rr in range(2 * m):
            h2a_ref[b:b + 1, rr * n_w:(rr + 1) * n_w] = h2[rr:rr + 1, b * n_w:(b + 1) * n_w]
    h2_all = h2a_ref[...]                         # (B, 64m)

    # ---- fc1 (64->30) and fc2 (30->8), block-diagonal over the m MC samples ----
    h3 = _elu(jnp.dot(h2_all, fw1_blk, preferred_element_type=f32, precision=HI) + fb1_row)
    logits = jnp.dot(h3, fw2_blk, preferred_element_type=f32, precision=HI) + fb2_row   # (B, 8m)

    # ---- per-sample softmax + MC average, kept lane-dense ----
    # a single per-row max is a valid shift for every 8-lane block (softmax shift-invariant).
    mx = jnp.max(logits, axis=-1, keepdims=True)
    e = jnp.exp(logits - mx)
    s = jnp.dot(e, ones_blk, preferred_element_type=f32, precision=HI)   # per-block sums, broadcast
    probs = e * pl.reciprocal(s, approx=False)
    out_ref[...] = jnp.dot(probs, avg_mat, preferred_element_type=f32, precision=HI)    # (B, 8)


def _block_diag(blocks):
    """(n, r, c) -> (n*r, n*c) block-diagonal."""
    n, r, c = blocks.shape
    eye = jnp.eye(n, dtype=blocks.dtype)
    return (eye[:, None, :, None] * blocks[:, :, None, :]).reshape(n * r, n * c)


def _pack_weight_blob(sampled):
    """Pack every per-MC-sample weight into one (R, 128) f32 blob (one DMA)."""
    f32 = jnp.float32
    m = sampled['c1_w'].shape[0]

    # conv1: rows = 32j + 16*parity + ch; cols 0..5 even taps, 6..11 odd taps, 12 bias
    w1 = sampled['c1_w'].reshape(m, 16, 6).astype(f32)             # taps flattened (h, wt)
    b1 = sampled['c1_b'].astype(f32)[..., None]                    # (m, 16, 1)
    z6 = jnp.zeros((m, 16, 6), f32)
    w1_aug = jnp.concatenate(
        [jnp.concatenate([w1, z6, b1], axis=-1),                   # even-parity rows
         jnp.concatenate([z6, w1, b1], axis=-1)], axis=1           # odd-parity rows
    ).reshape(32 * m, 13)

    # conv2: block (2, 32) per sample, col = 16*parity + in_channel
    w2 = jnp.transpose(sampled['c2_w'][:, :, :, 0, :], (0, 1, 3, 2)).reshape(m, 2, 32).astype(f32)
    w2t_blk = _block_diag(w2)                                      # (2m, 32m)
    b2_col = sampled['c2_b'].astype(f32).reshape(2 * m, 1)

    # fc1 / fc2 block-diagonals (rows follow torch flatten order per sample)
    fw1_blk = _block_diag(jnp.transpose(sampled['f1_w'], (0, 2, 1)).astype(f32))   # (64m, 30m)
    fb1_row = sampled['f1_b'].astype(f32).reshape(1, 30 * m)
    fw2_blk = _block_diag(jnp.transpose(sampled['f2_w'], (0, 2, 1)).astype(f32))   # (30m, 8m)
    fb2_row = sampled['f2_b'].astype(f32).reshape(1, 8 * m)

    # softmax helpers: per-8-lane-block sums and the 1/m average of the m blocks
    ones_blk = _block_diag(jnp.ones((m, 8, 8), f32))               # (8m, 8m)
    avg_mat = jnp.concatenate([jnp.eye(8, dtype=f32)] * m, axis=0) / m   # (8m, 8)

    sections = [w1_aug, w2t_blk, b2_col, fw1_blk, fb1_row, fw2_blk, fb2_row, ones_blk, avg_mat]
    lanes = max(s.shape[1] for s in sections)
    blob = jnp.concatenate(
        [jnp.pad(s, ((0, 0), (0, lanes - s.shape[1]))) for s in sections], axis=0)
    assert blob.shape == (146 * m + 2, lanes)
    return blob


def run_bnn(x_input, sampled):
    """x_input: (B, 2, 128) float32.  sampled: dict of per-m torch-layout weights."""
    f32 = jnp.float32
    B = x_input.shape[0]
    m = sampled['c1_w'].shape[0]

    # --- glue: reshape + pad (same as torch.reshape + F.pad) ---
    x = x_input.reshape(B, 2, -1).astype(f32)
    W0 = x.shape[-1]
    xp = jnp.pad(x, ((0, 0), (0, 0), (2, 2)))                      # (B, 2, W0+4)
    n_out1 = (W0 + 4 - 3) // 2 + 1                                 # conv1 out width (65)
    n_w = (n_out1 - 2) // 2 + 1                                    # conv2 out width (32)
    assert 2 * n_w == 64, "fc1 expects 64 flattened features"

    # --- im2col via strided slices (no XLA gather): row = 6*parity + 3*h + wt ---
    taps = []
    for parity in (0, 1):
        for h in (0, 1):
            for wt in range(3):
                start = 2 * parity + wt
                sl = xp[:, h, start:start + 4 * (n_w - 1) + 1:4]   # (B, n_w) strided slice
                taps.append(sl.reshape(1, B * n_w))                # lane = 32*b + w
    taps.append(jnp.ones((1, B * n_w), f32))                       # ones row -> conv1 bias
    patches = jnp.concatenate(taps, axis=0)                        # (13, B*n_w)

    blob = _pack_weight_blob(sampled)                              # (146m+2, 128)

    kernel = functools.partial(_bnn_kernel, B=B, n_w=n_w, m=m)
    return pl.pallas_call(
        kernel,
        out_shape=jax.ShapeDtypeStruct((B, 8), f32),
        scratch_shapes=[pltpu.VMEM((B, 2 * m * n_w), f32)],        # fc1-input relayout buffer
    )(patches, blob)


def reference_forward(x_input, sampled):
    """Pure-JAX reference of the torch forward (per-sample conv/linear + softmax avg)."""
    B = x_input.shape[0]
    m = sampled['c1_w'].shape[0]
    acc = jnp.zeros((B, 8), jnp.float32)
    dn = ('NCHW', 'OIHW', 'NCHW')
    with jax.default_matmul_precision('highest'):
        for j in range(m):
            x = x_input.reshape(B, 1, 2, -1).astype(jnp.float32)
            xpad = jnp.pad(x, ((0, 0), (0, 0), (0, 0), (2, 2)))
            h1 = jax.lax.conv_general_dilated(
                xpad, sampled['c1_w'][j], (1, 2), 'VALID', dimension_numbers=dn)
            h1 = jax.nn.elu(h1 + sampled['c1_b'][j][None, :, None, None])
            h2 = jax.lax.conv_general_dilated(
                h1, sampled['c2_w'][j], (2, 2), 'VALID', dimension_numbers=dn)
            h2 = jax.nn.elu(h2 + sampled['c2_b'][j][None, :, None, None])
            h3 = jax.nn.elu(h2.reshape(B, -1) @ sampled['f1_w'][j].T + sampled['f1_b'][j])
            logits = h3 @ sampled['f2_w'][j].T + sampled['f2_b'][j]
            acc = acc + jax.nn.softmax(logits, axis=1)
    return acc / m


if __name__ == "__main__":
    key = jax.random.PRNGKey(0)
    B, m = 2, 4
    k_x, k_mu, k_eps = jax.random.split(key, 3)

    # input: AMC I/Q signal (B, 2, 128); reshaped by the model to (B, 1, 2, 128)
    x_input = jax.random.normal(k_x, (B, 2, 128), jnp.float32)

    # deterministic BayesConv2d / BayesLinear parameters (mu, log_sigma) + per-m eps
    shapes = {
        'c1_w': (16, 1, 2, 3), 'c1_b': (16,),
        'c2_w': (2, 16, 1, 2), 'c2_b': (2,),
        'f1_w': (30, 64),      'f1_b': (30,),
        'f2_w': (8, 30),       'f2_b': (8,),
    }
    log_sigma_val = math.log(0.05)
    mu_keys = jax.random.split(k_mu, len(shapes))
    eps_keys = jax.random.split(k_eps, len(shapes))
    sampled = {}
    for (name, shp), km, ke in zip(shapes.items(), mu_keys, eps_keys):
        mu = 0.3 * jax.random.normal(km, shp, jnp.float32)
        log_sigma = jnp.full(shp, log_sigma_val, jnp.float32)
        eps = jax.random.normal(ke, (m,) + shp, jnp.float32)       # fresh eps per MC sample
        sampled[name] = mu[None] + jnp.exp(log_sigma)[None] * eps  # (m, *shp)

    out = jax.jit(run_bnn)(x_input, sampled)
    out = jax.block_until_ready(out)

    ref = reference_forward(x_input, sampled)
    assert out.shape == (B, 8)
    assert bool(jnp.allclose(out, ref, atol=2e-3, rtol=2e-3)), (
        f"max abs diff = {float(jnp.max(jnp.abs(out - ref)))}")
    print("KERNEL_OK")
</pallas_src>

<mosaic_0001>
module attributes {stable_mosaic.version = 11 : i64} {
  func.func @_bnn_kernel(%arg0: memref<13x64xf32, #tpu.memory_space<vmem>>, %arg1: memref<586x128xf32, #tpu.memory_space<vmem>>, %arg2: memref<2x8xf32, #tpu.memory_space<vmem>>, %arg3: memref<2x256xf32, #tpu.memory_space<vmem>>) attributes {dimension_semantics = [], scalar_prefetch = 0 : i64, scratch_operands = 1 : i64, tpu.core_type = #tpu.core_type<tc>} {
    %c0 = arith.constant 0 : index
    %c0_0 = arith.constant 0 : index
    %0 = vector.load %arg1[%c0, %c0_0] : memref<586x128xf32, #tpu.memory_space<vmem>>, vector<128x13xf32>
    %c128 = arith.constant 128 : index
    %c0_1 = arith.constant 0 : index
    %1 = vector.load %arg1[%c128, %c0_1] : memref<586x128xf32, #tpu.memory_space<vmem>>, vector<8x128xf32>
    %c136 = arith.constant 136 : index
    %c0_2 = arith.constant 0 : index
    %2 = vector.load %arg1[%c136, %c0_2] : memref<586x128xf32, #tpu.memory_space<vmem>>, vector<8x1xf32>
    %c144 = arith.constant 144 : index
    %c0_3 = arith.constant 0 : index
    %3 = vector.load %arg1[%c144, %c0_3] : memref<586x128xf32, #tpu.memory_space<vmem>>, vector<256x120xf32>
    %c400 = arith.constant 400 : index
    %c0_4 = arith.constant 0 : index
    %4 = vector.load %arg1[%c400, %c0_4] : memref<586x128xf32, #tpu.memory_space<vmem>>, vector<1x120xf32>
    %c401 = arith.constant 401 : index
    %c0_5 = arith.constant 0 : index
    %5 = vector.load %arg1[%c401, %c0_5] : memref<586x128xf32, #tpu.memory_space<vmem>>, vector<120x32xf32>
    %c521 = arith.constant 521 : index
    %c0_6 = arith.constant 0 : index
    %6 = vector.load %arg1[%c521, %c0_6] : memref<586x128xf32, #tpu.memory_space<vmem>>, vector<1x32xf32>
    %c522 = arith.constant 522 : index
    %c0_7 = arith.constant 0 : index
    %7 = vector.load %arg1[%c522, %c0_7] : memref<586x128xf32, #tpu.memory_space<vmem>>, vector<32x32xf32>
    %c554 = arith.constant 554 : index
    %c0_8 = arith.constant 0 : index
    %8 = vector.load %arg1[%c554, %c0_8] : memref<586x128xf32, #tpu.memory_space<vmem>>, vector<32x8xf32>
    %c0_9 = arith.constant 0 : index
    %c0_10 = arith.constant 0 : index
    %9 = vector.load %arg0[%c0_9, %c0_10] : memref<13x64xf32, #tpu.memory_space<vmem>>, vector<13x64xf32>
    %cst = arith.constant dense<0.000000e+00> : vector<128x64xf32>
    %10 = tpu.matmul %0, %9, %cst {dimension_numbers = #tpu.dot_dimension_numbers<[1], [0], [0], [1], [0, 0, 1, 1], [], []>, precision = #tpu.contract_precision<fp32>} : vector<128x13xf32>, vector<13x64xf32>, vector<128x64xf32> -> vector<128x64xf32>
    %cst_11 = arith.constant 0.000000e+00 : f32
    %11 = vector.broadcast %cst_11 : f32 to vector<128x64xf32>
    %12 = arith.cmpf ogt, %10, %11 : vector<128x64xf32>
    %cst_12 = arith.constant 0.000000e+00 : f32
    %13 = vector.broadcast %cst_12 : f32 to vector<128x64xf32>
    %14 = arith.minimumf %10, %13 : vector<128x64xf32>
    %15 = math.exp %14 : vector<128x64xf32>
    %cst_13 = arith.constant 1.000000e+00 : f32
    %16 = vector.broadcast %cst_13 : f32 to vector<128x64xf32>
    %17 = arith.subf %15, %16 : vector<128x64xf32>
    %18 = arith.select %12, %10, %17 : vector<128x64xi1>, vector<128x64xf32>
    %cst_14 = arith.constant dense<0.000000e+00> : vector<8x64xf32>
    %19 = tpu.matmul %1, %18, %cst_14 {dimension_numbers = #tpu.dot_dimension_numbers<[1], [0], [0], [1], [0, 0, 1, 1], [], []>, precision = #tpu.contract_precision<fp32>} : vector<8x128xf32>, vector<128x64xf32>, vector<8x64xf32> -> vector<8x64xf32>
    %20 = vector.broadcast %2 : vector<8x1xf32> to vector<8x64xf32>
    %21 = arith.addf %19, %20 : vector<8x64xf32>
    %cst_15 = arith.constant 0.000000e+00 : f32
    %22 = vector.broadcast %cst_15 : f32 to vector<8x64xf32>
    %23 = arith.cmpf ogt, %21, %22 : vector<8x64xf32>
    %cst_16 = arith.constant 0.000000e+00 : f32
    %24 = vector.broadcast %cst_16 : f32 to vector<8x64xf32>
    %25 = arith.minimumf %21, %24 : vector<8x64xf32>
    %26 = math.exp %25 : vector<8x64xf32>
    %cst_17 = arith.constant 1.000000e+00 : f32
    %27 = vector.broadcast %cst_17 : f32 to vector<8x64xf32>
    %28 = arith.subf %26, %27 : vector<8x64xf32>
    %29 = arith.select %23, %21, %28 : vector<8x64xi1>, vector<8x64xf32>
    %30 = vector.extract_strided_slice %29 {offsets = [0, 0], sizes = [1, 32], strides = [1, 1]} : vector<8x64xf32> to vector<1x32xf32>
    %c0_18 = arith.constant 0 : index
    %c0_19 = arith.constant 0 : index
    %31 = vector.load %arg3[%c0_18, %c0_19] : memref<2x256xf32, #tpu.memory_space<vmem>>, vector<1x32xf32>
    tpu.vector_store %arg3[%c0_18, %c0_19], %30 {strides = array<i32>} : memref<2x256xf32, #tpu.memory_space<vmem>>, vector<1x32xf32>,
    %32 = vector.extract_strided_slice %29 {offsets = [1, 0], sizes = [1, 32], strides = [1, 1]} : vector<8x64xf32> to vector<1x32xf32>
    %c0_20 = arith.constant 0 : index
    %c32 = arith.constant 32 : index
    %33 = vector.load %arg3[%c0_20, %c32] : memref<2x256xf32, #tpu.memory_space<vmem>>, vector<1x32xf32>
    tpu.vector_store %arg3[%c0_20, %c32], %32 {strides = array<i32>} : memref<2x256xf32, #tpu.memory_space<vmem>>, vector<1x32xf32>,
    %34 = vector.extract_strided_slice %29 {offsets = [2, 0], sizes = [1, 32], strides = [1, 1]} : vector<8x64xf32> to vector<1x32xf32>
    %c0_21 = arith.constant 0 : index
    %c64 = arith.constant 64 : index
    %35 = vector.load %arg3[%c0_21, %c64] : memref<2x256xf32, #tpu.memory_space<vmem>>, vector<1x32xf32>
    tpu.vector_store %arg3[%c0_21, %c64], %34 {strides = array<i32>} : memref<2x256xf32, #tpu.memory_space<vmem>>, vector<1x32xf32>,
    %36 = vector.extract_strided_slice %29 {offsets = [3, 0], sizes = [1, 32], strides = [1, 1]} : vector<8x64xf32> to vector<1x32xf32>
    %c0_22 = arith.constant 0 : index
    %c96 = arith.constant 96 : index
    %37 = vector.load %arg3[%c0_22, %c96] : memref<2x256xf32, #tpu.memory_space<vmem>>, vector<1x32xf32>
    tpu.vector_store %arg3[%c0_22, %c96], %36 {strides = array<i32>} : memref<2x256xf32, #tpu.memory_space<vmem>>, vector<1x32xf32>,
    %38 = vector.extract_strided_slice %29 {offsets = [4, 0], sizes = [1, 32], strides = [1, 1]} : vector<8x64xf32> to vector<1x32xf32>
    %c0_23 = arith.constant 0 : index
    %c128_24 = arith.constant 128 : index
    %39 = vector.load %arg3[%c0_23, %c128_24] : memref<2x256xf32, #tpu.memory_space<vmem>>, vector<1x32xf32>
    tpu.vector_store %arg3[%c0_23, %c128_24], %38 {strides = array<i32>} : memref<2x256xf32, #tpu.memory_space<vmem>>, vector<1x32xf32>,
    %40 = vector.extract_strided_slice %29 {offsets = [5, 0], sizes = [1, 32], strides = [1, 1]} : vector<8x64xf32> to vector<1x32xf32>
    %c0_25 = arith.constant 0 : index
    %c160 = arith.constant 160 : index
    %41 = vector.load %arg3[%c0_25, %c160] : memref<2x256xf32, #tpu.memory_space<vmem>>, vector<1x32xf32>
    tpu.vector_store %arg3[%c0_25, %c160], %40 {strides = array<i32>} : memref<2x256xf32, #tpu.memory_space<vmem>>, vector<1x32xf32>,
    %42 = vector.extract_strided_slice %29 {offsets = [6, 0], sizes = [1, 32], strides = [1, 1]} : vector<8x64xf32> to vector<1x32xf32>
    %c0_26 = arith.constant 0 : index
    %c192 = arith.constant 192 : index
    %43 = vector.load %arg3[%c0_26, %c192] : memref<2x256xf32, #tpu.memory_space<vmem>>, vector<1x32xf32>
    tpu.vector_store %arg3[%c0_26, %c192], %42 {strides = array<i32>} : memref<2x256xf32, #tpu.memory_space<vmem>>, vector<1x32xf32>,
    %44 = vector.extract_strided_slice %29 {offsets = [7, 0], sizes = [1, 32], strides = [1, 1]} : vector<8x64xf32> to vector<1x32xf32>
    %c0_27 = arith.constant 0 : index
    %c224 = arith.constant 224 : index
    %45 = vector.load %arg3[%c0_27, %c224] : memref<2x256xf32, #tpu.memory_space<vmem>>, vector<1x32xf32>
    tpu.vector_store %arg3[%c0_27, %c224], %44 {strides = array<i32>} : memref<2x256xf32, #tpu.memory_space<vmem>>, vector<1x32xf32>,
    %46 = vector.extract_strided_slice %29 {offsets = [0, 32], sizes = [1, 32], strides = [1, 1]} : vector<8x64xf32> to vector<1x32xf32>
    %c1 = arith.constant 1 : index
    %c0_28 = arith.constant 0 : index
    %47 = vector.load %arg3[%c1, %c0_28] : memref<2x256xf32, #tpu.memory_space<vmem>>, vector<1x32xf32>
    tpu.vector_store %arg3[%c1, %c0_28], %46 {strides = array<i32>} : memref<2x256xf32, #tpu.memory_space<vmem>>, vector<1x32xf32>,
    %48 = vector.extract_strided_slice %29 {offsets = [1, 32], sizes = [1, 32], strides = [1, 1]} : vector<8x64xf32> to vector<1x32xf32>
    %c1_29 = arith.constant 1 : index
    %c32_30 = arith.constant 32 : index
    %49 = vector.load %arg3[%c1_29, %c32_30] : memref<2x256xf32, #tpu.memory_space<vmem>>, vector<1x32xf32>
    tpu.vector_store %arg3[%c1_29, %c32_30], %48 {strides = array<i32>} : memref<2x256xf32, #tpu.memory_space<vmem>>, vector<1x32xf32>,
    %50 = vector.extract_strided_slice %29 {offsets = [2, 32], sizes = [1, 32], strides = [1, 1]} : vector<8x64xf32> to vector<1x32xf32>
    %c1_31 = arith.constant 1 : index
    %c64_32 = arith.constant 64 : index
    %51 = vector.load %arg3[%c1_31, %c64_32] : memref<2x256xf32, #tpu.memory_space<vmem>>, vector<1x32xf32>
    tpu.vector_store %arg3[%c1_31, %c64_32], %50 {strides = array<i32>} : memref<2x256xf32, #tpu.memory_space<vmem>>, vector<1x32xf32>,
    %52 = vector.extract_strided_slice %29 {offsets = [3, 32], sizes = [1, 32], strides = [1, 1]} : vector<8x64xf32> to vector<1x32xf32>
    %c1_33 = arith.constant 1 : index
    %c96_34 = arith.constant 96 : index
    %53 = vector.load %arg3[%c1_33, %c96_34] : memref<2x256xf32, #tpu.memory_space<vmem>>, vector<1x32xf32>
    tpu.vector_store %arg3[%c1_33, %c96_34], %52 {strides = array<i32>} : memref<2x256xf32, #tpu.memory_space<vmem>>, vector<1x32xf32>,
    %54 = vector.extract_strided_slice %29 {offsets = [4, 32], sizes = [1, 32], strides = [1, 1]} : vector<8x64xf32> to vector<1x32xf32>
    %c1_35 = arith.constant 1 : index
    %c128_36 = arith.constant 128 : index
    %55 = vector.load %arg3[%c1_35, %c128_36] : memref<2x256xf32, #tpu.memory_space<vmem>>, vector<1x32xf32>
    tpu.vector_store %arg3[%c1_35, %c128_36], %54 {strides = array<i32>} : memref<2x256xf32, #tpu.memory_space<vmem>>, vector<1x32xf32>,
    %56 = vector.extract_strided_slice %29 {offsets = [5, 32], sizes = [1, 32], strides = [1, 1]} : vector<8x64xf32> to vector<1x32xf32>
    %c1_37 = arith.constant 1 : index
    %c160_38 = arith.constant 160 : index
    %57 = vector.load %arg3[%c1_37, %c160_38] : memref<2x256xf32, #tpu.memory_space<vmem>>, vector<1x32xf32>
    tpu.vector_store %arg3[%c1_37, %c160_38], %56 {strides = array<i32>} : memref<2x256xf32, #tpu.memory_space<vmem>>, vector<1x32xf32>,
    %58 = vector.extract_strided_slice %29 {offsets = [6, 32], sizes = [1, 32], strides = [1, 1]} : vector<8x64xf32> to vector<1x32xf32>
    %c1_39 = arith.constant 1 : index
    %c192_40 = arith.constant 192 : index
    %59 = vector.load %arg3[%c1_39, %c192_40] : memref<2x256xf32, #tpu.memory_space<vmem>>, vector<1x32xf32>
    tpu.vector_store %arg3[%c1_39, %c192_40], %58 {strides = array<i32>} : memref<2x256xf32, #tpu.memory_space<vmem>>, vector<1x32xf32>,
    %60 = vector.extract_strided_slice %29 {offsets = [7, 32], sizes = [1, 32], strides = [1, 1]} : vector<8x64xf32> to vector<1x32xf32>
    %c1_41 = arith.constant 1 : index
    %c224_42 = arith.constant 224 : index
    %61 = vector.load %arg3[%c1_41, %c224_42] : memref<2x256xf32, #tpu.memory_space<vmem>>, vector<1x32xf32>
    tpu.vector_store %arg3[%c1_41, %c224_42], %60 {strides = array<i32>} : memref<2x256xf32, #tpu.memory_space<vmem>>, vector<1x32xf32>,
    %c0_43 = arith.constant 0 : index
    %c0_44 = arith.constant 0 : index
    %62 = vector.load %arg3[%c0_43, %c0_44] : memref<2x256xf32, #tpu.memory_space<vmem>>, vector<2x256xf32>
    %cst_45 = arith.constant dense<0.000000e+00> : vector<2x120xf32>
    %63 = tpu.matmul %62, %3, %cst_45 {dimension_numbers = #tpu.dot_dimension_numbers<[1], [0], [0], [1], [0, 0, 1, 1], [], []>, precision = #tpu.contract_precision<fp32>} : vector<2x256xf32>, vector<256x120xf32>, vector<2x120xf32> -> vector<2x120xf32>
    %64 = vector.broadcast %4 : vector<1x120xf32> to vector<2x120xf32>
    %65 = arith.addf %63, %64 : vector<2x120xf32>
    %cst_46 = arith.constant 0.000000e+00 : f32
    %66 = vector.broadcast %cst_46 : f32 to vector<2x120xf32>
    %67 = arith.cmpf ogt, %65, %66 : vector<2x120xf32>
    %cst_47 = arith.constant 0.000000e+00 : f32
    %68 = vector.broadcast %cst_47 : f32 to vector<2x120xf32>
    %69 = arith.minimumf %65, %68 : vector<2x120xf32>
    %70 = math.exp %69 : vector<2x120xf32>
    %cst_48 = arith.constant 1.000000e+00 : f32
    %71 = vector.broadcast %cst_48 : f32 to vector<2x120xf32>
    %72 = arith.subf %70, %71 : vector<2x120xf32>
    %73 = arith.select %67, %65, %72 : vector<2x120xi1>, vector<2x120xf32>
    %cst_49 = arith.constant dense<0.000000e+00> : vector<2x32xf32>
    %74 = tpu.matmul %73, %5, %cst_49 {dimension_numbers = #tpu.dot_dimension_numbers<[1], [0], [0], [1], [0, 0, 1, 1], [], []>, precision = #tpu.contract_precision<fp32>} : vector<2x120xf32>, vector<120x32xf32>, vector<2x32xf32> -> vector<2x32xf32>
    %75 = vector.broadcast %6 : vector<1x32xf32> to vector<2x32xf32>
    %76 = arith.addf %74, %75 : vector<2x32xf32>
    %cst_50 = arith.constant dense<0xFF800000> : vector<2xf32>
    %77 = vector.multi_reduction <maximumf>, %76, %cst_50 [1] : vector<2x32xf32> to vector<2xf32>
    %78 = vector.shape_cast %77 : vector<2xf32> to vector<2x1xf32>
    %79 = vector.broadcast %78 : vector<2x1xf32> to vector<2x32xf32>
    %80 = arith.subf %76, %79 : vector<2x32xf32>
    %81 = math.exp %80 : vector<2x32xf32>
    %cst_51 = arith.constant dense<0.000000e+00> : vector<2x32xf32>
    %82 = tpu.matmul %81, %7, %cst_51 {dimension_numbers = #tpu.dot_dimension_numbers<[1], [0], [0], [1], [0, 0, 1, 1], [], []>, precision = #tpu.contract_precision<fp32>} : vector<2x32xf32>, vector<32x32xf32>, vector<2x32xf32> -> vector<2x32xf32>
    %83 = tpu.reciprocal %82 : vector<2x32xf32> -> vector<2x32xf32>
    %84 = arith.mulf %81, %83 : vector<2x32xf32>
    %cst_52 = arith.constant dense<0.000000e+00> : vector<2x8xf32>
    %85 = tpu.matmul %84, %8, %cst_52 {dimension_numbers = #tpu.dot_dimension_numbers<[1], [0], [0], [1], [0, 0, 1, 1], [], []>, precision = #tpu.contract_precision<fp32>} : vector<2x32xf32>, vector<32x8xf32>, vector<2x8xf32> -> vector<2x8xf32>
    %c0_53 = arith.constant 0 : index
    %c0_54 = arith.constant 0 : index
    %86 = vector.load %arg2[%c0_53, %c0_54] : memref<2x8xf32, #tpu.memory_space<vmem>>, vector<2x8xf32>
    tpu.vector_store %arg2[%c0_53, %c0_54], %85 {strides = array<i32>} : memref<2x8xf32, #tpu.memory_space<vmem>>, vector<2x8xf32>,
    return
  }
}

</mosaic_0001>

<bundles_post_ra>
// kernel: squeeze.23
= control target key start
LH: loop header
LB: loop body
LE: loop exit
PB: predicated region body
PF: predicated region fallthrough
CT: control target
= control target key end

     0   :  { %vm8_vm0 = vcmask 261120   ;;  %vm14_vm1 = vcmask 523520   ;;  %s42_s0 = inlined_call_operand.vmem [shape: f32[2,32], index: 0, kind: input, shape index: {}]   ;;  %s43_s1 = inlined_call_operand.vmem [shape: f32[1,64], index: 1, kind: output, shape index: {}]  }
   0x1   :  { %v5_v0 = vld [vmem:[%s42_s0] sm:$0x3]  ;;  %s25_s0 = smov 32  }
   0x2   :  { %6 = vst [vmem:[#allocation1] sm:$0x3] %v5_v0 }
   0x9   :  { %v11_v1 = vld [vmem:[#allocation1 + $0x1] sm:$0x1]   ;;  %v7_v2 = vld [vmem:[#allocation1] sm:$0x1]  }
   0xa   :  { %12 = vrot.lane.b32.xlu0 %v11_v1, %s25_s0  ;;  %9 = vst.msk [vmem:[#allocation0] sm:$0x1] %vm8_vm0, %v7_v2  }
  0x7c   :  { %v13_v3 = vpop.permute.xlu0 %12  }
  0x7d   :  { %15 = vst.msk [vmem:[#allocation0] sm:$0x1] %vm14_vm1, %v13_v3  }
  0x84   :  { %v20_v4 = vld [vmem:[#allocation0] sm:$0x1] }
  0x85   :  { %23 = vst [vmem:[%s43_s1] sm:$0x1] %v20_v4 }

// kernel: mul.28
= control target key start
LH: loop header
LB: loop body
LE: loop exit
PB: predicated region body
PF: predicated region fallthrough
CT: control target
= control target key end

     0   :  { %vm43_vm0 = vcmask 1047556   ;;  %vm45_vm1 = vcmask 130048   ;;  %vm61_vm2 = vcmask 261248   ;;  %s163_s0 = inlined_call_operand.vmem [shape: f32[4,2,2,16], index: 0, kind: input, shape index: {}]   ;;  %s164_s1 = inlined_call_operand.vmem [shape: f32[4,2,32], index: 1, kind: output, shape index: {}]  }
   0x1   :  { %v105_v0 = vld [vmem:[%s163_s0 + $0xe] sm:$0x3]  ;;  %v106_v1 = vld [vmem:[%s163_s0 + $0xc] sm:$0x3]  ;;  %v107_v2 = vld [vmem:[%s163_s0 + $0xa] sm:$0x3] }
   0x2   :  { %9 = vst [vmem:[#allocation1 + $0x38] sm:$0x3] %v105_v0  ;;  %14 = vst [vmem:[#allocation1 + $0x30] sm:$0x3] %v106_v1  ;;  %v108_v3 = vld [vmem:[%s163_s0 + $0x8] sm:$0x3] }
   0x3   :  { %19 = vst [vmem:[#allocation1 + $0x28] sm:$0x3] %v107_v2  ;;  %v109_v4 = vld [vmem:[%s163_s0 + $0x6] sm:$0x3]  ;;  %v110_v5 = vld [vmem:[%s163_s0 + $0x4] sm:$0x3] }
   0x4   :  { %24 = vst [vmem:[#allocation1 + $0x20] sm:$0x3] %v108_v3  ;;  %29 = vst [vmem:[#allocation1 + $0x18] sm:$0x3] %v109_v4  ;;  %v111_v6 = vld [vmem:[%s163_s0 + $0x2] sm:$0x3] }
   0x5   :  { %34 = vst [vmem:[#allocation1 + $0x10] sm:$0x3] %v110_v5  ;;  %v39_v7 = vld [vmem:[%s163_s0] sm:$0x3]  ;;  %38 = vst [vmem:[#allocation1 + $0x8] sm:$0x3] %v111_v6 }
   0x6   :  { %40 = vst [vmem:[#allocation1] sm:$0x3] %v39_v7  ;;  %s116_s0 = smov 16  }
   0xb   :  { %v42_v8 = vld [vmem:[#allocation1] ss:$8 sm:$0xf0]   ;;  %v56_v9 = vld [vmem:[#allocation1 + $0x1] ss:$8 sm:$0xf0]  }
   0xd   :  { %v41_v10 = vld [vmem:[#allocation1] ss:$8 sm:$0xf]   ;;  %v54_v11 = vld [vmem:[#allocation1 + $0x1] ss:$8 sm:$0xf]  }
   0xe   :  { %v44_v12 = vsel %vm43_vm0, %v42_v8, %v41_v10  ;;  %v58_v13 = vsel %vm43_vm0, %v56_v9, %v54_v11 }
   0xf   :  { %59 = vrot.lane.b32.xlu0 %v58_v13, %s116_s0  ;;  %46 = vst.msk [vmem:[#allocation0] sm:$0x3] %vm45_vm1, %v44_v12   ;;  %48 = vst.msk [vmem:[#allocation0 + $0x6] sm:$0xc] %vm45_vm1, %v44_v12  }
  0x10   :  { %50 = vst.msk [vmem:[#allocation0 + $0xc] sm:$0x30] %vm45_vm1, %v44_v12   ;;  %52 = vst.msk [vmem:[#allocation0 + $0x12] sm:$0xc0] %vm45_vm1, %v44_v12  }
  0x81   :  { %v60_v14 = vpop.permute.xlu0 %59  }
  0x82   :  { %62 = vst.msk [vmem:[#allocation0] sm:$0x3] %vm61_vm2, %v60_v14   ;;  %64 = vst.msk [vmem:[#allocation0 + $0x6] sm:$0xc] %vm61_vm2, %v60_v14  }
  0x83   :  { %66 = vst.msk [vmem:[#allocation0 + $0xc] sm:$0x30] %vm61_vm2, %v60_v14   ;;  %68 = vst.msk [vmem:[#allocation0 + $0x12] sm:$0xc0] %vm61_vm2, %v60_v14  }
  0x89   :  { %v73_v15 = vld [vmem:[#allocation0] sm:$0x3]  ;;  %v78_v16 = vld [vmem:[#allocation0 + $0x8] sm:$0x3] }
  0x8a   :  { %v84_v17 = vld [vmem:[#allocation0 + $0x10] sm:$0x3]  ;;  %76 = vst [vmem:[%s164_s1] sm:$0x3] %v73_v15  ;;  %112 = vst [vmem:[%s164_s1 + $0x2] sm:$0x3] %v78_v16 }
  0x8b   :  { %113 = vst [vmem:[%s164_s1 + $0x4] sm:$0x3] %v84_v17  ;;  %v91_v18 = vld [vmem:[#allocation0 + $0x18] sm:$0x3] }
  0x8c   :  { %114 = vst [vmem:[%s164_s1 + $0x6] sm:$0x3] %v91_v18 }

// kernel: mul.47
= control target key start
LH: loop header
LB: loop body
LE: loop exit
PB: predicated region body
PF: predicated region fallthrough
CT: control target
= control target key end

     0   :  { %s238_s0 = inlined_call_operand.vmem [shape: f32[4,4], index: 0, kind: input, shape index: {}]   ;;  %s239_s1 = inlined_call_operand.vmem [shape: f32[4,8,4,8], index: 1, kind: output, shape index: {}]  }
   0x1   :  { %v88_v0 = vld [vmem:[%s238_s0 + $0x2] ss:$0 sm:$0xff]  ;;  %v4_v1 = vld [vmem:[%s238_s0] ss:$0 sm:$0xff]  ;;  %v90_v2 = vld [vmem:[%s238_s0 + $0x3] ss:$0 sm:$0xff] }
   0x2   :  { %19 = vbcast.lane.b32.xlu1 %v88_v0, 256  ;;  %6 = vbcast.lane.b32.xlu0 %v4_v1, 256  ;;  %v86_v3 = vld [vmem:[%s238_s0 + $0x1] ss:$0 sm:$0xff] }
   0x6   :  { %26 = vbcast.lane.b32.xlu1 %v90_v2, 256  ;;  %12 = vbcast.lane.b32.xlu0 %v86_v3, 256 }
  0x74   :  { %v20_v4 = vpop.permute.xlu1 %19  ;;  %v7_v5 = vpop.permute.xlu0 %6 }
  0x75   :  { %89 = vst [vmem:[%s239_s1 + $0x40] sm:$0xf] %v20_v4  ;;  %94 = vst [vmem:[%s239_s1 + $0x44] sm:$0xf] %v20_v4 }
  0x76   :  { %98 = vst [vmem:[%s239_s1 + $0x48] sm:$0xf] %v20_v4  ;;  %102 = vst [vmem:[%s239_s1 + $0x4c] sm:$0xf] %v20_v4 }
  0x77   :  { %106 = vst [vmem:[%s239_s1 + $0x50] sm:$0xf] %v20_v4  ;;  %110 = vst [vmem:[%s239_s1 + $0x54] sm:$0xf] %v20_v4 }
  0x78   :  { %114 = vst [vmem:[%s239_s1 + $0x58] sm:$0xf] %v20_v4  ;;  %118 = vst [vmem:[%s239_s1 + $0x5c] sm:$0xf] %v20_v4  ;;  %v27_v6 = vpop.permute.xlu1 %26  ;;  %v13_v7 = vpop.permute.xlu0 %12 }
  0x79   :  { %8 = vst [vmem:[%s239_s1] sm:$0xf] %v7_v5  ;;  %92 = vst [vmem:[%s239_s1 + $0x4] sm:$0xf] %v7_v5 }
  0x7a   :  { %96 = vst [vmem:[%s239_s1 + $0x8] sm:$0xf] %v7_v5  ;;  %100 = vst [vmem:[%s239_s1 + $0xc] sm:$0xf] %v7_v5 }
  0x7b   :  { %104 = vst [vmem:[%s239_s1 + $0x10] sm:$0xf] %v7_v5  ;;  %108 = vst [vmem:[%s239_s1 + $0x14] sm:$0xf] %v7_v5 }
  0x7c   :  { %112 = vst [vmem:[%s239_s1 + $0x18] sm:$0xf] %v7_v5  ;;  %116 = vst [vmem:[%s239_s1 + $0x1c] sm:$0xf] %v7_v5 }
  0x7d   :  { %91 = vst [vmem:[%s239_s1 + $0x60] sm:$0xf] %v27_v6  ;;  %95 = vst [vmem:[%s239_s1 + $0x64] sm:$0xf] %v27_v6 }
  0x7e   :  { %99 = vst [vmem:[%s239_s1 + $0x68] sm:$0xf] %v27_v6  ;;  %103 = vst [vmem:[%s239_s1 + $0x6c] sm:$0xf] %v27_v6 }
  0x7f   :  { %107 = vst [vmem:[%s239_s1 + $0x70] sm:$0xf] %v27_v6  ;;  %111 = vst [vmem:[%s239_s1 + $0x74] sm:$0xf] %v27_v6 }
  0x80   :  { %115 = vst [vmem:[%s239_s1 + $0x78] sm:$0xf] %v27_v6  ;;  %119 = vst [vmem:[%s239_s1 + $0x7c] sm:$0xf] %v27_v6 }
  0x81   :  { %87 = vst [vmem:[%s239_s1 + $0x20] sm:$0xf] %v13_v7  ;;  %93 = vst [vmem:[%s239_s1 + $0x24] sm:$0xf] %v13_v7 }
  0x82   :  { %97 = vst [vmem:[%s239_s1 + $0x28] sm:$0xf] %v13_v7  ;;  %101 = vst [vmem:[%s239_s1 + $0x2c] sm:$0xf] %v13_v7 }
  0x83   :  { %105 = vst [vmem:[%s239_s1 + $0x30] sm:$0xf] %v13_v7  ;;  %109 = vst [vmem:[%s239_s1 + $0x34] sm:$0xf] %v13_v7 }
  0x84   :  { %113 = vst [vmem:[%s239_s1 + $0x38] sm:$0xf] %v13_v7  ;;  %117 = vst [vmem:[%s239_s1 + $0x3c] sm:$0xf] %v13_v7 }

// kernel: run_bnn.1
= control target key start
LH: loop header
LB: loop body
LE: loop exit
PB: predicated region body
PF: predicated region fallthrough
CT: control target
= control target key end

     0   :  { %vm138_vm0 = vcmask 1044480   ;;  %vm89_vm1 = vcmask 105472   ;;  %s8137_s0 = inlined_call_operand.vmem [shape: f32[13,64], index: 0, kind: input, shape index: {}]   ;;  %s8138_s1 = inlined_call_operand.vmem [shape: f32[586,128], index: 1, kind: input, shape index: {}]   ;;  %s8139_s2 = inlined_call_operand.hbm [shape: f32[2,8], index: 2, kind: output, shape index: {}]  }
   0x1   :  { %v88_v0 = vld [vmem:[%s8137_s0 + $0x8] sm:$0x1f]  ;;  %v87_v1 = vld [vmem:[%s8137_s0] sm:$0xff]  ;;  %v14_v7 = vld [vmem:[%s8138_s1 + $0x10] sm:$0xff] }
   0x2   :  { %v12_v2 = vld [vmem:[%s8138_s1] sm:$0xff]  ;;  %v140_v3 = vsel %vm138_vm0, %v88_v0, 0  ;;  %v6009_v4 = vand.u32 4294901760, %v87_v1  ;;  %v13_v6 = vld [vmem:[%s8138_s1 + $0x8] sm:$0xff]  ;;  %v15_v8 = vld [vmem:[%s8138_s1 + $0x18] sm:$0xff]  ;;  %v97_v12 = vsel %vm89_vm1, %v14_v7, 0 }
   0x3   :  { %v91_v5 = vsel %vm89_vm1, %v12_v2, 0  ;;  %v6021_v9 = vand.u32 4294901760, %v140_v3  ;;  %v94_v11 = vsel %vm89_vm1, %v13_v6, 0  ;;  %v16_v13 = vld [vmem:[%s8138_s1 + $0x20] sm:$0xff]  ;;  %v6035_v16 = vand.u32 4294901760, %v97_v12  ;;  %v17_v18 = vld [vmem:[%s8138_s1 + $0x28] sm:$0xff] }
   0x4   :  { %v6023_v10 = vand.u32 4294901760, %v91_v5  ;;  %v6030_v14 = vand.u32 4294901760, %v94_v11  ;;  %v6033_v15 = vsub.f32 %v87_v1, %v6009_v4  ;;  %v100_v17 = vsel %vm89_vm1, %v15_v8, 0 }
   0x5   :  { %5198 = vmatprep.subr.mxu0 %v6021_v9  ;;  %v399_v20 = vsub.f32 %v140_v3, %v6021_v9  ;;  %v6047_v21 = vand.u32 4294901760, %v100_v17  ;;  %v103_v22 = vsel %vm89_vm1, %v16_v13, 0  ;;  %v6058_v25 = vsub.f32 %v97_v12, %v6035_v16 }
   0x6   :  { %v6043_v19 = vsub.f32 %v91_v5, %v6023_v10  ;;  %5230 = vmatprep.mubr.f32.mxu1 %v6023_v10  ;;  %5199 = vmatpush3.msra.mxu0 %v6021_v9  ;;  %v6052_v23 = vsub.f32 %v94_v11, %v6030_v14  ;;  %v6055_v24 = vand.u32 4294901760, %v6033_v15  ;;  %v6060_v26 = vand.u32 4294901760, %v103_v22 }
   0x7   :  { %5200 = vmatprep.subr.mxu0 %v6009_v4  ;;  %v6064_v28 = vand.u32 4294901760, %v399_v20  ;;  %v6067_v29 = vsub.f32 %v100_v17, %v6047_v21  ;;  %v106_v30 = vsel %vm89_vm1, %v17_v18, 0 }
   0x8   :  { %v211_v27 = vand.u32 4294901760, %v6043_v19 }
   0x9   :  { %7 = vsyncpa [#allocation4], 0  ;;  %5201 = vmatpush3.msra.mxu0 %v6009_v4  ;;  %v221_v31 = vand.u32 4294901760, %v6052_v23  ;;  %v408_v32 = vsub.f32 %v6033_v15, %v6055_v24  ;;  %v231_v33 = vand.u32 4294901760, %v6058_v25  ;;  %v6076_v34 = vsub.f32 %v103_v22, %v6060_v26  ;;  %v18_v39 = vld [vmem:[%s8138_s1 + $0x30] sm:$0xff]  ;;  %v19_v44 = vld [vmem:[%s8138_s1 + $0x38] sm:$0xff] }
   0xa   :  { %v212_v35 = vsub.f32 %v6043_v19, %v211_v27  ;;  %v401_v36 = vsub.f32 %v399_v20, %v6064_v28  ;;  %5254 = vmatprep.subr.mxu0 %v399_v20  ;;  %v241_v37 = vand.u32 4294901760, %v6067_v29  ;;  %v6083_v38 = vand.u32 4294901760, %v106_v30  ;;  %v20_v49 = vld [vmem:[%s8138_s1 + $0x40] sm:$0xff]  ;;  %v21_v50 = vld [vmem:[%s8138_s1 + $0x48] sm:$0xff]  ;;  %v22_v55 = vld [vmem:[%s8138_s1 + $0x50] sm:$0xff]  ;;  %s5981_s9 = smov 96  }
   0xb   :  { %v222_v40 = vsub.f32 %v6052_v23, %v221_v31  ;;  %v409_v41 = vand.u32 4294901760, %v408_v32  ;;  %v232_v42 = vsub.f32 %v6058_v25, %v231_v33  ;;  %v251_v43 = vand.u32 4294901760, %v6076_v34  ;;  %v23_v60 = vld [vmem:[%s8138_s1 + $0x58] sm:$0xff]  ;;  %v24_v61 = vld [vmem:[%s8138_s1 + $0x60] sm:$0xff]  ;;  %v25_v13 = vld [vmem:[%s8138_s1 + $0x68] sm:$0xff]  ;;  %s5982_s18 = smov 64  }
   0xc   :  { %v213_v45 = vand.u32 4294901760, %v212_v35  ;;  %v402_v46 = vand.u32 4294901760, %v401_v36  ;;  %v242_v47 = vsub.f32 %v6067_v29, %v241_v37  ;;  %v6102_v48 = vsub.f32 %v106_v30, %v6083_v38  ;;  %s5983_s20 = smov 32  }
   0xd   :  { %v223_v51 = vand.u32 4294901760, %v222_v40  ;;  %v233_v52 = vand.u32 4294901760, %v232_v42  ;;  %v252_v53 = vsub.f32 %v6076_v34, %v251_v43  ;;  %v109_v54 = vsel %vm89_vm1, %v18_v39, 0 }
   0xe   :  { %5202 = vmatprep.mubr.f32.mxu0 %v213_v45  ;;  %5226 = vmatprep.subr.mxu1 %v402_v46  ;;  %v243_v56 = vand.u32 4294901760, %v242_v47  ;;  %v261_v57 = vand.u32 4294901760, %v6102_v48  ;;  %v6118_v58 = vand.u32 4294901760, %v109_v54  ;;  %v112_v59 = vsel %vm89_vm1, %v19_v44, 0 }
   0xf   :  { %5203 = vmatmul.mubr.f32.vlgmr.msra.gmra.mxu0 %v223_v51  ;;  %5227 = vmatpush3.msra.mxu1 %v402_v46  ;;  %v253_v62 = vand.u32 4294901760, %v252_v53  ;;  %v6127_v63 = vand.u32 4294901760, %v112_v59  ;;  %v115_v0 = vsel %vm89_vm1, %v20_v49, 0  ;;  %v118_v1 = vsel %vm89_vm1, %v21_v50, 0  ;;  %v26_v49 = vld [vmem:[%s8138_s1 + $0x70] sm:$0xff] }
  0x10   :  { %5228 = vmatprep.subr.mxu1 %v409_v41  ;;  %5255 = vmatpush3.msra.mxu0 %v399_v20  ;;  %v262_v2 = vsub.f32 %v6102_v48, %v261_v57  ;;  %v6135_v3 = vsub.f32 %v109_v54, %v6118_v58  ;;  %v6137_v5 = vand.u32 4294901760, %v115_v0  ;;  %v6139_v6 = vand.u32 4294901760, %v118_v1 }
  0x11   :  { %5229 = vmatpush3.msra.mxu1 %v409_v41  ;;  %5205 = vmatprep.mubr.f32.mxu0 %v233_v52  ;;  %v6142_v7 = vsub.f32 %v112_v59, %v6127_v63  ;;  %v121_v8 = vsel %vm89_vm1, %v22_v55, 0  ;;  %v124_v11 = vsel %vm89_vm1, %v23_v60, 0  ;;  %v127_v12 = vsel %vm89_vm1, %v24_v61, 0  ;;  %v27_v60 = vld [vmem:[%s8138_s1 + $0x78] sm:$0xff] }
  0x12   :  { %5231 = vmatmul.mubr.f32.vlgmr.msra.gmra.mxu1 %v6030_v14  ;;  %5282 = vmatprep.subr.mxu1 %v6021_v9  ;;  %v263_v17 = vand.u32 4294901760, %v262_v2  ;;  %v271_v18 = vand.u32 4294901760, %v6135_v3  ;;  %v6154_v20 = vsub.f32 %v115_v0, %v6137_v5  ;;  %v6157_v22 = vsub.f32 %v118_v1, %v6139_v6 }
  0x13   :  { %5206 = vmatmul.mubr.f32.gmra.mxu0 %v243_v56  ;;  %5283 = vmatpush3.msra.mxu1 %v6021_v9  ;;  %v281_v30 = vand.u32 4294901760, %v6142_v7  ;;  %v6161_v32 = vand.u32 4294901760, %v121_v8  ;;  %v6163_v35 = vand.u32 4294901760, %v124_v11  ;;  %v6165_v36 = vand.u32 4294901760, %v127_v12 }
  0x14   :  { %5233 = vmatprep.mubr.f32.mxu1 %v6035_v16  ;;  %5208 = vmatprep.mubr.f32.mxu0 %v253_v62  ;;  %v272_v39 = vsub.f32 %v6135_v3, %v271_v18  ;;  %v291_v40 = vand.u32 4294901760, %v6154_v20  ;;  %v301_v41 = vand.u32 4294901760, %v6157_v22  ;;  %v130_v42 = vsel %vm89_vm1, %v25_v13, 0 }
  0x15   :  { %v282_v44 = vsub.f32 %v6142_v7, %v281_v30  ;;  %5256 = vmatprep.subr.mxu0 %v6033_v15  ;;  %v6179_v45 = vsub.f32 %v121_v8, %v6161_v32  ;;  %5284 = vmatprep.subr.mxu1 %v6009_v4  ;;  %v6183_v46 = vsub.f32 %v124_v11, %v6163_v35  ;;  %v6185_v47 = vand.u32 4294901760, %v130_v42 }
  0x16   :  { %5234 = vmatmul.mubr.f32.gmra.mxu1 %v6047_v21  ;;  %v273_v50 = vand.u32 4294901760, %v272_v39  ;;  %v292_v51 = vsub.f32 %v6154_v20, %v291_v40  ;;  %v302_v52 = vsub.f32 %v6157_v22, %v301_v41  ;;  %5257 = vmatpush3.msra.mxu0 %v6033_v15  ;;  %v6199_v53 = vsub.f32 %v127_v12, %v6165_v36 }
  0x17   :  { %5209 = vmatmul.mubr.f32.gmra.mxu0 %v263_v17  ;;  %5236 = vmatprep.mubr.f32.mxu1 %v6060_v26  ;;  %v283_v54 = vand.u32 4294901760, %v282_v44  ;;  %v311_v55 = vand.u32 4294901760, %v6179_v45  ;;  %v321_v56 = vand.u32 4294901760, %v6183_v46  ;;  %v6205_v59 = vsub.f32 %v130_v42, %v6185_v47 }
  0x18   :  { %5211 = vmatprep.mubr.f32.mxu0 %v273_v50  ;;  %v293_v15 = vand.u32 4294901760, %v292_v51  ;;  %5285 = vmatpush3.msra.mxu1 %v6009_v4  ;;  %v331_v61 = vand.u32 4294901760, %v6199_v53  ;;  %v133_v62 = vsel %vm89_vm1, %v26_v49, 0  ;;  %v136_v2 = vsel %vm89_vm1, %v27_v60, 0 }
  0x19   :  { %v312_v0 = vsub.f32 %v6179_v45, %v311_v55  ;;  %v6216_v1 = vand.u32 4294901760, %v133_v62  ;;  %5310 = vmatprep.subr.mxu0 %v6064_v28  ;;  %5338 = vmatprep.subr.mxu1 %v6021_v9  ;;  %v303_v8 = vand.u32 4294901760, %v302_v52  ;;  %v322_v11 = vsub.f32 %v6183_v46, %v321_v56 }
  0x1a   :  { %5237 = vmatmul.mubr.f32.gmra.mxu1 %v6083_v38  ;;  %v341_v12 = vand.u32 4294901760, %v6205_v59  ;;  %v332_v39 = vsub.f32 %v6199_v53, %v331_v61  ;;  %v6233_v42 = vand.u32 4294901760, %v136_v2  ;;  %vm5978_vm2 = vmmov 0  }
  0x1b   :  { %5212 = vmatmul.mubr.f32.gmra.mxu0 %v283_v54  ;;  %5239 = vmatprep.mubr.f32.mxu1 %v6118_v58  ;;  %v6228_v13 = vsub.f32 %v133_v62, %v6216_v1  ;;  %v313_v17 = vand.u32 4294901760, %v312_v0  ;;  %v323_v50 = vand.u32 4294901760, %v322_v11 }
  0x1c   :  { %5214 = vmatprep.mubr.f32.mxu0 %v293_v15  ;;  %v6238_v49 = vsub.f32 %v136_v2, %v6233_v42  ;;  %v342_v51 = vsub.f32 %v6205_v59, %v341_v12  ;;  %v333_v52 = vand.u32 4294901760, %v332_v39 }
  0x1d   :  { %v351_v44 = vand.u32 4294901760, %v6228_v13 }
  0x1e   :  { %5240 = vmatmul.mubr.f32.gmra.mxu1 %v6127_v63  ;;  %v361_v60 = vand.u32 4294901760, %v6238_v49  ;;  %v343_v15 = vand.u32 4294901760, %v342_v51 }
  0x1f   :  { %5215 = vmatmul.mubr.f32.gmra.mxu0 %v303_v8  ;;  %5242 = vmatprep.mubr.f32.mxu1 %v6137_v5  ;;  %v352_v54 = vsub.f32 %v6228_v13, %v351_v44 }
  0x20   :  { %5217 = vmatprep.mubr.f32.mxu0 %v313_v17  ;;  %v362_v62 = vsub.f32 %v6238_v49, %v361_v60 }
  0x21   :  { %v353_v0 = vand.u32 4294901760, %v352_v54 }
  0x22   :  { %5243 = vmatmul.mubr.f32.gmra.mxu1 %v6139_v6  ;;  %v363_v2 = vand.u32 4294901760, %v362_v62 }
  0x23   :  { %5218 = vmatmul.mubr.f32.gmra.mxu0 %v323_v50  ;;  %5245 = vmatprep.mubr.f32.mxu1 %v6161_v32 }
  0x24   :  { %5220 = vmatprep.mubr.f32.mxu0 %v333_v52 }
  0x26   :  { %5246 = vmatmul.mubr.f32.gmra.mxu1 %v6163_v35 }
  0x27   :  { %5221 = vmatmul.mubr.f32.gmra.mxu0 %v343_v15  ;;  %5248 = vmatprep.mubr.f32.mxu1 %v6165_v36 }
  0x28   :  { %5223 = vmatprep.mubr.f32.mxu0 %v353_v0 }
  0x2a   :  { %5249 = vmatmul.mubr.f32.gmra.mxu1 %v6185_v47 }
  0x2b   :  { %5224 = vmatmul.mubr.f32.gmra.mxu0 %v363_v2  ;;  %5251 = vmatprep.mubr.f32.mxu1 %v6216_v1 }
  0x2c   :  { %5258 = vmatprep.mubr.f32.mxu0 %v6043_v19 }
  0x2e   :  { %5252 = vmatmul.mubr.f32.gmra.mxu1 %v6233_v42 }
  0x2f   :  { %5259 = vmatmul.mubr.f32.vlgmr.msra.gmra.mxu0 %v6052_v23  ;;  %5286 = vmatprep.mubr.f32.mxu1 %v211_v27 }
  0x30   :  { %5311 = vmatpush3.msra.mxu0 %v6064_v28  ;;  %5261 = vmatprep.mubr.f32.mxu0 %v6058_v25 }
  0x31   :  { %5312 = vmatprep.subr.mxu0 %v6055_v24 }
  0x32   :  { %5287 = vmatmul.mubr.f32.vlgmr.msra.gmra.mxu1 %v221_v31  ;;  %5313 = vmatpush3.msra.mxu0 %v6055_v24 }
  0x33   :  { %5262 = vmatmul.mubr.f32.gmra.mxu0 %v6067_v29  ;;  %5339 = vmatpush3.msra.mxu1 %v6021_v9 }
  0x34   :  { %5289 = vmatprep.mubr.f32.mxu1 %v231_v33  ;;  %5264 = vmatprep.mubr.f32.mxu0 %v6076_v34 }
  0x35   :  { %5340 = vmatprep.subr.mxu1 %v6009_v4 }
  0x36   :  { %5290 = vmatmul.mubr.f32.gmra.mxu1 %v241_v37 }
  0x37   :  { %5265 = vmatmul.mubr.f32.gmra.mxu0 %v6102_v48  ;;  %5292 = vmatprep.mubr.f32.mxu1 %v251_v43 }
  0x38   :  { %5267 = vmatprep.mubr.f32.mxu0 %v6135_v3  ;;  %5341 = vmatpush3.msra.mxu1 %v6009_v4  ;;  %v8140_v4 = vmov 0.0  }
  0x39   :  { %5366 = vmatprep.subr.mxu0 %v8140_v4  ;;  %5401 = vmatprep.subr.mxu1 %v8140_v4 }
  0x3a   :  { %5293 = vmatmul.mubr.f32.gmra.mxu1 %v261_v57 }
  0x3b   :  { %5268 = vmatmul.mubr.f32.gmra.mxu0 %v6142_v7  ;;  %5295 = vmatprep.mubr.f32.mxu1 %v271_v18 }
  0x3c   :  { %5270 = vmatprep.mubr.f32.mxu0 %v6154_v20 }
  0x3e   :  { %5296 = vmatmul.mubr.f32.gmra.mxu1 %v281_v30 }
  0x3f   :  { %5271 = vmatmul.mubr.f32.gmra.mxu0 %v6157_v22  ;;  %5298 = vmatprep.mubr.f32.mxu1 %v291_v40 }
  0x40   :  { %5273 = vmatprep.mubr.f32.mxu0 %v6179_v45 }
  0x42   :  { %5299 = vmatmul.mubr.f32.gmra.mxu1 %v301_v41 }
  0x43   :  { %5274 = vmatmul.mubr.f32.gmra.mxu0 %v6183_v46  ;;  %5301 = vmatprep.mubr.f32.mxu1 %v311_v55 }
  0x44   :  { %5276 = vmatprep.mubr.f32.mxu0 %v6199_v53 }
  0x46   :  { %5302 = vmatmul.mubr.f32.gmra.mxu1 %v321_v56 }
  0x47   :  { %5277 = vmatmul.mubr.f32.gmra.mxu0 %v6205_v59  ;;  %5304 = vmatprep.mubr.f32.mxu1 %v331_v61 }
  0x48   :  { %5279 = vmatprep.mubr.f32.mxu0 %v6228_v13 }
  0x4a   :  { %5305 = vmatmul.mubr.f32.gmra.mxu1 %v341_v12 }
  0x4b   :  { %5280 = vmatmul.mubr.f32.gmra.mxu0 %v6238_v49  ;;  %5307 = vmatprep.mubr.f32.mxu1 %v351_v44 }
  0x4c   :  { %5314 = vmatprep.mubr.f32.mxu0 %v6023_v10 }
  0x4e   :  { %5308 = vmatmul.mubr.f32.gmra.mxu1 %v361_v60 }
  0x4f   :  { %5315 = vmatmul.mubr.f32.vlgmr.msra.gmra.mxu0 %v6030_v14  ;;  %5342 = vmatprep.mubr.f32.mxu1 %v6023_v10 }
  0x50   :  { %5317 = vmatprep.mubr.f32.mxu0 %v6035_v16 }
  0x52   :  { %5343 = vmatmul.mubr.f32.vlgmr.msra.gmra.mxu1 %v6030_v14 }
  0x53   :  { %5318 = vmatmul.mubr.f32.gmra.mxu0 %v6047_v21  ;;  %5345 = vmatprep.mubr.f32.mxu1 %v6035_v16 }
  0x54   :  { %5320 = vmatprep.mubr.f32.mxu0 %v6060_v26 }
  0x56   :  { %5346 = vmatmul.mubr.f32.gmra.mxu1 %v6047_v21 }
  0x57   :  { %5321 = vmatmul.mubr.f32.gmra.mxu0 %v6083_v38  ;;  %5348 = vmatprep.mubr.f32.mxu1 %v6060_v26 }
  0x58   :  { %5323 = vmatprep.mubr.f32.mxu0 %v6118_v58 }
  0x5a   :  { %5349 = vmatmul.mubr.f32.gmra.mxu1 %v6083_v38 }
  0x5b   :  { %5324 = vmatmul.mubr.f32.gmra.mxu0 %v6127_v63  ;;  %5351 = vmatprep.mubr.f32.mxu1 %v6118_v58 }
  0x5c   :  { %5326 = vmatprep.mubr.f32.mxu0 %v6137_v5 }
  0x5e   :  { %5352 = vmatmul.mubr.f32.gmra.mxu1 %v6127_v63 }
  0x5f   :  { %5327 = vmatmul.mubr.f32.gmra.mxu0 %v6139_v6  ;;  %5354 = vmatprep.mubr.f32.mxu1 %v6137_v5 }
  0x60   :  { %5329 = vmatprep.mubr.f32.mxu0 %v6161_v32 }
  0x62   :  { %5355 = vmatmul.mubr.f32.gmra.mxu1 %v6139_v6 }
  0x63   :  { %5330 = vmatmul.mubr.f32.gmra.mxu0 %v6163_v35  ;;  %5357 = vmatprep.mubr.f32.mxu1 %v6161_v32 }
  0x64   :  { %5332 = vmatprep.mubr.f32.mxu0 %v6165_v36 }
  0x66   :  { %5358 = vmatmul.mubr.f32.gmra.mxu1 %v6163_v35 }
  0x67   :  { %5333 = vmatmul.mubr.f32.gmra.mxu0 %v6185_v47  ;;  %5360 = vmatprep.mubr.f32.mxu1 %v6165_v36 }
  0x68   :  { %5335 = vmatprep.mubr.f32.mxu0 %v6216_v1 }
  0x6a   :  { %5361 = vmatmul.mubr.f32.gmra.mxu1 %v6185_v47 }
  0x6b   :  { %5336 = vmatmul.mubr.f32.gmra.mxu0 %v6233_v42  ;;  %5363 = vmatprep.mubr.f32.mxu1 %v6216_v1 }
  0x6c   :  { %5398 = vmatprep.mubr.msk.f32.mxu0 %vm5978_vm2, %v8140_v4 }
  0x6e   :  { %5364 = vmatmul.mubr.f32.gmra.mxu1 %v6233_v42 }
  0x6f   :  { %5433 = vmatprep.mubr.msk.f32.mxu1 %vm5978_vm2, %v8140_v4 }
  0xcf   :  { %v5204_v9 = vpop.f32.mrf.mxu0 }
  0xd1   :  { %v215_v10 = vpop.f32.mrf.mxu0 }
  0xd2   :  { %v5232_v14 = vpop.f32.mrf.mxu1 }
  0xd3   :  { %v453_v16 = vadd.f32 %v5232_v14, %v5204_v9  ;;  %v5207_v19 = vpop.f32.mrf.mxu0 }
  0xd4   :  { %v446_v21 = vpop.f32.mrf.mxu1 }
  0xd5   :  { %v447_v23 = vadd.f32 %v446_v21, %v215_v10  ;;  %v235_v24 = vpop.f32.mrf.mxu0 }
  0xd6   :  { %v5235_v25 = vpop.f32.mrf.mxu1 }
  0xd7   :  { %v465_v26 = vadd.f32 %v5235_v25, %v5207_v19  ;;  %v5210_v27 = vpop.f32.mrf.mxu0 }
  0xd8   :  { %v458_v28 = vpop.f32.mrf.mxu1 }
  0xd9   :  { %v459_v29 = vadd.f32 %v458_v28, %v235_v24  ;;  %v255_v31 = vpop.f32.mrf.mxu0 }
  0xda   :  { %v5238_v33 = vpop.f32.mrf.mxu1 }
  0xdb   :  { %v477_v34 = vadd.f32 %v5238_v33, %v5210_v27  ;;  %v5213_v37 = vpop.f32.mrf.mxu0 }
  0xdc   :  { %v470_v38 = vpop.f32.mrf.mxu1 }
  0xdd   :  { %v471_v43 = vadd.f32 %v470_v38, %v255_v31  ;;  %v275_v48 = vpop.f32.mrf.mxu0 }
  0xde   :  { %v5241_v57 = vpop.f32.mrf.mxu1 }
  0xdf   :  { %v6338_v58 = vadd.f32 %v5241_v57, %v5213_v37  ;;  %v5216_v63 = vpop.f32.mrf.mxu0 }
  0xe0   :  { %v482_v3 = vpop.f32.mrf.mxu1 }
  0xe1   :  { %v6340_v5 = vadd.f32 %v482_v3, %v275_v48  ;;  %v295_v6 = vpop.f32.mrf.mxu0 }
  0xe2   :  { %v5244_v7 = vpop.f32.mrf.mxu1 }
  0xe3   :  { %v6342_v18 = vadd.f32 %v5244_v7, %v5216_v63  ;;  %v5219_v20 = vpop.f32.mrf.mxu0 }
  0xe4   :  { %v494_v22 = vpop.f32.mrf.mxu1 }
  0xe5   :  { %v6344_v30 = vadd.f32 %v494_v22, %v295_v6  ;;  %v315_v32 = vpop.f32.mrf.mxu0 }
  0xe6   :  { %v5247_v35 = vpop.f32.mrf.mxu1 }
  0xe7   :  { %v6346_v36 = vadd.f32 %v5247_v35, %v5219_v20  ;;  %v5222_v40 = vpop.f32.mrf.mxu0 }
  0xe8   :  { %v506_v41 = vpop.f32.mrf.mxu1 }
  0xe9   :  { %v6348_v45 = vadd.f32 %v506_v41, %v315_v32  ;;  %v335_v46 = vpop.f32.mrf.mxu0 }
  0xea   :  { %v5250_v47 = vpop.f32.mrf.mxu1 }
  0xeb   :  { %v6350_v53 = vadd.f32 %v5250_v47, %v5222_v40  ;;  %v6352_v55 = vpop.f32.mrf.mxu0 }
  0xec   :  { %v518_v56 = vpop.f32.mrf.mxu1 }
  0xed   :  { %v6358_v59 = vadd.f32 %v518_v56, %v335_v46  ;;  %v6360_v61 = vpop.f32.mrf.mxu0 }
  0xee   :  { %v6362_v1 = vpop.f32.mrf.mxu1 }
  0xef   :  { %v5260_v8 = vpop.f32.mrf.mxu0 }
  0xf0   :  { %v620_v11 = vadd.f32 %v5260_v8, %v453_v16  ;;  %v6364_v12 = vpop.f32.mrf.mxu1 }
  0xf1   :  { %v612_v13 = vpop.f32.mrf.mxu0 }
  0xf2   :  { %v613_v17 = vadd.f32 %v612_v13, %v447_v23  ;;  %v5288_v39 = vpop.f32.mrf.mxu1 }
  0xf3   :  { %v6366_v42 = vadd.f32 %v5288_v39, %v620_v11  ;;  %v5263_v44 = vpop.f32.mrf.mxu0 }
  0xf4   :  { %v634_v49 = vadd.f32 %v5263_v44, %v465_v26  ;;  %v792_v50 = vpop.f32.mrf.mxu1 }
  0xf5   :  { %v6368_v51 = vadd.f32 %v792_v50, %v613_v17  ;;  %v626_v52 = vpop.f32.mrf.mxu0 }
  0xf6   :  { %v627_v54 = vadd.f32 %v626_v52, %v459_v29  ;;  %v5291_v60 = vpop.f32.mrf.mxu1 }
  0xf7   :  { %v6370_v15 = vadd.f32 %v5291_v60, %v634_v49  ;;  %v5266_v62 = vpop.f32.mrf.mxu0 }
  0xf8   :  { %v648_v0 = vadd.f32 %v5266_v62, %v477_v34  ;;  %v808_v2 = vpop.f32.mrf.mxu1 }
  0xf9   :  { %v6372_v9 = vadd.f32 %v808_v2, %v627_v54  ;;  %v640_v10 = vpop.f32.mrf.mxu0 }
  0xfa   :  { %v641_v14 = vadd.f32 %v640_v10, %v471_v43  ;;  %v5294_v16 = vpop.f32.mrf.mxu1 }
  0xfb   :  { %v6374_v19 = vadd.f32 %v5294_v16, %v648_v0  ;;  %v5269_v21 = vpop.f32.mrf.mxu0 }
  0xfc   :  { %v824_v23 = vpop.f32.mrf.mxu1  ;;  %v662_v60 = vadd.f32 %v5269_v21, %v6338_v58 }
  0xfd   :  { %v6376_v24 = vadd.f32 %v824_v23, %v641_v14  ;;  %v654_v25 = vpop.f32.mrf.mxu0 }
  0xfe   :  { %v5297_v26 = vpop.f32.mrf.mxu1 }
  0xff   :  { %v5272_v27 = vpop.f32.mrf.mxu0 }
 0x100   :  { %v840_v28 = vpop.f32.mrf.mxu1  ;;  %v676_v10 = vadd.f32 %v5272_v27, %v6342_v18  ;;  %v537_v27 = vadd.f32 %v6362_v1, %v6352_v55 }
 0x101   :  { %v668_v29 = vpop.f32.mrf.mxu0 }
 0x102   :  { %v5300_v31 = vpop.f32.mrf.mxu1 }
 0x103   :  { %v5275_v33 = vpop.f32.mrf.mxu0  ;;  %v865_v21 = vadd.f32 %v5300_v31, %v676_v10 }
 0x104   :  { %v856_v34 = vpop.f32.mrf.mxu1  ;;  %v690_v50 = vadd.f32 %v5275_v33, %v6346_v36 }
 0x105   :  { %v682_v37 = vpop.f32.mrf.mxu0 }
 0x106   :  { %v5303_v38 = vpop.f32.mrf.mxu1  ;;  %v683_v62 = vadd.f32 %v682_v37, %v6348_v45 }
 0x107   :  { %v5278_v48 = vpop.f32.mrf.mxu0  ;;  %v881_v14 = vadd.f32 %v5303_v38, %v690_v50 }
 0x108   :  { %v872_v57 = vpop.f32.mrf.mxu1  ;;  %v704_v23 = vadd.f32 %v5278_v48, %v6350_v53 }
 0x109   :  { %v696_v43 = vpop.f32.mrf.mxu0 }
 0x10a   :  { %v5306_v63 = vpop.f32.mrf.mxu1  ;;  %v697_v58 = vadd.f32 %v696_v43, %v6358_v59 }
 0x10b   :  { %v5281_v3 = vpop.f32.mrf.mxu0  ;;  %v897_v53 = vadd.f32 %v5306_v63, %v704_v23 }
 0x10c   :  { %v888_v6 = vpop.f32.mrf.mxu1  ;;  %v718_v59 = vadd.f32 %v5281_v3, %v537_v27 }
 0x10d   :  { %v710_v7 = vpop.f32.mrf.mxu0  ;;  %v889_v48 = vadd.f32 %v888_v6, %v697_v58 }
 0x10e   :  { %v6378_v20 = vpop.f32.mrf.mxu1 }
 0x10f   :  { %v6380_v22 = vpop.f32.mrf.mxu0 }
 0x110   :  { %v6382_v32 = vpop.f32.mrf.mxu1 }
 0x111   :  { %v6384_v35 = vpop.f32.mrf.mxu0 }
 0x112   :  { %8215 = vst [vmem:[#allocation6_spill] sm:$0xff] %v6384_v35  ;;  %v6386_v40 = vpop.f32.mrf.mxu1 }
 0x113   :  { %8216 = vst [vmem:[#allocation7_spill] sm:$0xff] %v6386_v40  ;;  %v6388_v41 = vpop.f32.mrf.mxu0  ;;  %v669_v40 = vadd.f32 %v668_v29, %v6344_v30  ;;  %v531_v30 = vadd.f32 %v6364_v12, %v6360_v61 }
 0x114   :  { %v6390_v46 = vpop.f32.mrf.mxu1  ;;  %v1008_v10 = vadd.f32 %v6388_v41, %v6370_v15 }
 0x115   :  { %8217 = vst [vmem:[#allocation8_spill] sm:$0xff] %v6390_v46  ;;  %v6392_v47 = vpop.f32.mrf.mxu0  ;;  %v849_v46 = vadd.f32 %v5297_v26, %v662_v60  ;;  %v857_v26 = vadd.f32 %v856_v34, %v669_v40  ;;  %v711_v43 = vadd.f32 %v710_v7, %v531_v30 }
 0x116   :  { %v6394_v56 = vpop.f32.mrf.mxu1 }
 0x117   :  { %8218 = vst [vmem:[#allocation9_spill] sm:$0xff] %v6394_v56  ;;  %v5322_v8 = vpop.f32.mrf.mxu0  ;;  %v655_v56 = vadd.f32 %v654_v25, %v6340_v5  ;;  %v905_v7 = vadd.f32 %v6382_v32, %v711_v43 }
 0x118   :  { %v6396_v11 = vpop.f32.mrf.mxu1 }
 0x119   :  { %8219 = vst [vmem:[#allocation10_spill] sm:$0xff] %v6396_v11  ;;  %v6398_v13 = vpop.f32.mrf.mxu0  ;;  %v873_v11 = vadd.f32 %v872_v57, %v683_v62  ;;  %v841_v25 = vadd.f32 %v840_v28, %v655_v56  ;;  %v913_v28 = vadd.f32 %v6378_v20, %v718_v59 }
 0x11a   :  { %v6400_v17 = vpop.f32.mrf.mxu1  ;;  %v1014_v32 = vadd.f32 %v6398_v13, %v6376_v24 }
 0x11b   :  { %v5325_v39 = vpop.f32.mrf.mxu0 }
 0x11c   :  { %v6402_v44 = vpop.f32.mrf.mxu1  ;;  %v1032_v37 = vadd.f32 %v5325_v39, %v849_v46  ;;  %v8224_v59 = vld [vmem:[#allocation8_spill] sm:$0xff] }
 0x11d   :  { %v1025_v49 = vpop.f32.mrf.mxu0  ;;  %v6457_v15 = vadd.f32 %v6402_v44, %v1014_v32 }
 0x11e   :  { %v5353_v52 = vpop.f32.mrf.mxu1  ;;  %v1026_v63 = vadd.f32 %v1025_v49, %v841_v25 }
 0x11f   :  { %v5328_v54 = vpop.f32.mrf.mxu0  ;;  %v6418_v46 = vadd.f32 %v5353_v52, %v1032_v37  ;;  %v8221_v37 = vld [vmem:[#allocation9_spill] sm:$0xff]  ;;  %vm1250_vm14 = vcmp.gt.f32.partialorder %v6457_v15, 0.0 }
 0x120   :  { %v1188_v0 = vpop.f32.mrf.mxu1 }
 0x121   :  { %v1037_v2 = vpop.f32.mrf.mxu0  ;;  %v1269_v56 = vmin.f32 %v6418_v46, 0.0  ;;  %vm1253_vm5 = vcmp.gt.f32.partialorder %v6418_v46, 0.0 }
 0x122   :  { %v5356_v16 = vpop.f32.mrf.mxu1 }
 0x123   :  { %v5331_v4 = vpop.f32.mrf.mxu0 }
 0x124   :  { %v1056_v36 = vadd.f32 %v5331_v4, %v881_v14  ;;  %v1200_v33 = vpop.f32.mrf.mxu1  ;;  %v1044_v4 = vadd.f32 %v5328_v54, %v865_v21  ;;  %v6434_v54 = vadd.f32 %v1188_v0, %v1026_v63  ;;  %v1002_v0 = vadd.f32 %v6392_v47, %v6372_v9  ;;  %v8220_v47 = vld [vmem:[#allocation6_spill] sm:$0xff] }
 0x125   :  { %v1049_v45 = vpop.f32.mrf.mxu0 }
 0x126   :  { %v1050_v35 = vadd.f32 %v1049_v45, %v873_v11  ;;  %v5359_v18 = vpop.f32.mrf.mxu1  ;;  %v1038_v11 = vadd.f32 %v1037_v2, %v857_v26  ;;  %v6423_v34 = vadd.f32 %v5356_v16, %v1044_v4  ;;  %v996_v2 = vadd.f32 %v6380_v22, %v6366_v42  ;;  %v8222_v26 = vld [vmem:[#allocation10_spill] sm:$0xff] }
 0x127   :  { %v5334_v38 = vpop.f32.mrf.mxu0  ;;  %v6416_v29 = vadd.f32 %v5359_v18, %v1056_v36  ;;  %v1292_v36 = vmul.f32 1.442695, %v1269_v56  ;;  %v6465_v18 = vadd.f32 %v8221_v37, %v1008_v10  ;;  %v6470_v4 = vadd.f32 %v8222_v26, %v1002_v0  ;;  %v29_v10 = vld [vmem:[%s8138_s1 + $0x88] sm:$0xff] }
 0x128   :  { %v1212_v5 = vpop.f32.mrf.mxu1  ;;  %v1068_v31 = vadd.f32 %v5334_v38, %v897_v53  ;;  %v6432_v49 = vadd.f32 %v1200_v33, %v1038_v11  ;;  %v1268_v33 = vmin.f32 %v6434_v54, 0.0  ;;  %vm1252_vm7 = vcmp.gt.f32.partialorder %v6434_v54, 0.0 }
 0x129   :  { %v1061_v57 = vpop.f32.mrf.mxu0  ;;  %v6420_v55 = vadd.f32 %v1212_v5, %v1050_v35  ;;  %v1273_v61 = vmin.f32 %v6416_v29, 0.0  ;;  %v1020_v35 = vadd.f32 %v5322_v8, %v6374_v19  ;;  %v1271_v19 = vmin.f32 %v6423_v34, 0.0  ;;  %v8223_v5 = vld [vmem:[#allocation7_spill] sm:$0xff] }
 0x12a   :  { %v5362_v1 = vpop.f32.mrf.mxu1  ;;  %v1062_v40 = vadd.f32 %v1061_v57, %v889_v48  ;;  %v1270_v42 = vmin.f32 %v6432_v49, 0.0  ;;  %v1290_v44 = vmul.f32 1.442695, %v1268_v33  ;;  %v6474_v25 = vadd.f32 %v8223_v5, %v996_v2 }
 0x12b   :  { %v5337_v12 = vpop.f32.mrf.mxu0  ;;  %v1272_v3 = vmin.f32 %v6420_v55, 0.0  ;;  %v6427_v6 = vadd.f32 %v5362_v1, %v1068_v31  ;;  %v1300_v60 = vmul.f32 1.442695, %v1273_v61  ;;  %v6449_v23 = vadd.f32 %v6400_v17, %v1020_v35 }
 0x12c   :  { %v1224_v39 = vpop.f32.mrf.mxu1  ;;  %v1080_v20 = vadd.f32 %v5337_v12, %v913_v28  ;;  %v1296_v9 = vmul.f32 1.442695, %v1271_v19  ;;  %v990_v17 = vadd.f32 %v8220_v47, %v6368_v51  ;;  %v1294_v53 = vmul.f32 1.442695, %v1270_v42 }
 0x12d   :  { %v1073_v50 = vpop.f32.mrf.mxu0  ;;  %v1275_v62 = vmin.f32 %v6427_v6, 0.0  ;;  %v6442_v8 = vadd.f32 %v1224_v39, %v1062_v40  ;;  %v1298_v14 = vmul.f32 1.442695, %v1272_v3  ;;  %5915 = vpow2.f32 %v1300_v60 }
 0x12e   :  { %v5365_v52 = vpop.f32.mrf.mxu1  ;;  %v1074_v16 = vadd.f32 %v1073_v50, %v905_v7  ;;  %v1267_v27 = vmin.f32 %v6449_v23, 0.0  ;;  %v1266_v51 = vmin.f32 %v6457_v15, 0.0  ;;  %v6477_v48 = vadd.f32 %v8224_v59, %v990_v17  ;;  %v6486_v50 = vld [vmem:[%s8138_s1 + $0x80] sm:$0xff] }
 0x12f   :  { %v1304_v22 = vmul.f32 1.442695, %v1275_v62  ;;  %v1274_v24 = vmin.f32 %v6442_v8, 0.0  ;;  %v6454_v58 = vadd.f32 %v5365_v52, %v1080_v20  ;;  %v1265_v31 = vmin.f32 %v6465_v18, 0.0 }
 0x130   :  { %v1236_v13 = vpop.f32.mrf.mxu1  ;;  %v1288_v57 = vmul.f32 1.442695, %v1267_v27  ;;  %v1264_v11 = vmin.f32 %v6470_v4, 0.0  ;;  %v1286_v1 = vmul.f32 1.442695, %v1266_v51  ;;  %v1263_v63 = vmin.f32 %v6474_v25, 0.0 }
 0x131   :  { %5917 = vpow2.f32 %v1304_v22  ;;  %v1302_v41 = vmul.f32 1.442695, %v1274_v24  ;;  %v1277_v45 = vmin.f32 %v6454_v58, 0.0  ;;  %v6462_v21 = vadd.f32 %v1236_v13, %v1074_v16 }
 0x132   :  { %5919 = vpow2.f32 %v1298_v14  ;;  %v1262_v61 = vmin.f32 %v6477_v48, 0.0  ;;  %v1284_v12 = vmul.f32 1.442695, %v1265_v31  ;;  %v1282_v39 = vmul.f32 1.442695, %v1264_v11 }
 0x133   :  { %5921 = vpow2.f32 %v1302_v41  ;;  %v1308_v38 = vmul.f32 1.442695, %v1277_v45  ;;  %v1276_v30 = vmin.f32 %v6462_v21, 0.0  ;;  %v1280_v3 = vmul.f32 1.442695, %v1263_v63 }
 0x134   :  { %5923 = vpow2.f32 %v1292_v36  ;;  %v1278_v35 = vmul.f32 1.442695, %v1262_v61  ;;  %vm1259_vm3 = vcmp.gt.f32.partialorder %v6427_v6, 0.0  ;;  %vm1258_vm4 = vcmp.gt.f32.partialorder %v6442_v8, 0.0 }
 0x135   :  { %5925 = vpow2.f32 %v1296_v9  ;;  %v1306_v43 = vmul.f32 1.442695, %v1276_v30  ;;  %v6492_v19 = vand.u32 4294901760, %v6486_v50  ;;  %vm1257_vm6 = vcmp.gt.f32.partialorder %v6416_v29, 0.0 }
 0x136   :  { %5927 = vpow2.f32 %v1308_v38  ;;  %v5979_v24 = vmov 0   ;;  %vm1261_vm8 = vcmp.gt.f32.partialorder %v6454_v58, 0.0  ;;  %vm1251_vm9 = vcmp.gt.f32.partialorder %v6449_v23, 0.0 }
 0x137   :  { %5929 = vpow2.f32 %v1294_v53  ;;  %5914 = vset.pattern.permute.xlu0 %v5979_v24  ;;  %vm1256_vm10 = vcmp.gt.f32.partialorder %v6420_v55, 0.0  ;;  %vm1255_vm11 = vcmp.gt.f32.partialorder %v6423_v34, 0.0  ;;  %vm1260_vm12 = vcmp.gt.f32.partialorder %v6462_v21, 0.0 }
 0x138   :  { %5931 = vpow2.f32 %v1290_v44  ;;  %1344 = vperm.xlu0 %5914, %v29_v10   ;;  %vm1254_vm13 = vcmp.gt.f32.partialorder %v6432_v49, 0.0  ;;  %v8225_v31 = vmov 0.0   ;;  %vm1249_vm15 = vcmp.gt.f32.partialorder %v6465_v18, 0.0 }
 0x139   :  { %5933 = vpow2.f32 %v1306_v43  ;;  %vm1248_vm0 = vcmp.gt.f32.partialorder %v6470_v4, 0.0  ;;  %vm1247_vm1 = vcmp.gt.f32.partialorder %v6474_v25, 0.0 }
 0x13a   :  { %5935 = vpow2.f32 %v1288_v57  ;;  %v5916_v40 = vpop.eup %5915 }
 0x13b   :  { %5937 = vpow2.f32 %v1286_v1  ;;  %v4612_v62 = vadd.f32 -1.0, %v5916_v40 }
 0x13c   :  { %5939 = vpow2.f32 %v1284_v12 }
 0x13d   :  { %5941 = vpow2.f32 %v1282_v39  ;;  %v1337_v33 = vsel %vm1257_vm6, %v6416_v29, %v4612_v62  ;;  %vm2009_vm6 = vcmask 516352  }
 0x13e   :  { %v5918_v28 = vpop.eup %5917  ;;  %5943 = vpow2.f32 %v1280_v3  ;;  %v6514_v53 = vand.u32 4294901760, %v1337_v33 }
 0x13f   :  { %v5920_v7 = vpop.eup %5919  ;;  %v4614_v56 = vadd.f32 -1.0, %v5918_v28  ;;  %5945 = vpow2.f32 %v1278_v35 }
 0x140   :  { %v5922_v52 = vpop.eup %5921  ;;  %v4611_v14 = vadd.f32 -1.0, %v5920_v7  ;;  %v6543_v63 = vsub.f32 %v1337_v33, %v6514_v53 }
 0x141   :  { %v5924_v60 = vpop.eup %5923  ;;  %v1339_v20 = vsel %vm1259_vm3, %v6427_v6, %v4614_v56  ;;  %v4613_v2 = vadd.f32 -1.0, %v5922_v52  ;;  %vm1246_vm3 = vcmp.gt.f32.partialorder %v6477_v48, 0.0 }
 0x142   :  { %v5926_v32 = vpop.eup %5925  ;;  %v6500_v6 = vand.u32 4294901760, %v1339_v20  ;;  %v4608_v9 = vadd.f32 -1.0, %v5924_v60  ;;  %v1336_v45 = vsel %vm1256_vm10, %v6420_v55, %v4611_v14 }
 0x143   :  { %v5928_v0 = vpop.eup %5927  ;;  %v1338_v16 = vsel %vm1258_vm4, %v6442_v8, %v4613_v2  ;;  %v4610_v36 = vadd.f32 -1.0, %v5926_v32  ;;  %v6527_v51 = vand.u32 4294901760, %v1336_v45 }
 0x144   :  { %v5930_v42 = vpop.eup %5929  ;;  %v4616_v22 = vadd.f32 -1.0, %v5928_v0  ;;  %v6507_v41 = vand.u32 4294901760, %v1338_v16  ;;  %v6517_v44 = vsub.f32 %v1339_v20, %v6500_v6  ;;  %v1333_v57 = vsel %vm1253_vm5, %v6418_v46, %v4608_v9 }
 0x145   :  { %v5932_v13 = vpop.eup %5931  ;;  %v4609_v17 = vadd.f32 -1.0, %v5930_v42  ;;  %v1335_v30 = vsel %vm1255_vm11, %v6423_v34, %v4610_v36  ;;  %v6561_v3 = vsub.f32 %v1336_v45, %v6527_v51  ;;  %v6569_v60 = vand.u32 4294901760, %v1333_v57 }
 0x146   :  { %v5934_v8 = vpop.eup %5933  ;;  %v1341_v47 = vsel %vm1261_vm8, %v6454_v58, %v4616_v22  ;;  %v4607_v38 = vadd.f32 -1.0, %v5932_v13  ;;  %v6530_v5 = vsub.f32 %v1338_v16, %v6507_v41  ;;  %v6540_v1 = vand.u32 4294901760, %v1335_v30 }
 0x147   :  { %v6511_v37 = vand.u32 4294901760, %v1341_v47  ;;  %v4615_v27 = vadd.f32 -1.0, %v5934_v8  ;;  %v5936_v29 = vpop.eup %5935  ;;  %v1455_v12 = vand.u32 4294901760, %v6517_v44  ;;  %v1476_v13 = vand.u32 4294901760, %v6561_v3 }
 0x148   :  { %v5938_v26 = vpop.eup %5937  ;;  %v4606_v34 = vadd.f32 -1.0, %v5936_v29  ;;  %v1462_v35 = vand.u32 4294901760, %v6530_v5  ;;  %v6573_v2 = vsub.f32 %v1335_v30, %v6540_v1  ;;  %v6605_v8 = vsub.f32 %v1333_v57, %v6569_v60 }
 0x149   :  { %v6522_v58 = vsub.f32 %v1341_v47, %v6511_v37  ;;  %v1340_v55 = vsel %vm1260_vm12, %v6462_v21, %v4615_v27  ;;  %5367 = vmatpush3.msra.mxu0 %v6511_v37  ;;  %v1334_v21 = vsel %vm1254_vm13, %v6432_v49, %v4609_v17  ;;  %v5940_v11 = vpop.eup %5939  ;;  %v4605_v46 = vadd.f32 -1.0, %v5938_v26 }
 0x14a   :  { %v6532_v59 = vand.u32 4294901760, %v1340_v55  ;;  %5368 = vmatprep.subr.mxu0 %v8225_v31  ;;  %v1332_v49 = vsel %vm1252_vm7, %v6434_v54, %v4607_v38  ;;  %v5942_v39 = vpop.eup %5941  ;;  %v6558_v28 = vand.u32 4294901760, %v1334_v21  ;;  %v4604_v54 = vadd.f32 -1.0, %v5940_v11 }
 0x14b   :  { %v1441_v43 = vand.u32 4294901760, %v6522_v58  ;;  %v5944_v56 = vpop.eup %5943  ;;  %v1331_v52 = vsel %vm1251_vm9, %v6449_v23, %v4606_v34  ;;  %v1456_v10 = vsub.f32 %v6517_v44, %v1455_v12  ;;  %v1469_v23 = vand.u32 4294901760, %v6543_v63 }
 0x14c   :  { %v6546_v61 = vsub.f32 %v1340_v55, %v6532_v59  ;;  %5369 = vmatpush3.msra.mxu0 %v6532_v59  ;;  %v5946_v20 = vpop.eup %5945  ;;  %v4603_v0 = vadd.f32 -1.0, %v5942_v39  ;;  %v1330_v14 = vsel %vm1250_vm14, %v6457_v15, %v4605_v46  ;;  %v6587_v16 = vand.u32 4294901760, %v1332_v49 }
 0x14d   :  { %5370 = vmatprep.subr.mxu0 %v8225_v31  ;;  %v1442_v40 = vsub.f32 %v6522_v58, %v1441_v43  ;;  %v6591_v42 = vsub.f32 %v1334_v21, %v6558_v28  ;;  %v1463_v24 = vsub.f32 %v6530_v5, %v1462_v35  ;;  %v4602_v15 = vadd.f32 -1.0, %v5944_v56 }
 0x14e   :  { %5371 = vmatpush3.msra.mxu0 %v6500_v6  ;;  %v1448_v7 = vand.u32 4294901760, %v6546_v61  ;;  %v1329_v36 = vsel %vm1249_vm15, %v6465_v18, %v4604_v54  ;;  %v6601_v33 = vand.u32 4294901760, %v1331_v52  ;;  %v1457_v9 = vand.u32 4294901760, %v1456_v10 }
 0x14f   :  { %5372 = vmatprep.subr.mxu0 %v8225_v31  ;;  %v1443_v62 = vand.u32 4294901760, %v1442_v40  ;;  %v1470_v47 = vsub.f32 %v6543_v63, %v1469_v23  ;;  %v1483_v17 = vand.u32 4294901760, %v6573_v2  ;;  %v4601_v18 = vadd.f32 -1.0, %v5946_v20 }
 0x150   :  { %5373 = vmatpush3.msra.mxu0 %v6507_v41  ;;  %v1449_v32 = vsub.f32 %v6546_v61, %v1448_v7  ;;  %v1328_v45 = vsel %vm1248_vm0, %v6470_v4, %v4603_v0  ;;  %v6614_v27 = vand.u32 4294901760, %v1330_v14  ;;  %v6619_v29 = vsub.f32 %v1332_v49, %v6587_v16 }
 0x151   :  { %5374 = vmatprep.subr.mxu0 %v8225_v31  ;;  %5402 = vmatpush3.msra.mxu1 %v1443_v62  ;;  %v1464_v38 = vand.u32 4294901760, %v1463_v24  ;;  %v1477_v30 = vsub.f32 %v6561_v3, %v1476_v13  ;;  %v1490_v55 = vand.u32 4294901760, %v6591_v42  ;;  %v1327_v4 = vsel %vm1247_vm1, %v6474_v25, %v4602_v15 }
 0x152   :  { %5375 = vmatpush3.msra.mxu0 %v6514_v53  ;;  %5403 = vmatprep.subr.mxu1 %v8225_v31  ;;  %v1450_v22 = vand.u32 4294901760, %v1449_v32  ;;  %v6628_v26 = vand.u32 4294901760, %v1329_v36  ;;  %v6633_v34 = vsub.f32 %v1331_v52, %v6601_v33  ;;  %v1471_v57 = vand.u32 4294901760, %v1470_v47 }
 0x153   :  { %5376 = vmatprep.subr.mxu0 %v8225_v31  ;;  %v1484_v21 = vsub.f32 %v6573_v2, %v1483_v17  ;;  %v1497_v25 = vand.u32 4294901760, %v6605_v8  ;;  %v1326_v11 = vsel %vm1246_vm3, %v6477_v48, %v4601_v18  ;;  %v6641_v46 = vand.u32 4294901760, %v1328_v45 }
 0x154   :  { %5377 = vmatpush3.msra.mxu0 %v6527_v51  ;;  %5404 = vmatpush3.msra.mxu1 %v1450_v22  ;;  %v6647_v49 = vsub.f32 %v6486_v50, %v6492_v19  ;;  %v6650_v40 = vsub.f32 %v1330_v14, %v6614_v27  ;;  %v1478_v39 = vand.u32 4294901760, %v1477_v30  ;;  %v1491_v48 = vsub.f32 %v6591_v42, %v1490_v55 }
 0x155   :  { %5378 = vmatprep.subr.mxu0 %v8225_v31  ;;  %5405 = vmatprep.subr.mxu1 %v8225_v31  ;;  %v1504_v56 = vand.u32 4294901760, %v6619_v29  ;;  %v6657_v54 = vand.u32 4294901760, %v1327_v4  ;;  %v6662_v50 = vsub.f32 %v1329_v36, %v6628_v26  ;;  %v1485_v52 = vand.u32 4294901760, %v1484_v21 }
 0x156   :  { %5379 = vmatpush3.msra.mxu0 %v6540_v1  ;;  %5406 = vmatpush3.msra.mxu1 %v1457_v9  ;;  %v1498_v62 = vsub.f32 %v6605_v8, %v1497_v25  ;;  %v1511_v20 = vand.u32 4294901760, %v6633_v34  ;;  %v6669_v32 = vand.u32 4294901760, %v1326_v11  ;;  %v1430_v10 = vand.u32 4294901760, %v6647_v49 }
 0x157   :  { %5380 = vmatprep.subr.mxu0 %v8225_v31  ;;  %5407 = vmatprep.subr.mxu1 %v8225_v31  ;;  %v6675_v0 = vsub.f32 %v1328_v45, %v6641_v46  ;;  %v1492_v14 = vand.u32 4294901760, %v1491_v48  ;;  %v1505_v22 = vsub.f32 %v6619_v29, %v1504_v56  ;;  %v1518_v24 = vand.u32 4294901760, %v6650_v40 }
 0x158   :  { %5381 = vmatpush3.msra.mxu0 %v6558_v28  ;;  %5408 = vmatpush3.msra.mxu1 %v1464_v38  ;;  %v6685_v15 = vsub.f32 %v1327_v4, %v6657_v54  ;;  %v1499_v36 = vand.u32 4294901760, %v1498_v62  ;;  %v1512_v9 = vsub.f32 %v6633_v34, %v1511_v20  ;;  %v1525_v47 = vand.u32 4294901760, %v6662_v50 }
 0x159   :  { %5382 = vmatprep.subr.mxu0 %v8225_v31  ;;  %5409 = vmatprep.subr.mxu1 %v8225_v31  ;;  %v1431_v18 = vsub.f32 %v6647_v49, %v1430_v10  ;;  %v6698_v45 = vsub.f32 %v1326_v11, %v6669_v32  ;;  %v1506_v38 = vand.u32 4294901760, %v1505_v22  ;;  %v1519_v30 = vsub.f32 %v6650_v40, %v1518_v24 }
 0x15a   :  { %5383 = vmatpush3.msra.mxu0 %v6569_v60  ;;  %5410 = vmatpush3.msra.mxu1 %v1471_v57  ;;  %v1532_v4 = vand.u32 4294901760, %v6675_v0  ;;  %v1513_v57 = vand.u32 4294901760, %v1512_v9  ;;  %v1526_v21 = vsub.f32 %v6662_v50, %v1525_v47  ;;  %v1539_v11 = vand.u32 4294901760, %v6685_v15 }
 0x15b   :  { %5384 = vmatprep.subr.mxu0 %v8225_v31  ;;  %5411 = vmatprep.subr.mxu1 %v8225_v31  ;;  %v1432_v48 = vand.u32 4294901760, %v1431_v18  ;;  %v1546_v62 = vand.u32 4294901760, %v6698_v45  ;;  %vm1994_vm5 = vcmask 253952   ;;  %vm2015_vm7 = vcmask 778752  }
 0x15c   :  { %5385 = vmatpush3.msra.mxu0 %v6587_v16  ;;  %5412 = vmatpush3.msra.mxu1 %v1478_v39  ;;  %v1520_v39 = vand.u32 4294901760, %v1519_v30  ;;  %v1540_v22 = vsub.f32 %v6685_v15, %v1539_v11  ;;  %vm2022_vm8 = vcmask 1041152   ;;  %vm2967_vm9 = vcmask 982016  }
 0x15d   :  { %5386 = vmatprep.subr.mxu0 %v8225_v31  ;;  %5413 = vmatprep.subr.mxu1 %v8225_v31  ;;  %v1547_v9 = vsub.f32 %v6698_v45, %v1546_v62  ;;  %vm3599_vm11 = vcmask 254976   ;;  %vm3606_vm12 = vcmask 261120  }
 0x15e   :  { %5387 = vmatpush3.msra.mxu0 %v6601_v33  ;;  %5414 = vmatpush3.msra.mxu1 %v1485_v52  ;;  %v1533_v52 = vsub.f32 %v6675_v0, %v1532_v4  ;;  %v1541_v18 = vand.u32 4294901760, %v1540_v22 }
 0x15f   :  { %5388 = vmatprep.subr.mxu0 %v8225_v31  ;;  %5415 = vmatprep.subr.mxu1 %v8225_v31 }
 0x160   :  { %5389 = vmatpush3.msra.mxu0 %v6614_v27  ;;  %5416 = vmatpush3.msra.mxu1 %v1492_v14  ;;  %v1527_v14 = vand.u32 4294901760, %v1526_v21 }
 0x161   :  { %5390 = vmatprep.subr.mxu0 %v8225_v31  ;;  %5417 = vmatprep.subr.mxu1 %v8225_v31 }
 0x162   :  { %5391 = vmatpush3.msra.mxu0 %v6628_v26  ;;  %5418 = vmatpush3.msra.mxu1 %v1499_v36  ;;  %v1534_v36 = vand.u32 4294901760, %v1533_v52 }
 0x163   :  { %5392 = vmatprep.subr.mxu0 %v8225_v31  ;;  %5419 = vmatprep.subr.mxu1 %v8225_v31 }
 0x164   :  { %5393 = vmatpush3.msra.mxu0 %v6641_v46  ;;  %5420 = vmatpush3.msra.mxu1 %v1506_v38  ;;  %v1548_v38 = vand.u32 4294901760, %v1547_v9 }
 0x165   :  { %5394 = vmatprep.subr.mxu0 %v8225_v31  ;;  %5421 = vmatprep.subr.mxu1 %v8225_v31 }
 0x166   :  { %5395 = vmatpush3.msra.mxu0 %v6657_v54  ;;  %5422 = vmatpush3.msra.mxu1 %v1513_v57 }
 0x167   :  { %5396 = vmatprep.subr.mxu0 %v8225_v31  ;;  %5423 = vmatprep.subr.mxu1 %v8225_v31 }
 0x168   :  { %5397 = vmatpush3.msra.mxu0 %v6669_v32  ;;  %5424 = vmatpush3.msra.mxu1 %v1520_v39 }
 0x169   :  { %5425 = vmatprep.subr.mxu1 %v8225_v31  ;;  %5436 = vmatprep.subr.mxu0 %v8225_v31 }
 0x16a   :  { %5399 = vmatmul.mubr.f32.vlgmr.msra.gmra.mxu0 %v1432_v48  ;;  %5426 = vmatpush3.msra.mxu1 %v1527_v14 }
 0x16b   :  { %5437 = vmatpush3.msra.mxu0 %v6522_v58  ;;  %5427 = vmatprep.subr.mxu1 %v8225_v31 }
 0x16c   :  { %5438 = vmatprep.subr.mxu0 %v8225_v31  ;;  %5428 = vmatpush3.msra.mxu1 %v1534_v36 }
 0x16d   :  { %5439 = vmatpush3.msra.mxu0 %v6546_v61  ;;  %5429 = vmatprep.subr.mxu1 %v8225_v31 }
 0x16e   :  { %5440 = vmatprep.subr.mxu0 %v8225_v31  ;;  %5430 = vmatpush3.msra.mxu1 %v1541_v18 }
 0x16f   :  { %5441 = vmatpush3.msra.mxu0 %v6517_v44  ;;  %5431 = vmatprep.subr.mxu1 %v8225_v31 }
 0x170   :  { %5442 = vmatprep.subr.mxu0 %v8225_v31  ;;  %5432 = vmatpush3.msra.mxu1 %v1548_v38  ;;  %v42_v38 = vld [vmem:[%s8138_s1 + $0xf0] sm:$0xff] }
 0x171   :  { %5443 = vmatpush3.msra.mxu0 %v6530_v5  ;;  %5434 = vmatmul.mubr.f32.vlgmr.msra.gmra.mxu1 %v6492_v19 }
 0x172   :  { %5444 = vmatprep.subr.mxu0 %v8225_v31  ;;  %5471 = vmatprep.subr.mxu1 %v8225_v31 }
 0x173   :  { %5445 = vmatpush3.msra.mxu0 %v6543_v63  ;;  %5472 = vmatpush3.msra.mxu1 %v6511_v37 }
 0x174   :  { %5446 = vmatprep.subr.mxu0 %v8225_v31  ;;  %5473 = vmatprep.subr.mxu1 %v8225_v31 }
 0x175   :  { %5447 = vmatpush3.msra.mxu0 %v6561_v3  ;;  %5474 = vmatpush3.msra.mxu1 %v6532_v59 }
 0x176   :  { %5448 = vmatprep.subr.mxu0 %v8225_v31  ;;  %5475 = vmatprep.subr.mxu1 %v8225_v31 }
 0x177   :  { %5449 = vmatpush3.msra.mxu0 %v6573_v2  ;;  %5476 = vmatpush3.msra.mxu1 %v6500_v6 }
 0x178   :  { %5450 = vmatprep.subr.mxu0 %v8225_v31  ;;  %5477 = vmatprep.subr.mxu1 %v8225_v31 }
 0x179   :  { %5451 = vmatpush3.msra.mxu0 %v6591_v42  ;;  %5478 = vmatpush3.msra.mxu1 %v6507_v41  ;;  %v2000_v42 = vlaneseq }
 0x17a   :  { %5452 = vmatprep.subr.mxu0 %v8225_v31  ;;  %5479 = vmatprep.subr.mxu1 %v8225_v31 }
 0x17b   :  { %5453 = vmatpush3.msra.mxu0 %v6605_v8  ;;  %5480 = vmatpush3.msra.mxu1 %v6514_v53  ;;  %v61_v8 = vld [vmem:[%s8138_s1 + $0x188] sm:$0xff] }
 0x17c   :  { %5454 = vmatprep.subr.mxu0 %v8225_v31  ;;  %5481 = vmatprep.subr.mxu1 %v8225_v31 }
 0x17d   :  { %5455 = vmatpush3.msra.mxu0 %v6619_v29  ;;  %5482 = vmatpush3.msra.mxu1 %v6527_v51  ;;  %v60_v29 = vld [vmem:[%s8138_s1 + $0x180] sm:$0xff] }
 0x17e   :  { %5456 = vmatprep.subr.mxu0 %v8225_v31  ;;  %5483 = vmatprep.subr.mxu1 %v8225_v31 }
 0x17f   :  { %5457 = vmatpush3.msra.mxu0 %v6633_v34  ;;  %5484 = vmatpush3.msra.mxu1 %v6540_v1  ;;  %v6906_v34 = vand.u32 4294901760, %v60_v29 }
 0x180   :  { %5458 = vmatprep.subr.mxu0 %v8225_v31  ;;  %5485 = vmatprep.subr.mxu1 %v8225_v31 }
 0x181   :  { %5459 = vmatpush3.msra.mxu0 %v6650_v40  ;;  %5486 = vmatpush3.msra.mxu1 %v6558_v28  ;;  %v59_v40 = vld [vmem:[%s8138_s1 + $0x178] sm:$0xff] }
 0x182   :  { %5460 = vmatprep.subr.mxu0 %v8225_v31  ;;  %5487 = vmatprep.subr.mxu1 %v8225_v31 }
 0x183   :  { %5461 = vmatpush3.msra.mxu0 %v6662_v50  ;;  %5488 = vmatpush3.msra.mxu1 %v6569_v60  ;;  %v6924_v50 = vsub.f32 %v60_v29, %v6906_v34 }
 0x184   :  { %5462 = vmatprep.subr.mxu0 %v8225_v31  ;;  %5489 = vmatprep.subr.mxu1 %v8225_v31 }
 0x185   :  { %5463 = vmatpush3.msra.mxu0 %v6675_v0  ;;  %5490 = vmatpush3.msra.mxu1 %v6587_v16 }
 0x186   :  { %5464 = vmatprep.subr.mxu0 %v8225_v31  ;;  %5491 = vmatprep.subr.mxu1 %v8225_v31 }
 0x187   :  { %5465 = vmatpush3.msra.mxu0 %v6685_v15  ;;  %5492 = vmatpush3.msra.mxu1 %v6601_v33 }
 0x188   :  { %5466 = vmatprep.subr.mxu0 %v8225_v31  ;;  %5493 = vmatprep.subr.mxu1 %v8225_v31 }
 0x189   :  { %5467 = vmatpush3.msra.mxu0 %v6698_v45  ;;  %5468 = vmatprep.mubr.msk.f32.mxu0 %vm5978_vm2, %v8225_v31  ;;  %v8156_v45 = vand.u32 4294901760, %v6924_v50 }
 0x18a   :  { %5494 = vmatpush3.msra.mxu1 %v6614_v27  ;;  %5469 = vmatmul.mubr.f32.vlgmr.msra.gmra.mxu0 %v6647_v49 }
 0x18b   :  { %5495 = vmatprep.subr.mxu1 %v8225_v31  ;;  %5506 = vmatprep.subr.mxu0 %v8225_v31 }
 0x18c   :  { %5496 = vmatpush3.msra.mxu1 %v6628_v26  ;;  %5507 = vmatpush3.msra.mxu0 %v1441_v43 }
 0x18d   :  { %5497 = vmatprep.subr.mxu1 %v8225_v31  ;;  %5508 = vmatprep.subr.mxu0 %v8225_v31 }
 0x18e   :  { %5498 = vmatpush3.msra.mxu1 %v6641_v46  ;;  %5509 = vmatpush3.msra.mxu0 %v1448_v7 }
 0x18f   :  { %5499 = vmatprep.subr.mxu1 %v8225_v31  ;;  %5510 = vmatprep.subr.mxu0 %v8225_v31 }
 0x190   :  { %5500 = vmatpush3.msra.mxu1 %v6657_v54  ;;  %5511 = vmatpush3.msra.mxu0 %v1455_v12 }
 0x191   :  { %5501 = vmatprep.subr.mxu1 %v8225_v31  ;;  %5512 = vmatprep.subr.mxu0 %v8225_v31 }
 0x192   :  { %5502 = vmatpush3.msra.mxu1 %v6669_v32  ;;  %5503 = vmatprep.mubr.msk.f32.mxu1 %vm5978_vm2, %v8225_v31 }
 0x193   :  { %5513 = vmatpush3.msra.mxu0 %v1462_v35  ;;  %5504 = vmatmul.mubr.f32.vlgmr.msra.gmra.mxu1 %v1430_v10 }
 0x194   :  { %5514 = vmatprep.subr.mxu0 %v8225_v31  ;;  %5541 = vmatprep.subr.mxu1 %v8225_v31 }
 0x195   :  { %5515 = vmatpush3.msra.mxu0 %v1469_v23  ;;  %5542 = vmatpush3.msra.mxu1 %v6511_v37  ;;  %v5980_v23 = vmov 1983009808  }
 0x196   :  { %5516 = vmatprep.subr.mxu0 %v8225_v31  ;;  %5543 = vmatprep.subr.mxu1 %v8225_v31 }
 0x197   :  { %5517 = vmatpush3.msra.mxu0 %v1476_v13  ;;  %5544 = vmatpush3.msra.mxu1 %v6532_v59 }
 0x198   :  { %5518 = vmatprep.subr.mxu0 %v8225_v31  ;;  %5545 = vmatprep.subr.mxu1 %v8225_v31 }
 0x199   :  { %5519 = vmatpush3.msra.mxu0 %v1483_v17  ;;  %5546 = vmatpush3.msra.mxu1 %v6500_v6  ;;  %v6893_v17 = vand.u32 4294901760, %v61_v8 }
 0x19a   :  { %5520 = vmatprep.subr.mxu0 %v8225_v31  ;;  %5547 = vmatprep.subr.mxu1 %v8225_v31 }
 0x19b   :  { %5521 = vmatpush3.msra.mxu0 %v1490_v55  ;;  %5548 = vmatpush3.msra.mxu1 %v6507_v41  ;;  %v44_v55 = vld [vmem:[%s8138_s1 + $0x100] sm:$0xff]  ;;  %v6911_v49 = vsub.f32 %v61_v8, %v6893_v17 }
 0x19c   :  { %5522 = vmatprep.subr.mxu0 %v8225_v31  ;;  %5549 = vmatprep.subr.mxu1 %v8225_v31 }
 0x19d   :  { %5523 = vmatpush3.msra.mxu0 %v1497_v25  ;;  %5550 = vmatpush3.msra.mxu1 %v6514_v53  ;;  %v6908_v25 = vand.u32 4294901760, %v44_v55  ;;  %v8160_v0 = vand.u32 4294901760, %v6911_v49 }
 0x19e   :  { %5524 = vmatprep.subr.mxu0 %v8225_v31  ;;  %5551 = vmatprep.subr.mxu1 %v8225_v31 }
 0x19f   :  { %5525 = vmatpush3.msra.mxu0 %v1504_v56  ;;  %5552 = vmatpush3.msra.mxu1 %v6527_v51  ;;  %v43_v56 = vld [vmem:[%s8138_s1 + $0xf8] sm:$0xff]  ;;  %v2323_v57 = vsub.f32 %v6911_v49, %v8160_v0  ;;  %v33_v0 = vld [vmem:[%s8138_s1 + $0xa8] sm:$0xff] }
 0x1a0   :  { %5526 = vmatprep.subr.mxu0 %v8225_v31  ;;  %5553 = vmatprep.subr.mxu1 %v8225_v31 }
 0x1a1   :  { %5527 = vmatpush3.msra.mxu0 %v1511_v20  ;;  %5554 = vmatpush3.msra.mxu1 %v6540_v1  ;;  %v6927_v20 = vsub.f32 %v44_v55, %v6908_v25  ;;  %v2324_v9 = vand.u32 4294901760, %v2323_v57 }
 0x1a2   :  { %5528 = vmatprep.subr.mxu0 %v8225_v31  ;;  %5555 = vmatprep.subr.mxu1 %v8225_v31 }
 0x1a3   :  { %5529 = vmatpush3.msra.mxu0 %v1518_v24  ;;  %5556 = vmatpush3.msra.mxu1 %v6558_v28  ;;  %v6933_v24 = vand.u32 4294901760, %v43_v56  ;;  %v8155_v30 = vand.u32 4294901760, %v6927_v20 }
 0x1a4   :  { %5530 = vmatprep.subr.mxu0 %v8225_v31  ;;  %5557 = vmatprep.subr.mxu1 %v8225_v31 }
 0x1a5   :  { %5531 = vmatpush3.msra.mxu0 %v1525_v47  ;;  %5558 = vmatpush3.msra.mxu1 %v6569_v60  ;;  %v2218_v14 = vsub.f32 %v6927_v20, %v8155_v30 }
 0x1a6   :  { %5532 = vmatprep.subr.mxu0 %v8225_v31  ;;  %5559 = vmatprep.subr.mxu1 %v8225_v31 }
 0x1a7   :  { %5533 = vmatpush3.msra.mxu0 %v1532_v4  ;;  %5560 = vmatpush3.msra.mxu1 %v6587_v16  ;;  %v1998_v16 = vunpack.c.l.s4 %v5980_v23  ;;  %v58_v4 = vld [vmem:[%s8138_s1 + $0x170] sm:$0xff] }
 0x1a8   :  { %5534 = vmatprep.subr.mxu0 %v8225_v31  ;;  %5561 = vmatprep.subr.mxu1 %v8225_v31  ;;  %v6952_v39 = vand.u32 4294901760, %v58_v4 }
 0x1a9   :  { %5535 = vmatpush3.msra.mxu0 %v1539_v11  ;;  %5562 = vmatpush3.msra.mxu1 %v6601_v33  ;;  %v1999_v13 = vunpack.c.0.s8 %v1998_v16  ;;  %v2001_v33 = vshrl.u32 %v2000_v42, 7  ;;  %v6950_v11 = vsub.f32 %v43_v56, %v6933_v24  ;;  %v40_v16 = vld [vmem:[%s8138_s1 + $0xe0] sm:$0xff]  ;;  %v55_v42 = vld [vmem:[%s8138_s1 + $0x158] sm:$0xff] }
 0x1aa   :  { %5536 = vmatprep.subr.mxu0 %v8225_v31  ;;  %5563 = vmatprep.subr.mxu1 %v8225_v31  ;;  %v39_v56 = vld [vmem:[%s8138_s1 + $0xd8] sm:$0xff]  ;;  %v7039_v57 = vand.u32 4294901760, %v55_v42 }
 0x1ab   :  { %5537 = vmatpush3.msra.mxu0 %v1546_v62  ;;  %5538 = vmatprep.mubr.msk.f32.mxu0 %vm5978_vm2, %v8225_v31  ;;  %v2330_v62 = vsub.f32 %v6924_v50, %v8156_v45 }
 0x1ac   :  { %5564 = vmatpush3.msra.mxu1 %v6614_v27  ;;  %5539 = vmatmul.mubr.f32.vlgmr.msra.gmra.mxu0 %v6492_v19  ;;  %v45_v27 = vld [vmem:[%s8138_s1 + $0x108] sm:$0xff] }
 0x1ad   :  { %5565 = vmatprep.subr.mxu1 %v8225_v31  ;;  %5573 = vmatprep.mubr.msk.f32.mxu1 %vm5978_vm2, %v8225_v31 }
 0x1ae   :  { %5566 = vmatpush3.msra.mxu1 %v6628_v26  ;;  %v6904_v26 = vand.u32 4294901760, %v45_v27  ;;  %4832 = vmatprep.subr.mxu0 %v6893_v17 }
 0x1af   :  { %5567 = vmatprep.subr.mxu1 %v8225_v31 }
 0x1b0   :  { %5568 = vmatpush3.msra.mxu1 %v6641_v46  ;;  %v2002_v46 = vsub.s32 %v1999_v13, %v2001_v33  ;;  %4833 = vmatpush3.msra.mxu0 %v6904_v26 }
 0x1b1   :  { %5569 = vmatprep.subr.mxu1 %v8225_v31  ;;  %4834 = vmatprep.subr.mxu0 %v6906_v34 }
 0x1b2   :  { %5570 = vmatpush3.msra.mxu1 %v6657_v54  ;;  %v6921_v54 = vsub.f32 %v45_v27, %v6904_v26  ;;  %4835 = vmatpush3.msra.mxu0 %v6908_v25 }
 0x1b3   :  { %5571 = vmatprep.subr.mxu1 %v8225_v31  ;;  %v1345_v59 = vpop.permute.xlu0 %1344 }
 0x1b4   :  { %5572 = vmatpush3.msra.mxu1 %v6669_v32  ;;  %v6929_v32 = vand.u32 4294901760, %v59_v40  ;;  %v8157_v47 = vand.u32 4294901760, %v6921_v54 }
 0x1b5   :  { %5574 = vmatmul.mubr.f32.vlgmr.msra.gmra.mxu1 %v6492_v19  ;;  %4867 = vmatprep.subr.mxu1 %v2324_v9  ;;  %v7059_v9 = vsub.f32 %v55_v42, %v7039_v57 }
 0x1b6   :  { %v6947_v21 = vsub.f32 %v59_v40, %v6929_v32  ;;  %4836 = vmatprep.subr.mxu0 %v6929_v32  ;;  %v2211_v52 = vsub.f32 %v6921_v54, %v8157_v47 }
 0x1b7   :  { %4837 = vmatpush3.msra.mxu0 %v6933_v24 }
 0x1b8   :  { %v8153_v18 = vand.u32 4294901760, %v6947_v21  ;;  %4838 = vmatprep.subr.mxu0 %v6952_v39 }
 0x22a   :  { %v1434_v6 = vpop.f32.mrf.mxu0 }
 0x22b   :  { %v1435_v43 = vadd.f32 %v1434_v6, %v1345_v59  ;;  %v57_v6 = vld [vmem:[%s8138_s1 + $0x168] sm:$0xff]  ;;  %v2337_v59 = vsub.f32 %v6947_v21, %v8153_v18 }
 0x22c   :  { %v5400_v41 = vpop.f32.mrf.mxu0 }
 0x22d   :  { %v2212_v41 = vand.u32 4294901760, %v2211_v52 }
 0x22f   :  { %4868 = vmatpush3.msra.mxu1 %v2212_v41  ;;  %v38_v41 = vld [vmem:[%s8138_s1 + $0xd0] sm:$0xff] }
 0x231   :  { %v1585_v37 = vpop.f32.mrf.mxu1 }
 0x232   :  { %v1586_v63 = vadd.f32 %v1585_v37, %v1435_v43  ;;  %v2331_v37 = vand.u32 4294901760, %v2330_v62 }
 0x233   :  { %v5435_v53 = vpop.f32.mrf.mxu1 }
 0x234   :  { %v2219_v53 = vand.u32 4294901760, %v2218_v14  ;;  %4869 = vmatprep.subr.mxu1 %v2331_v37 }
 0x236   :  { %4870 = vmatpush3.msra.mxu1 %v2219_v53 }
 0x24a   :  { %v1689_v44 = vpop.f32.mrf.mxu0 }
 0x24b   :  { %v1690_v12 = vadd.f32 %v1689_v44, %v1586_v63  ;;  %v8150_v44 = vand.u32 4294901760, %v6950_v11  ;;  %v6988_v63 = vand.u32 4294901760, %v42_v38 }
 0x24c   :  { %v5470_v58 = vpop.f32.mrf.mxu0 }
 0x24d   :  { %v2225_v43 = vsub.f32 %v6950_v11, %v8150_v44  ;;  %v7003_v23 = vsub.f32 %v42_v38, %v6988_v63  ;;  %4839 = vmatpush3.msra.mxu0 %v6988_v63  ;;  %v7061_v38 = vand.u32 4294901760, %v39_v56 }
 0x24f   :  { %v8148_v55 = vand.u32 4294901760, %v7003_v23 }
 0x251   :  { %v2232_v52 = vsub.f32 %v7003_v23, %v8148_v55 }
 0x253   :  { %v1778_v51 = vpop.f32.mrf.mxu1  ;;  %v2233_v53 = vand.u32 4294901760, %v2232_v52 }
 0x254   :  { %v1779_v28 = vadd.f32 %v1778_v51, %v1690_v12 }
 0x255   :  { %v5505_v5 = vpop.f32.mrf.mxu1 }
 0x26c   :  { %v1897_v1 = vpop.f32.mrf.mxu0 }
 0x26d   :  { %v1898_v3 = vadd.f32 %v1897_v1, %v1779_v28  ;;  %v6986_v1 = vsub.f32 %v58_v4, %v6952_v39  ;;  %v7037_v4 = vand.u32 4294901760, %v40_v16 }
 0x26e   :  { %v5540_v61 = vpop.f32.mrf.mxu0 }
 0x26f   :  { %v6990_v61 = vand.u32 4294901760, %v57_v6 }
 0x271   :  { %v7018_v27 = vsub.f32 %v57_v6, %v6990_v61  ;;  %4840 = vmatprep.subr.mxu0 %v6990_v61  ;;  %v54_v6 = vld [vmem:[%s8138_s1 + $0x150] sm:$0xff] }
 0x275   :  { %v1984_v7 = vpop.f32.mrf.mxu1 }
 0x276   :  { %v1985_v35 = vadd.f32 %v1984_v7, %v1898_v3  ;;  %v41_v7 = vld [vmem:[%s8138_s1 + $0xe8] sm:$0xff] }
 0x277   :  { %v5575_v60 = vpop.f32.mrf.mxu1 }
 0x278   :  { %v1989_v19 = vmin.f32 %v1985_v35, 0.0  ;;  %vm1988_vm4 = vcmp.gt.f32.partialorder %v1985_v35, 0.0  ;;  %v2338_v60 = vand.u32 4294901760, %v2337_v59  ;;  %v53_v59 = vld [vmem:[%s8138_s1 + $0x148] sm:$0xff] }
 0x27a   :  { %v1990_v2 = vmul.f32 1.442695, %v1989_v19  ;;  %v2226_v19 = vand.u32 4294901760, %v2225_v43  ;;  %4871 = vmatprep.subr.mxu1 %v2338_v60  ;;  %v7094_v60 = vand.u32 4294901760, %v38_v41 }
 0x27c   :  { %5947 = vpow2.f32 %v1990_v2  ;;  %v8149_v2 = vand.u32 4294901760, %v6986_v1  ;;  %4872 = vmatpush3.msra.mxu1 %v2226_v19 }
 0x27e   :  { %v2344_v29 = vsub.f32 %v6986_v1, %v8149_v2 }
 0x289   :  { %v5948_v10 = vpop.eup %5947 }
 0x28a   :  { %v4617_v15 = vadd.f32 -1.0, %v5948_v10 }
 0x28c   :  { %v1993_v48 = vsel %vm1988_vm4, %v1985_v35, %v4617_v15  ;;  %v56_v35 = vld [vmem:[%s8138_s1 + $0x160] sm:$0xff]  ;;  %v8146_v15 = vand.u32 4294901760, %v7018_v27 }
 0x28d   :  { %v2024_v22 = vcombine.high %v1993_v48, %v1993_v48  ;;  %v2003_v36 = vrot.slane %v1993_v48, %v2002_v46  ;;  %1995 = vst.msk [vmem:[#allocation2] sm:$0x1] %vm1994_vm5, %v1993_v48  ;;  %v7027_v40 = vand.u32 4294901760, %v56_v35  ;;  %v2345_v48 = vand.u32 4294901760, %v2344_v29  ;;  %v37_v29 = vld [vmem:[%s8138_s1 + $0xc8] sm:$0xff] }
 0x28f   :  { %2051 = vrot.lane.b32.xlu0 %v2003_v36, %s5981_s9  ;;  %v2031_v58 = vrot.slane %v2024_v22, %v2002_v46  ;;  %v6977_v51 = vcombine.high %v2003_v36, %v2003_v36  ;;  %v2004_v5 = vrot.slane %v2003_v36, 7  ;;  %v7025_v46 = vand.u32 4294901760, %v41_v7  ;;  %4873 = vmatprep.subr.mxu1 %v2345_v48 }
 0x290   :  { %v7048_v14 = vsub.f32 %v56_v35, %v7027_v40  ;;  %v2351_v22 = vsub.f32 %v7018_v27, %v8146_v15  ;;  %v7056_v36 = vsub.f32 %v40_v16, %v7037_v4  ;;  %4874 = vmatpush3.msra.mxu1 %v2233_v53  ;;  %v7118_v53 = vsub.f32 %v38_v41, %v7094_v60 }
 0x291   :  { %2065 = vrot.lane.b32.xlu1 %v2031_v58, %s5981_s9  ;;  %v2040_v12 = vcombine.high %v2031_v58, %v2031_v58  ;;  %v2034_v28 = vrot.slane %v2031_v58, 7  ;;  %v2017_v3 = vrot.slane %v6977_v51, 7  ;;  %2033 = vst.msk [vmem:[#allocation2 + $0x2] sm:$0x1] %vm1994_vm5, %v2031_v58  ;;  %v7015_v33 = vrot.slane %v2004_v5, 2  ;;  %4841 = vmatpush3.msra.mxu0 %v7025_v46 }
 0x292   :  { %v7045_v62 = vsub.f32 %v41_v7, %v7025_v46  ;;  %4842 = vmatprep.subr.mxu0 %v7027_v40  ;;  %v8144_v5 = vand.u32 4294901760, %v7048_v14  ;;  %v2352_v43 = vand.u32 4294901760, %v2351_v22  ;;  %8226 = vst [vmem:[#allocation6_spill] sm:$0xff] %v7118_v53 }
 0x293   :  { %2041 = vrot.lane.b32.xlu0 %v2040_v12, %s5982_s18  ;;  %v7013_v13 = vrot.slane %v2034_v28, 2  ;;  %v2045_v8 = vrot.slane %v2040_v12, 7  ;;  %v7034_v10 = vrot.slane %v2017_v3, 2  ;;  %4843 = vmatpush3.msra.mxu0 %v7037_v4  ;;  %v8142_v28 = vand.u32 4294901760, %v7059_v9 }
 0x294   :  { %v8145_v58 = vand.u32 4294901760, %v7045_v62  ;;  %v7083_v3 = vsub.f32 %v39_v56, %v7061_v38  ;;  %4844 = vmatprep.subr.mxu0 %v7039_v57  ;;  %v2358_v35 = vsub.f32 %v7048_v14, %v8144_v5  ;;  %4875 = vmatprep.subr.mxu1 %v2352_v43  ;;  %v52_v56 = vld [vmem:[%s8138_s1 + $0x140] sm:$0xff]  ;;  %v8152_v5 = vand.u32 4294901760, %v7118_v53 }
 0x295   :  { %2012 = vrot.lane.b32.xlu1 %v6977_v51, %s5982_s18  ;;  %v7070_v37 = vrot.slane %v2045_v8, 2  ;;  %4845 = vmatpush3.msra.mxu0 %v7061_v38  ;;  %v2365_v16 = vsub.f32 %v7059_v9, %v8142_v28  ;;  %v7106_v8 = vand.u32 4294901760, %v53_v59  ;;  %v36_v43 = vld [vmem:[%s8138_s1 + $0xc0] sm:$0xff]  ;;  %v51_v28 = vld [vmem:[%s8138_s1 + $0x138] sm:$0xff]  ;;  %v7140_v15 = vand.u32 4294901760, %v52_v56 }
 0x296   :  { %v2239_v7 = vsub.f32 %v7045_v62, %v8145_v58  ;;  %v8147_v42 = vand.u32 4294901760, %v7083_v3  ;;  %v2359_v52 = vand.u32 4294901760, %v2358_v35  ;;  %v7138_v58 = vand.u32 4294901760, %v37_v29 }
 0x297   :  { %2071 = vrot.lane.b32.xlu0 %v2040_v12, %s5983_s20  ;;  %v8143_v12 = vand.u32 4294901760, %v7056_v36  ;;  %v2366_v35 = vand.u32 4294901760, %v2365_v16  ;;  %v7133_v41 = vsub.f32 %v53_v59, %v7106_v8  ;;  %v2260_v2 = vsub.f32 %v7118_v53, %v8152_v5 }
 0x298   :  { %v2240_v48 = vand.u32 4294901760, %v2239_v7  ;;  %v7160_v44 = vsub.f32 %v37_v29, %v7138_v58  ;;  %v50_v29 = vld [vmem:[%s8138_s1 + $0x130] sm:$0xff] }
 0x299   :  { %2057 = vrot.lane.b32.xlu1 %v6977_v51, %s5983_s20  ;;  %v7092_v51 = vand.u32 4294901760, %v54_v6  ;;  %v2246_v19 = vsub.f32 %v7056_v36, %v8143_v12  ;;  %8227 = vst [vmem:[#allocation9_spill] sm:$0xff] %v7133_v41  ;;  %v8154_v16 = vand.u32 4294901760, %v7133_v41  ;;  %v2261_v18 = vand.u32 4294901760, %v2260_v2 }
 0x29a   :  { %4876 = vmatpush3.msra.mxu1 %v2240_v48  ;;  %v7149_v48 = vand.u32 4294901760, %v36_v43  ;;  %8228 = vst [vmem:[#allocation10_spill] sm:$0xff] %v7160_v44 }
 0x29b   :  { %2036 = vrot.lane.b32.xlu0 %v7013_v13, %s5983_s20  ;;  %v7115_v22 = vsub.f32 %v54_v6, %v7092_v51  ;;  %4846 = vmatprep.subr.mxu0 %v7092_v51  ;;  %v2247_v7 = vand.u32 4294901760, %v2246_v19  ;;  %v2253_v6 = vsub.f32 %v7083_v3, %v8147_v42  ;;  %v35_v19 = vld [vmem:[%s8138_s1 + $0xb8] sm:$0xff]  ;;  %v7151_v42 = vand.u32 4294901760, %v51_v28 }
 0x29c   :  { %4847 = vmatpush3.msra.mxu0 %v7094_v60  ;;  %4877 = vmatprep.subr.mxu1 %v2359_v52  ;;  %v7163_v52 = vsub.f32 %v52_v56, %v7140_v15  ;;  %v7176_v5 = vand.u32 4294901760, %v35_v19  ;;  %v34_v56 = vld [vmem:[%s8138_s1 + $0xb0] sm:$0xff] }
 0x29d   :  { %2006 = vrot.lane.b32.xlu1 %v7015_v33, %s5983_s20  ;;  %v8151_v12 = vand.u32 4294901760, %v7115_v22  ;;  %4848 = vmatprep.subr.mxu0 %v7106_v8  ;;  %v2254_v59 = vand.u32 4294901760, %v2253_v6  ;;  %v7171_v6 = vsub.f32 %v36_v43, %v7149_v48 }
 0x29e   :  { %4878 = vmatpush3.msra.mxu1 %v2247_v7  ;;  %8229 = vst [vmem:[#allocation7_spill] sm:$0xff] %v7163_v52  ;;  %v2379_v7 = vsub.f32 %v7133_v41, %v8154_v16  ;;  %v8159_v16 = vand.u32 4294901760, %v7160_v44  ;;  %v8158_v43 = vand.u32 4294901760, %v7163_v52  ;;  %4849 = vmatpush3.msra.mxu0 %v7138_v58  ;;  %v7195_v2 = vsub.f32 %v35_v19, %v7176_v5 }
 0x29f   :  { %2047 = vrot.lane.b32.xlu0 %v7070_v37, %s5981_s9  ;;  %v2372_v55 = vsub.f32 %v7115_v22, %v8151_v12  ;;  %4879 = vmatprep.subr.mxu1 %v2366_v35  ;;  %8230 = vst [vmem:[#allocation8_spill] sm:$0xff] %v7171_v6  ;;  %v7174_v12 = vsub.f32 %v51_v28, %v7151_v42  ;;  %v49_v28 = vld [vmem:[%s8138_s1 + $0x128] sm:$0xff]  ;;  %v8162_v45 = vand.u32 4294901760, %v7171_v6 }
 0x2a0   :  { %4880 = vmatpush3.msra.mxu1 %v2254_v59  ;;  %v2380_v30 = vand.u32 4294901760, %v2379_v7  ;;  %8232 = vst [vmem:[#allocation12_spill] sm:$0xff] %v7195_v2  ;;  %4850 = vmatprep.subr.mxu0 %v7140_v15  ;;  %v2386_v47 = vsub.f32 %v7163_v52, %v8158_v43  ;;  %v7206_v7 = vand.u32 4294901760, %v34_v56  ;;  %v32_v43 = vld [vmem:[%s8138_s1 + $0xa0] sm:$0xff] }
 0x2a1   :  { %2019 = vrot.lane.b32.xlu1 %v7034_v10, %s5981_s9  ;;  %8231 = vst [vmem:[#allocation11_spill] sm:$0xff] %v7174_v12  ;;  %v2373_v35 = vand.u32 4294901760, %v2372_v55  ;;  %v8163_v59 = vand.u32 4294901760, %v7174_v12  ;;  %v2267_v55 = vsub.f32 %v7160_v44, %v8159_v16  ;;  %4851 = vmatpush3.msra.mxu0 %v7149_v48  ;;  %v2274_v19 = vsub.f32 %v7171_v6, %v8162_v45 }
 0x2a2   :  { %8234 = vst [vmem:[#allocation14_spill] sm:$0xff] %v7206_v7  ;;  %v7218_v16 = vand.u32 4294901760, %v49_v28  ;;  %v2387_v31 = vand.u32 4294901760, %v2386_v47  ;;  %4852 = vmatprep.subr.mxu0 %v7151_v42  ;;  %v8237_v47 = vand.u32 4294901760, %v7195_v2  ;;  %v7248_v44 = vand.u32 4294901760, %v33_v0 }
 0x2a3   :  { %2075 = vrot.lane.b32.xlu0 %v7070_v37, %s5982_s18  ;;  %4881 = vmatprep.subr.mxu1 %v2373_v35  ;;  %v7204_v37 = vand.u32 4294901760, %v50_v29  ;;  %v2393_v35 = vsub.f32 %v7174_v12, %v8163_v59  ;;  %v7230_v59 = vsub.f32 %v34_v56, %v7206_v7  ;;  %v47_v12 = vld [vmem:[%s8138_s1 + $0x118] sm:$0xff]  ;;  %v2275_v6 = vand.u32 4294901760, %v2274_v19 }
 0x2a4   :  { %4882 = vmatpush3.msra.mxu1 %v2261_v18  ;;  %v48_v18 = vld [vmem:[%s8138_s1 + $0x120] sm:$0xff]  ;;  %4853 = vmatpush3.msra.mxu0 %v7176_v5  ;;  %v31_v19 = vld [vmem:[%s8138_s1 + $0x98] sm:$0xff] }
 0x2a5   :  { %8233 = vst [vmem:[#allocation13_spill] sm:$0xff] %v7204_v37  ;;  %2061 = vrot.lane.b32.xlu1 %v7034_v10, %s5982_s18  ;;  %4883 = vmatprep.subr.mxu1 %v2380_v30  ;;  %v2268_v10 = vand.u32 4294901760, %v2267_v55  ;;  %v7227_v45 = vsub.f32 %v50_v29, %v7204_v37  ;;  %8236 = vst [vmem:[#allocation16_spill] sm:$0xff] %v7230_v59  ;;  %v2394_v30 = vand.u32 4294901760, %v2393_v35  ;;  %v7250_v41 = vand.u32 4294901760, %v48_v18 }
 0x2a6   :  { %v2281_v29 = vsub.f32 %v7195_v2, %v8237_v47  ;;  %v7243_v55 = vsub.f32 %v49_v28, %v7218_v16  ;;  %4854 = vmatprep.subr.mxu0 %v7204_v37  ;;  %v7257_v47 = vand.u32 4294901760, %v32_v43  ;;  %v8240_v2 = vand.u32 4294901760, %v7230_v59 }
 0x2a7   :  { %8235 = vst [vmem:[#allocation15_spill] sm:$0xff] %v7227_v45  ;;  %4884 = vmatpush3.msra.mxu1 %v2268_v10  ;;  %v8180_v56 = vand.u32 4294901760, %v7227_v45  ;;  %v7259_v10 = vand.u32 4294901760, %v47_v12  ;;  %4855 = vmatpush3.msra.mxu0 %v7206_v7 }
 0x2a8   :  { %8238 = vst [vmem:[#allocation17_spill] sm:$0xff] %v7243_v55  ;;  %4885 = vmatprep.subr.mxu1 %v2387_v31  ;;  %v2282_v28 = vand.u32 4294901760, %v2281_v29  ;;  %v8183_v35 = vand.u32 4294901760, %v7243_v55  ;;  %v2288_v53 = vsub.f32 %v7230_v59, %v8240_v2  ;;  %v7269_v31 = vsub.f32 %v33_v0, %v7248_v44  ;;  %v46_v0 = vld [vmem:[%s8138_s1 + $0x110] sm:$0xff]  ;;  %4856 = vmatprep.subr.mxu0 %v7218_v16 }
 0x2a9   :  { %8239 = vst [vmem:[#allocation18_spill] sm:$0xff] %v7259_v10  ;;  %4886 = vmatpush3.msra.mxu1 %v2275_v6  ;;  %v2400_v52 = vsub.f32 %v7227_v45, %v8180_v56  ;;  %v7272_v29 = vsub.f32 %v48_v18, %v7250_v41  ;;  %v7278_v6 = vsub.f32 %v32_v43, %v7257_v47  ;;  %v7283_v45 = vand.u32 4294901760, %v31_v19  ;;  %v30_v2 = vld [vmem:[%s8138_s1 + $0x90] sm:$0xff] }
 0x2aa   :  { %8241 = vst [vmem:[#allocation19_spill] sm:$0xff] %v7269_v31  ;;  %4887 = vmatprep.subr.mxu1 %v2394_v30  ;;  %v2407_v7 = vsub.f32 %v7243_v55, %v8183_v35  ;;  %v7281_v56 = vsub.f32 %v47_v12, %v7259_v10  ;;  %v2289_v30 = vand.u32 4294901760, %v2288_v53  ;;  %v8190_v43 = vand.u32 4294901760, %v7269_v31  ;;  %4857 = vmatpush3.msra.mxu0 %v7248_v44 }
 0x2ab   :  { %8242 = vst [vmem:[#allocation20_spill] sm:$0xff] %v7272_v29  ;;  %8243 = vst [vmem:[#allocation21_spill] sm:$0xff] %v7278_v6  ;;  %4888 = vmatpush3.msra.mxu1 %v2282_v28  ;;  %v2401_v18 = vand.u32 4294901760, %v2400_v52  ;;  %v8191_v12 = vand.u32 4294901760, %v7272_v29  ;;  %v8196_v55 = vand.u32 4294901760, %v7278_v6  ;;  %v7298_v37 = vsub.f32 %v31_v19, %v7283_v45  ;;  %4858 = vmatprep.subr.mxu0 %v7250_v41 }
 0x2ac   :  { %v2408_v35 = vand.u32 4294901760, %v2407_v7  ;;  %v8199_v59 = vand.u32 4294901760, %v7281_v56  ;;  %v2295_v53 = vsub.f32 %v7269_v31, %v8190_v43  ;;  %v7307_v28 = vand.u32 4294901760, %v46_v0  ;;  %4859 = vmatpush3.msra.mxu0 %v7257_v47 }
 0x2ad   :  { %4889 = vmatprep.subr.mxu1 %v2401_v18  ;;  %v2414_v52 = vsub.f32 %v7272_v29, %v8191_v12  ;;  %v7309_v7 = vand.u32 4294901760, %v30_v2  ;;  %v2302_v19 = vsub.f32 %v7278_v6, %v8196_v55  ;;  %v8202_v43 = vand.u32 4294901760, %v7298_v37  ;;  %4860 = vmatprep.subr.mxu0 %v7259_v10 }
 0x2ae   :  { %4890 = vmatpush3.msra.mxu1 %v2289_v30  ;;  %v2421_v18 = vsub.f32 %v7281_v56, %v8199_v59  ;;  %v2296_v12 = vand.u32 4294901760, %v2295_v53  ;;  %v7321_v31 = vsub.f32 %v46_v0, %v7307_v28  ;;  %4861 = vmatpush3.msra.mxu0 %v7283_v45 }
 0x2af   :  { %4891 = vmatprep.subr.mxu1 %v2408_v35  ;;  %v2415_v29 = vand.u32 4294901760, %v2414_v52  ;;  %v7324_v30 = vsub.f32 %v30_v2, %v7309_v7  ;;  %v2303_v55 = vand.u32 4294901760, %v2302_v19  ;;  %v2309_v59 = vsub.f32 %v7298_v37, %v8202_v43  ;;  %4862 = vmatprep.subr.mxu0 %v7307_v28  ;;  %v8255_v43 = vld [vmem:[#allocation16_spill] sm:$0xff] }
 0x2b0   :  { %v2422_v6 = vand.u32 4294901760, %v2421_v18  ;;  %4892 = vmatpush3.msra.mxu1 %v2296_v12  ;;  %v8201_v35 = vand.u32 4294901760, %v7321_v31  ;;  %4863 = vmatpush3.msra.mxu0 %v7309_v7 }
 0x2b1   :  { %v8200_v53 = vand.u32 4294901760, %v7324_v30  ;;  %4893 = vmatprep.subr.mxu1 %v2415_v29  ;;  %v2310_v0 = vand.u32 4294901760, %v2309_v59  ;;  %4902 = vmatprep.subr.mxu0 %v6911_v49 }
 0x2b2   :  { %4894 = vmatpush3.msra.mxu1 %v2303_v55  ;;  %v2428_v2 = vsub.f32 %v7321_v31, %v8201_v35  ;;  %v8254_v35 = vld [vmem:[#allocation15_spill] sm:$0xff] }
 0x2b3   :  { %v2316_v52 = vsub.f32 %v7324_v30, %v8200_v53  ;;  %4895 = vmatprep.subr.mxu1 %v2422_v6  ;;  %v8253_v53 = vld [vmem:[#allocation12_spill] sm:$0xff] }
 0x2b4   :  { %4896 = vmatpush3.msra.mxu1 %v2310_v0  ;;  %v2429_v12 = vand.u32 4294901760, %v2428_v2 }
 0x2b5   :  { %v2317_v19 = vand.u32 4294901760, %v2316_v52 }
 0x2b6   :  { %4897 = vmatprep.subr.mxu1 %v2429_v12 }
 0x2b7   :  { %4898 = vmatpush3.msra.mxu1 %v2317_v19 }
 0x2b8   :  { %4937 = vmatprep.subr.mxu1 %v6893_v17 }
 0x301   :  { %v2052_v59 = vpop.permute.xlu0 %2051 }
 0x302   :  { %2054 = vst.msk [vmem:[#allocation2 + $0x1] sm:$0x1] %vm1994_vm5, %v2052_v59 }
 0x303   :  { %2056 = vst.msk [vmem:[#allocation2 + $0x1] sm:$0x1] %vm2009_vm6, %v7015_v33  ;;  %v2066_v55 = vpop.permute.xlu1 %2065 }
 0x304   :  { %2068 = vst.msk [vmem:[#allocation2 + $0x3] sm:$0x1] %vm1994_vm5, %v2066_v55 }
 0x305   :  { %2070 = vst.msk [vmem:[#allocation2 + $0x3] sm:$0x1] %vm2009_vm6, %v7013_v13  ;;  %v2042_v29 = vpop.permute.xlu0 %2041 }
 0x307   :  { %v2013_v6 = vpop.permute.xlu1 %2012 }
 0x309   :  { %v2072_v18 = vpop.permute.xlu0 %2071 }
 0x30a   :  { %2074 = vst.msk [vmem:[#allocation2 + $0x3] sm:$0x1] %vm2015_vm7, %v2072_v18 }
 0x30b   :  { %v2058_v0 = vpop.permute.xlu1 %2057 }
 0x30c   :  { %2060 = vst.msk [vmem:[#allocation2 + $0x1] sm:$0x1] %vm2015_vm7, %v2058_v0 }
 0x30d   :  { %v2037_v2 = vpop.permute.xlu0 %2036 }
 0x30e   :  { %2039 = vst.msk [vmem:[#allocation2 + $0x2] sm:$0x1] %vm2009_vm6, %v2037_v2 }
 0x30f   :  { %2044 = vst.msk [vmem:[#allocation2 + $0x2] sm:$0x1] %vm2015_vm7, %v2042_v29  ;;  %v2007_v52 = vpop.permute.xlu1 %2006 }
 0x310   :  { %2010 = vst.msk [vmem:[#allocation2] sm:$0x1] %vm2009_vm6, %v2007_v52 }
 0x311   :  { %2016 = vst.msk [vmem:[#allocation2] sm:$0x1] %vm2015_vm7, %v2013_v6  ;;  %v2048_v33 = vpop.permute.xlu0 %2047 }
 0x312   :  { %2050 = vst.msk [vmem:[#allocation2 + $0x2] sm:$0x1] %vm2022_vm8, %v2048_v33 }
 0x313   :  { %v2020_v12 = vpop.permute.xlu1 %2019 }
 0x314   :  { %2023 = vst.msk [vmem:[#allocation2] sm:$0x1] %vm2022_vm8, %v2020_v12 }
 0x315   :  { %v2076_v13 = vpop.permute.xlu0 %2075 }
 0x316   :  { %2078 = vst.msk [vmem:[#allocation2 + $0x3] sm:$0x1] %vm2022_vm8, %v2076_v13 }
 0x317   :  { %v2062_v19 = vpop.permute.xlu1 %2061 }
 0x318   :  { %2064 = vst.msk [vmem:[#allocation2 + $0x1] sm:$0x1] %vm2022_vm8, %v2062_v19 }
 0x31f   :  { %v4619_v59 = vld.sshfl [vmem:[#allocation2] sm:$0x33 pattern:$0x76325410] }
 0x320   :  { %v2092_v55 = vcombine.high %v4619_v59, %v4619_v59  ;;  %v7350_v18 = vand.u32 4294901760, %v4619_v59 }
 0x322   :  { %8244 = vst [vmem:[#allocation22_spill] sm:$0xff] %v7350_v18  ;;  %v7352_v0 = vand.u32 4294901760, %v2092_v55  ;;  %v7355_v29 = vsub.f32 %v4619_v59, %v7350_v18  ;;  %v8245_v59 = vld [vmem:[#allocation13_spill] sm:$0xff] }
 0x324   :  { %2432 = vmatprep.mubr.f32.mxu1 %v7352_v0  ;;  %v2192_v6 = vsub.f32 %v2092_v55, %v7352_v0  ;;  %v8203_v2 = vand.u32 4294901760, %v7355_v29  ;;  %v8246_v55 = vld [vmem:[#allocation6_spill] sm:$0xff] }
 0x325   :  { %2434 = vmatmul.mubr.f32.vlgmr.msra.gmra.mxu1 %v7350_v18  ;;  %v8257_v18 = vand.u32 4294901760, %v7355_v29 }
 0x326   :  { %4938 = vmatpush3.msra.mxu1 %v6904_v26  ;;  %v2193_v52 = vand.u32 4294901760, %v2192_v6  ;;  %v2200_v33 = vsub.f32 %v7355_v29, %v8203_v2  ;;  %v8256_v2 = vld [vmem:[#allocation17_spill] sm:$0xff] }
 0x327   :  { %4939 = vmatprep.subr.mxu1 %v6906_v34 }
 0x328   :  { %4940 = vmatpush3.msra.mxu1 %v6908_v25  ;;  %2676 = vmatprep.mubr.f32.mxu1 %v2193_v52  ;;  %v2194_v12 = vsub.f32 %v2192_v6, %v2193_v52  ;;  %v2201_v19 = vand.u32 4294901760, %v2200_v33  ;;  %v8248_v52 = vld [vmem:[#allocation9_spill] sm:$0xff]  ;;  %v8249_v33 = vld [vmem:[#allocation10_spill] sm:$0xff] }
 0x329   :  { %4941 = vmatprep.subr.mxu1 %v6929_v32 }
 0x32a   :  { %4942 = vmatpush3.msra.mxu1 %v6933_v24  ;;  %v2195_v13 = vand.u32 4294901760, %v2194_v12  ;;  %v8250_v12 = vld [vmem:[#allocation7_spill] sm:$0xff] }
 0x32b   :  { %4943 = vmatprep.subr.mxu1 %v6952_v39 }
 0x32c   :  { %4944 = vmatpush3.msra.mxu1 %v6988_v63  ;;  %2196 = vmatprep.mubr.f32.mxu0 %v2195_v13  ;;  %v8251_v13 = vld [vmem:[#allocation8_spill] sm:$0xff] }
 0x32d   :  { %4945 = vmatprep.subr.mxu1 %v6990_v61  ;;  %2202 = vmatmul.mubr.f32.vlgmr.msra.gmra.mxu0 %v2201_v19  ;;  %v8252_v19 = vld [vmem:[#allocation11_spill] sm:$0xff] }
 0x32e   :  { %4903 = vmatpush3.msra.mxu0 %v6921_v54  ;;  %4946 = vmatpush3.msra.mxu1 %v7025_v46 }
 0x32f   :  { %4904 = vmatprep.subr.mxu0 %v6924_v50  ;;  %2569 = vmatprep.mubr.f32.mxu0 %v2192_v6  ;;  %v8247_v6 = vld [vmem:[#allocation14_spill] sm:$0xff] }
 0x330   :  { %4947 = vmatprep.subr.mxu1 %v7027_v40  ;;  %4905 = vmatpush3.msra.mxu0 %v6927_v20 }
 0x331   :  { %4948 = vmatpush3.msra.mxu1 %v7037_v4  ;;  %4906 = vmatprep.subr.mxu0 %v6947_v21 }
 0x332   :  { %4949 = vmatprep.subr.mxu1 %v7039_v57  ;;  %4907 = vmatpush3.msra.mxu0 %v6950_v11 }
 0x333   :  { %4950 = vmatpush3.msra.mxu1 %v7061_v38  ;;  %4908 = vmatprep.subr.mxu0 %v6986_v1 }
 0x334   :  { %4951 = vmatprep.subr.mxu1 %v7092_v51  ;;  %4909 = vmatpush3.msra.mxu0 %v7003_v23 }
 0x335   :  { %4952 = vmatpush3.msra.mxu1 %v7094_v60  ;;  %4910 = vmatprep.subr.mxu0 %v7018_v27 }
 0x336   :  { %4953 = vmatprep.subr.mxu1 %v7106_v8  ;;  %4911 = vmatpush3.msra.mxu0 %v7045_v62 }
 0x337   :  { %4954 = vmatpush3.msra.mxu1 %v7138_v58  ;;  %4912 = vmatprep.subr.mxu0 %v7048_v14 }
 0x338   :  { %4955 = vmatprep.subr.mxu1 %v7140_v15  ;;  %4913 = vmatpush3.msra.mxu0 %v7056_v36 }
 0x339   :  { %4956 = vmatpush3.msra.mxu1 %v7149_v48  ;;  %4914 = vmatprep.subr.mxu0 %v7059_v9 }
 0x33a   :  { %4957 = vmatprep.subr.mxu1 %v7151_v42  ;;  %4915 = vmatpush3.msra.mxu0 %v7083_v3 }
 0x33b   :  { %4958 = vmatpush3.msra.mxu1 %v7176_v5  ;;  %4916 = vmatprep.subr.mxu0 %v7115_v22 }
 0x33c   :  { %4959 = vmatprep.subr.mxu1 %v8245_v59  ;;  %4917 = vmatpush3.msra.mxu0 %v8246_v55 }
 0x33d   :  { %4960 = vmatpush3.msra.mxu1 %v8247_v6  ;;  %4918 = vmatprep.subr.mxu0 %v8248_v52 }
 0x33e   :  { %4961 = vmatprep.subr.mxu1 %v7218_v16  ;;  %4919 = vmatpush3.msra.mxu0 %v8249_v33 }
 0x33f   :  { %4962 = vmatpush3.msra.mxu1 %v7248_v44  ;;  %4920 = vmatprep.subr.mxu0 %v8250_v12 }
 0x340   :  { %4963 = vmatprep.subr.mxu1 %v7250_v41  ;;  %4921 = vmatpush3.msra.mxu0 %v8251_v13 }
 0x341   :  { %4964 = vmatpush3.msra.mxu1 %v7257_v47  ;;  %4922 = vmatprep.subr.mxu0 %v8252_v19 }
 0x342   :  { %4965 = vmatprep.subr.mxu1 %v7259_v10  ;;  %4923 = vmatpush3.msra.mxu0 %v8253_v53  ;;  %v8258_v10 = vld [vmem:[#allocation19_spill] sm:$0xff] }
 0x343   :  { %4966 = vmatpush3.msra.mxu1 %v7283_v45  ;;  %4924 = vmatprep.subr.mxu0 %v8254_v35  ;;  %v8259_v35 = vld [vmem:[#allocation20_spill] sm:$0xff] }
 0x344   :  { %4967 = vmatprep.subr.mxu1 %v7307_v28  ;;  %4925 = vmatpush3.msra.mxu0 %v8255_v43  ;;  %v8260_v43 = vld [vmem:[#allocation21_spill] sm:$0xff] }
 0x345   :  { %4968 = vmatpush3.msra.mxu1 %v7309_v7  ;;  %4926 = vmatprep.subr.mxu0 %v8256_v2 }
 0x346   :  { %2680 = vmatmul.mubr.f32.vlgmr.msra.gmra.mxu1 %v8257_v18  ;;  %5007 = vmatprep.subr.mxu1 %v6893_v17  ;;  %v8261_v17 = vand.u32 4294901760, %v6911_v49  ;;  %v8265_v49 = vand.u32 4294901760, %v6947_v21  ;;  %v8271_v21 = vand.u32 4294901760, %v7048_v14  ;;  %v8286_v14 = vld [vmem:[#allocation16_spill] sm:$0xff] }
 0x347   :  { %4927 = vmatpush3.msra.mxu0 %v8258_v10  ;;  %5008 = vmatpush3.msra.mxu1 %v6904_v26  ;;  %v8262_v26 = vand.u32 4294901760, %v6921_v54  ;;  %v8266_v54 = vand.u32 4294901760, %v6950_v11  ;;  %v8272_v11 = vand.u32 4294901760, %v7056_v36  ;;  %v8287_v36 = vand.u32 4294901760, %v8286_v14 }
 0x348   :  { %2950 = vmatprep.mubr.f32.mxu1 %v7352_v0  ;;  %4928 = vmatprep.subr.mxu0 %v8259_v35 }
 0x349   :  { %5009 = vmatprep.subr.mxu1 %v6906_v34  ;;  %4929 = vmatpush3.msra.mxu0 %v8260_v43  ;;  %v8263_v34 = vand.u32 4294901760, %v6924_v50  ;;  %v8267_v50 = vand.u32 4294901760, %v6986_v1  ;;  %v8274_v1 = vand.u32 4294901760, %v7083_v3  ;;  %v8293_v3 = vand.u32 4294901760, %v8260_v43  ;;  %v74_v43 = vld [vmem:[%s8138_s1 + $0x1e9] sm:$0xff] }
 0x34a   :  { %5010 = vmatpush3.msra.mxu1 %v6908_v25  ;;  %4930 = vmatprep.subr.mxu0 %v7281_v56  ;;  %v8264_v25 = vand.u32 4294901760, %v6927_v20  ;;  %v8268_v20 = vand.u32 4294901760, %v7003_v23  ;;  %v8277_v23 = vand.u32 4294901760, %v8248_v52 }
 0x34b   :  { %5011 = vmatprep.subr.mxu1 %v6929_v32  ;;  %4931 = vmatpush3.msra.mxu0 %v7298_v37  ;;  %v8269_v32 = vand.u32 4294901760, %v7018_v27  ;;  %v8278_v27 = vand.u32 4294901760, %v8249_v33 }
 0x34c   :  { %5012 = vmatpush3.msra.mxu1 %v6933_v24  ;;  %4932 = vmatprep.subr.mxu0 %v7321_v31  ;;  %v8270_v24 = vand.u32 4294901760, %v7045_v62 }
 0x34d   :  { %5013 = vmatprep.subr.mxu1 %v6952_v39  ;;  %4933 = vmatpush3.msra.mxu0 %v7324_v30  ;;  %v8273_v39 = vand.u32 4294901760, %v7059_v9  ;;  %v8288_v9 = vand.u32 4294901760, %v8256_v2 }
 0x34e   :  { %5014 = vmatpush3.msra.mxu1 %v6988_v63  ;;  %2572 = vmatmul.mubr.f32.vlgmr.msra.gmra.mxu0 %v7355_v29  ;;  %v8275_v63 = vand.u32 4294901760, %v7115_v22  ;;  %v77_v22 = vld [vmem:[%s8138_s1 + $0x201] sm:$0xff] }
 0x34f   :  { %4972 = vmatprep.subr.mxu0 %v8261_v17  ;;  %5015 = vmatprep.subr.mxu1 %v6990_v61  ;;  %v8276_v61 = vand.u32 4294901760, %v8246_v55  ;;  %v72_v55 = vld [vmem:[%s8138_s1 + $0x1d9] sm:$0xff] }
 0x350   :  { %4973 = vmatpush3.msra.mxu0 %v8262_v26  ;;  %2846 = vmatprep.mubr.f32.mxu0 %v7352_v0 }
 0x351   :  { %5016 = vmatpush3.msra.mxu1 %v7025_v46  ;;  %4974 = vmatprep.subr.mxu0 %v8263_v34  ;;  %v8279_v46 = vand.u32 4294901760, %v8250_v12  ;;  %v7596_v12 = vand.u32 4294901760, %v72_v55 }
 0x352   :  { %5017 = vmatprep.subr.mxu1 %v7027_v40  ;;  %4975 = vmatpush3.msra.mxu0 %v8264_v25  ;;  %v8280_v40 = vand.u32 4294901760, %v8251_v13 }
 0x353   :  { %5018 = vmatpush3.msra.mxu1 %v7037_v4  ;;  %4976 = vmatprep.subr.mxu0 %v8265_v49  ;;  %v8282_v4 = vld [vmem:[#allocation18_spill] sm:$0xff]  ;;  %v7610_v34 = vsub.f32 %v72_v55, %v7596_v12 }
 0x354   :  { %5019 = vmatprep.subr.mxu1 %v7039_v57  ;;  %4977 = vmatpush3.msra.mxu0 %v8266_v54  ;;  %v8283_v57 = vand.u32 4294901760, %v8253_v53  ;;  %v73_v53 = vld [vmem:[%s8138_s1 + $0x1e1] sm:$0xff]  ;;  %v70_v54 = vld [vmem:[%s8138_s1 + $0x1c9] sm:$0xff] }
 0x355   :  { %5020 = vmatpush3.msra.mxu1 %v7061_v38  ;;  %4978 = vmatprep.subr.mxu0 %v8267_v50  ;;  %v8289_v38 = vld [vmem:[#allocation22_spill] sm:$0xff] }
 0x356   :  { %5021 = vmatprep.subr.mxu1 %v7092_v51  ;;  %4979 = vmatpush3.msra.mxu0 %v8268_v20  ;;  %v8294_v51 = vand.u32 4294901760, %v7281_v56  ;;  %v75_v56 = vld [vmem:[%s8138_s1 + $0x1f1] sm:$0xff]  ;;  %v3101_v20 = vand.u32 4294901760, %v7610_v34 }
 0x357   :  { %5022 = vmatpush3.msra.mxu1 %v7094_v60  ;;  %4980 = vmatprep.subr.mxu0 %v8269_v32  ;;  %v8295_v60 = vand.u32 4294901760, %v7298_v37 }
 0x358   :  { %5023 = vmatprep.subr.mxu1 %v7106_v8  ;;  %4981 = vmatpush3.msra.mxu0 %v8270_v24  ;;  %v8297_v8 = vand.u32 4294901760, %v7324_v30  ;;  %v7625_v24 = vand.u32 4294901760, %v70_v54 }
 0x359   :  { %5024 = vmatpush3.msra.mxu1 %v7138_v58  ;;  %4982 = vmatprep.subr.mxu0 %v8271_v21  ;;  %v8290_v58 = vand.u32 4294901760, %v8258_v10 }
 0x35a   :  { %5025 = vmatprep.subr.mxu1 %v7140_v15  ;;  %4983 = vmatpush3.msra.mxu0 %v8272_v11  ;;  %v8281_v15 = vand.u32 4294901760, %v8252_v19  ;;  %v71_v19 = vld [vmem:[%s8138_s1 + $0x1d1] sm:$0xff]  ;;  %v69_v11 = vld [vmem:[%s8138_s1 + $0x1c1] sm:$0xff] }
 0x35b   :  { %5026 = vmatpush3.msra.mxu1 %v7149_v48  ;;  %4984 = vmatprep.subr.mxu0 %v8273_v39  ;;  %v7612_v25 = vand.u32 4294901760, %v71_v19  ;;  %v3102_v39 = vsub.f32 %v7610_v34, %v3101_v20 }
 0x35c   :  { %5027 = vmatprep.subr.mxu1 %v7151_v42  ;;  %4985 = vmatpush3.msra.mxu0 %v8274_v1  ;;  %v8296_v42 = vand.u32 4294901760, %v7321_v31  ;;  %v7557_v31 = vand.u32 4294901760, %v75_v56 }
 0x35d   :  { %5028 = vmatpush3.msra.mxu1 %v7176_v5  ;;  %4986 = vmatprep.subr.mxu0 %v8275_v63  ;;  %v8292_v5 = vmov 0.0   ;;  %v7623_v32 = vsub.f32 %v71_v19, %v7612_v25  ;;  %v7641_v63 = vsub.f32 %v70_v54, %v7625_v24  ;;  %v63_v19 = vld [vmem:[%s8138_s1 + $0x191] sm:$0xff] }
 0x35e   :  { %5029 = vmatprep.subr.mxu1 %v8245_v59  ;;  %4987 = vmatpush3.msra.mxu0 %v8276_v61  ;;  %v7569_v30 = vsub.f32 %v75_v56, %v7557_v31  ;;  %v7586_v59 = vand.u32 4294901760, %v73_v53  ;;  %v7643_v61 = vand.u32 4294901760, %v69_v11 }
 0x35f   :  { %5030 = vmatpush3.msra.mxu1 %v8247_v6  ;;  %4988 = vmatprep.subr.mxu0 %v8277_v23  ;;  %v3108_v1 = vand.u32 4294901760, %v7623_v32 }
 0x360   :  { %5031 = vmatprep.subr.mxu1 %v7218_v16  ;;  %4989 = vmatpush3.msra.mxu0 %v8278_v27  ;;  %v76_v16 = vld [vmem:[%s8138_s1 + $0x1f9] sm:$0xff]  ;;  %v3080_v29 = vand.u32 4294901760, %v7569_v30  ;;  %v7600_v13 = vsub.f32 %v73_v53, %v7586_v59 }
 0x361   :  { %5032 = vmatpush3.msra.mxu1 %v7248_v44  ;;  %4990 = vmatprep.subr.mxu0 %v8279_v46  ;;  %v8284_v44 = vld [vmem:[#allocation15_spill] sm:$0xff]  ;;  %v7546_v37 = vand.u32 4294901760, %v76_v16  ;;  %v68_v27 = vld [vmem:[%s8138_s1 + $0x1b9] sm:$0xff]  ;;  %v3103_v46 = vand.u32 4294901760, %v3102_v39 }
 0x362   :  { %5033 = vmatprep.subr.mxu1 %v7250_v41  ;;  %4991 = vmatpush3.msra.mxu0 %v8280_v40  ;;  %v8285_v62 = vand.u32 4294901760, %v8284_v44  ;;  %v7538_v41 = vand.u32 4294901760, %v77_v22  ;;  %v3081_v52 = vsub.f32 %v7569_v30, %v3080_v29  ;;  %v3094_v49 = vand.u32 4294901760, %v7600_v13  ;;  %v67_v44 = vld [vmem:[%s8138_s1 + $0x1b1] sm:$0xff]  ;;  %v64_v53 = vld [vmem:[%s8138_s1 + $0x199] sm:$0xff] }
 0x363   :  { %5034 = vmatpush3.msra.mxu1 %v7257_v47  ;;  %4992 = vmatprep.subr.mxu0 %v8281_v15  ;;  %v7555_v10 = vsub.f32 %v76_v16, %v7546_v37  ;;  %v3109_v40 = vsub.f32 %v7623_v32, %v3108_v1  ;;  %v8214_v15 = vand.u32 4294901760, %v7641_v63 }
 0x364   :  { %5035 = vmatprep.subr.mxu1 %v8282_v4  ;;  %4993 = vmatpush3.msra.mxu0 %v8283_v57  ;;  %v7544_v48 = vsub.f32 %v77_v22, %v7538_v41  ;;  %v3082_v17 = vand.u32 4294901760, %v3081_v52  ;;  %v3095_v21 = vsub.f32 %v7600_v13, %v3094_v49  ;;  %v7656_v4 = vsub.f32 %v69_v11, %v7643_v61 }
 0x365   :  { %5036 = vmatpush3.msra.mxu1 %v7283_v45  ;;  %4994 = vmatprep.subr.mxu0 %v8285_v62  ;;  %v8291_v45 = vand.u32 4294901760, %v8259_v35  ;;  %v7571_v35 = vand.u32 4294901760, %v74_v43  ;;  %v7659_v57 = vand.u32 4294901760, %v68_v27  ;;  %v3110_v62 = vand.u32 4294901760, %v3109_v40 }
 0x366   :  { %5037 = vmatprep.subr.mxu1 %v7307_v28  ;;  %4995 = vmatpush3.msra.mxu0 %v8287_v36  ;;  %v3066_v47 = vand.u32 4294901760, %v7544_v48  ;;  %v3096_v23 = vand.u32 4294901760, %v3095_v21  ;;  %v3116_v14 = vsub.f32 %v7641_v63, %v8214_v15  ;;  %v8213_v36 = vand.u32 4294901760, %v7656_v4 }
 0x367   :  { %5038 = vmatpush3.msra.mxu1 %v7309_v7  ;;  %4996 = vmatprep.subr.mxu0 %v8288_v9  ;;  %v3073_v7 = vand.u32 4294901760, %v7555_v10  ;;  %v7583_v2 = vsub.f32 %v74_v43, %v7571_v35  ;;  %v7670_v9 = vand.u32 4294901760, %v67_v44  ;;  %v7734_v21 = vand.u32 4294901760, %v63_v19 }
 0x368   :  { %2952 = vmatmul.mubr.f32.vlgmr.msra.gmra.mxu1 %v8289_v38  ;;  %4997 = vmatpush3.msra.mxu0 %v8290_v58  ;;  %v3067_v28 = vsub.f32 %v7544_v48, %v3066_v47  ;;  %v66_v58 = vld [vmem:[%s8138_s1 + $0x1a9] sm:$0xff] }
 0x369   :  { %4998 = vmatprep.subr.mxu0 %v8291_v45  ;;  %5609 = vmatprep.subr.mxu1 %v8292_v5  ;;  %v3074_v0 = vsub.f32 %v7555_v10, %v3073_v7  ;;  %v3087_v33 = vand.u32 4294901760, %v7583_v2  ;;  %v3117_v45 = vand.u32 4294901760, %v3116_v14 }
 0x36a   :  { %4999 = vmatpush3.msra.mxu0 %v8293_v3  ;;  %5639 = vmatprep.mubr.msk.f32.mxu1 %vm5978_vm2, %v8292_v5  ;;  %v3068_v18 = vand.u32 4294901760, %v3067_v28  ;;  %v3123_v3 = vsub.f32 %v7656_v4, %v8213_v36 }
 0x36b   :  { %5000 = vmatprep.subr.mxu0 %v8294_v51  ;;  %v3075_v6 = vand.u32 4294901760, %v3074_v0  ;;  %v3088_v26 = vsub.f32 %v7583_v2, %v3087_v33  ;;  %v7685_v51 = vsub.f32 %v67_v44, %v7670_v9 }
 0x36c   :  { %5001 = vmatpush3.msra.mxu0 %v8295_v60  ;;  %5610 = vmatpush3.msra.mxu1 %v3068_v18  ;;  %v7687_v60 = vand.u32 4294901760, %v66_v58  ;;  %v3124_v22 = vand.u32 4294901760, %v3123_v3 }
 0x36d   :  { %5002 = vmatprep.subr.mxu0 %v8296_v42  ;;  %5611 = vmatprep.subr.mxu1 %v8292_v5  ;;  %v3089_v50 = vand.u32 4294901760, %v3088_v26  ;;  %v8211_v16 = vand.u32 4294901760, %v7685_v51 }
 0x36e   :  { %5003 = vmatpush3.msra.mxu0 %v8297_v8  ;;  %5612 = vmatpush3.msra.mxu1 %v3075_v6  ;;  %v65_v8 = vld [vmem:[%s8138_s1 + $0x1a1] sm:$0xff]  ;;  %v7698_v56 = vsub.f32 %v66_v58, %v7687_v60  ;;  %v7718_v6 = vand.u32 4294901760, %v64_v53 }
 0x36f   :  { %2848 = vmatmul.mubr.f32.vlgmr.msra.gmra.mxu0 %v8289_v38  ;;  %5576 = vmatprep.subr.mxu0 %v8292_v5  ;;  %v7674_v38 = vsub.f32 %v68_v27, %v7659_v57  ;;  %v7700_v43 = vand.u32 4294901760, %v65_v8  ;;  %v3137_v18 = vsub.f32 %v7685_v51, %v8211_v16  ;;  %v7744_v27 = vsub.f32 %v63_v19, %v7734_v21 }
 0x370   :  { %5606 = vmatprep.mubr.msk.f32.mxu0 %vm5978_vm2, %v8292_v5  ;;  %5577 = vmatpush3.msra.mxu0 %v7538_v41  ;;  %v8210_v0 = vand.u32 4294901760, %v7698_v56 }
 0x371   :  { %5578 = vmatprep.subr.mxu0 %v8292_v5  ;;  %5613 = vmatprep.subr.mxu1 %v8292_v5  ;;  %v8212_v42 = vand.u32 4294901760, %v7674_v38  ;;  %v7716_v55 = vsub.f32 %v65_v8, %v7700_v43  ;;  %v8207_v44 = vand.u32 4294901760, %v7744_v27 }
 0x372   :  { %5579 = vmatpush3.msra.mxu0 %v7546_v37  ;;  %5614 = vmatpush3.msra.mxu1 %v3082_v17  ;;  %v3138_v17 = vand.u32 4294901760, %v3137_v18  ;;  %v3144_v26 = vsub.f32 %v7698_v56, %v8210_v0  ;;  %v4618_v18 = vld [vmem:[%s8138_s1 + $0x190] ss:$0 sm:$0xff] }
 0x373   :  { %5580 = vmatprep.subr.mxu0 %v8292_v5  ;;  %5615 = vmatprep.subr.mxu1 %v8292_v5  ;;  %v3130_v28 = vsub.f32 %v7674_v38, %v8212_v42  ;;  %v8209_v54 = vand.u32 4294901760, %v7716_v55  ;;  %v3165_v14 = vsub.f32 %v7744_v27, %v8207_v44 }
 0x374   :  { %5581 = vmatpush3.msra.mxu0 %v7557_v31  ;;  %5616 = vmatpush3.msra.mxu1 %v3089_v50  ;;  %v7731_v50 = vsub.f32 %v64_v53, %v7718_v6  ;;  %v3145_v11 = vand.u32 4294901760, %v3144_v26 }
 0x375   :  { %5582 = vmatprep.subr.mxu0 %v8292_v5  ;;  %5617 = vmatprep.subr.mxu1 %v8292_v5  ;;  %v3131_v52 = vand.u32 4294901760, %v3130_v28  ;;  %v3151_v39 = vsub.f32 %v7716_v55, %v8209_v54  ;;  %v3166_v58 = vand.u32 4294901760, %v3165_v14 }
 0x376   :  { %5583 = vmatpush3.msra.mxu0 %v7571_v35  ;;  %5618 = vmatpush3.msra.mxu1 %v3096_v23  ;;  %v8208_v23 = vand.u32 4294901760, %v7731_v50 }
 0x377   :  { %5584 = vmatprep.subr.mxu0 %v8292_v5  ;;  %5619 = vmatprep.subr.mxu1 %v8292_v5 }
 0x378   :  { %5585 = vmatpush3.msra.mxu0 %v7586_v59  ;;  %5620 = vmatpush3.msra.mxu1 %v3103_v46  ;;  %v3152_v46 = vand.u32 4294901760, %v3151_v39  ;;  %v3158_v40 = vsub.f32 %v7731_v50, %v8208_v23 }
 0x379   :  { %5586 = vmatprep.subr.mxu0 %v8292_v5  ;;  %5621 = vmatprep.subr.mxu1 %v8292_v5 }
 0x37a   :  { %5587 = vmatpush3.msra.mxu0 %v7596_v12  ;;  %5622 = vmatpush3.msra.mxu1 %v3110_v62  ;;  %v3159_v62 = vand.u32 4294901760, %v3158_v40 }
 0x37b   :  { %5588 = vmatprep.subr.mxu0 %v8292_v5  ;;  %5623 = vmatprep.subr.mxu1 %v8292_v5 }
 0x37c   :  { %5589 = vmatpush3.msra.mxu0 %v7612_v25  ;;  %5624 = vmatpush3.msra.mxu1 %v3117_v45 }
 0x37d   :  { %5590 = vmatprep.subr.mxu0 %v8292_v5  ;;  %5625 = vmatprep.subr.mxu1 %v8292_v5 }
 0x37e   :  { %5591 = vmatpush3.msra.mxu0 %v7625_v24  ;;  %5626 = vmatpush3.msra.mxu1 %v3124_v22 }
 0x37f   :  { %5592 = vmatprep.subr.mxu0 %v8292_v5  ;;  %5627 = vmatprep.subr.mxu1 %v8292_v5 }
 0x380   :  { %5593 = vmatpush3.msra.mxu0 %v7643_v61  ;;  %5628 = vmatpush3.msra.mxu1 %v3131_v52 }
 0x381   :  { %5594 = vmatprep.subr.mxu0 %v8292_v5  ;;  %5629 = vmatprep.subr.mxu1 %v8292_v5 }
 0x382   :  { %5595 = vmatpush3.msra.mxu0 %v7659_v57  ;;  %5630 = vmatpush3.msra.mxu1 %v3138_v17 }
 0x383   :  { %5596 = vmatprep.subr.mxu0 %v8292_v5  ;;  %5631 = vmatprep.subr.mxu1 %v8292_v5 }
 0x384   :  { %5597 = vmatpush3.msra.mxu0 %v7670_v9  ;;  %5632 = vmatpush3.msra.mxu1 %v3145_v11 }
 0x385   :  { %5598 = vmatprep.subr.mxu0 %v8292_v5  ;;  %5633 = vmatprep.subr.mxu1 %v8292_v5 }
 0x386   :  { %5599 = vmatpush3.msra.mxu0 %v7687_v60  ;;  %5634 = vmatpush3.msra.mxu1 %v3152_v46 }
 0x387   :  { %5600 = vmatprep.subr.mxu0 %v8292_v5  ;;  %5635 = vmatprep.subr.mxu1 %v8292_v5 }
 0x388   :  { %5601 = vmatpush3.msra.mxu0 %v7700_v43  ;;  %5636 = vmatpush3.msra.mxu1 %v3159_v62 }
 0x389   :  { %5602 = vmatprep.subr.mxu0 %v8292_v5  ;;  %5637 = vmatprep.subr.mxu1 %v8292_v5 }
 0x38a   :  { %5603 = vmatpush3.msra.mxu0 %v7718_v6  ;;  %5638 = vmatpush3.msra.mxu1 %v3166_v58 }
 0x38b   :  { %5604 = vmatprep.subr.mxu0 %v8292_v5  ;;  %5675 = vmatprep.subr.mxu1 %v8292_v5 }
 0x38c   :  { %5605 = vmatpush3.msra.mxu0 %v7734_v21 }
 0x38d   :  { %5642 = vmatprep.subr.mxu0 %v8292_v5 }
 0x3e5   :  { %v4899_v3 = vpop.f32.mrf.mxu1 }
 0x3e7   :  { %v4900_v53 = vpop.f32.mrf.mxu1 }
 0x3e8   :  { %v4901_v26 = vadd.f32 %v4900_v53, %v4899_v3 }
 0x3ed   :  { %v4864_v45 = vpop.f32.mrf.mxu0 }
 0x3ef   :  { %v4865_v8 = vpop.f32.mrf.mxu0 }
 0x3f0   :  { %v4866_v28 = vadd.f32 %v4865_v8, %v4864_v45 }
 0x3f2   :  { %v2204_v17 = vadd.f32 %v4866_v28, %v4618_v18 }
 0x3f4   :  { %v2436_v46 = vadd.f32 %v4901_v26, %v2204_v17 }
 0x406   :  { %v4969_v52 = vpop.f32.mrf.mxu1 }
 0x408   :  { %v4970_v39 = vpop.f32.mrf.mxu1 }
 0x409   :  { %v4971_v58 = vadd.f32 %v4970_v39, %v4969_v52 }
 0x40e   :  { %v4934_v22 = vpop.f32.mrf.mxu0 }
 0x410   :  { %v4935_v19 = vpop.f32.mrf.mxu0 }
 0x411   :  { %v4936_v11 = vadd.f32 %v4935_v19, %v4934_v22 }
 0x413   :  { %v2574_v62 = vadd.f32 %v4936_v11, %v2436_v46 }
 0x415   :  { %v2682_v54 = vadd.f32 %v4971_v58, %v2574_v62 }
 0x428   :  { %v5039_v40 = vpop.f32.mrf.mxu1 }
 0x42a   :  { %v5040_v44 = vpop.f32.mrf.mxu1 }
 0x42b   :  { %v5041_v8 = vadd.f32 %v5040_v44, %v5039_v40 }
 0x42f   :  { %v5004_v14 = vpop.f32.mrf.mxu0 }
 0x431   :  { %v5005_v23 = vpop.f32.mrf.mxu0 }
 0x432   :  { %v5006_v45 = vadd.f32 %v5005_v23, %v5004_v14 }
 0x434   :  { %v2850_v0 = vadd.f32 %v5006_v45, %v2682_v54 }
 0x436   :  { %v2954_v16 = vadd.f32 %v5041_v8, %v2850_v0 }
 0x438   :  { %v2958_v42 = vmin.f32 %v2954_v16, 0.0  ;;  %vm2957_vm10 = vcmp.gt.f32.partialorder %v2954_v16, 0.0 }
 0x43a   :  { %v2959_v36 = vmul.f32 1.442695, %v2958_v42 }
 0x43c   :  { %5949 = vpow2.f32 %v2959_v36 }
 0x449   :  { %v5950_v15 = vpop.eup %5949 }
 0x44a   :  { %v4620_v28 = vadd.f32 -1.0, %v5950_v15 }
 0x44c   :  { %v2962_v3 = vsel %vm2957_vm10, %v2954_v16, %v4620_v28  ;;  %v80_v16 = vld [vmem:[%s8138_s1 + $0x212] sm:$0xff] }
 0x44d   :  { %v2969_v22 = vsel %vm2967_vm9, %v2962_v3, 0  ;;  %v7935_v0 = vand.u32 4294901760, %v80_v16 }
 0x44e   :  { %v7763_v53 = vand.u32 4294901760, %v2969_v22 }
 0x450   :  { %v7766_v18 = vsub.f32 %v2969_v22, %v7763_v53  ;;  %5640 = vmatmul.mubr.f32.vlgmr.msra.gmra.mxu1 %v7763_v53 }
 0x451   :  { %5676 = vmatpush3.msra.mxu1 %v7538_v41  ;;  %5705 = vmatprep.mubr.msk.f32.mxu1 %vm5978_vm2, %v8292_v5 }
 0x452   :  { %5677 = vmatprep.subr.mxu1 %v8292_v5  ;;  %v3053_v15 = vand.u32 4294901760, %v7766_v18 }
 0x453   :  { %5678 = vmatpush3.msra.mxu1 %v7546_v37 }
 0x454   :  { %5679 = vmatprep.subr.mxu1 %v8292_v5  ;;  %v3054_v36 = vsub.f32 %v7766_v18, %v3053_v15 }
 0x455   :  { %5680 = vmatpush3.msra.mxu1 %v7557_v31 }
 0x456   :  { %5681 = vmatprep.subr.mxu1 %v8292_v5  ;;  %v3055_v42 = vand.u32 4294901760, %v3054_v36 }
 0x457   :  { %5682 = vmatpush3.msra.mxu1 %v7571_v35 }
 0x458   :  { %5683 = vmatprep.subr.mxu1 %v8292_v5  ;;  %5607 = vmatmul.mubr.f32.vlgmr.msra.gmra.mxu0 %v3055_v42  ;;  %v86_v42 = vld [vmem:[%s8138_s1 + $0x242] sm:$0xff] }
 0x459   :  { %5643 = vmatpush3.msra.mxu0 %v7544_v48  ;;  %5684 = vmatpush3.msra.mxu1 %v7586_v59  ;;  %v8299_v48 = vand.u32 4294901760, %v7656_v4 }
 0x45a   :  { %5644 = vmatprep.subr.mxu0 %v8292_v5  ;;  %5685 = vmatprep.subr.mxu1 %v8292_v5 }
 0x45b   :  { %5645 = vmatpush3.msra.mxu0 %v7555_v10  ;;  %5686 = vmatpush3.msra.mxu1 %v7596_v12  ;;  %v8302_v10 = vand.u32 4294901760, %v7698_v56 }
 0x45c   :  { %5646 = vmatprep.subr.mxu0 %v8292_v5  ;;  %5687 = vmatprep.subr.mxu1 %v8292_v5 }
 0x45d   :  { %5647 = vmatpush3.msra.mxu0 %v7569_v30  ;;  %5688 = vmatpush3.msra.mxu1 %v7612_v25  ;;  %v8305_v30 = vand.u32 4294901760, %v7744_v27 }
 0x45e   :  { %5648 = vmatprep.subr.mxu0 %v8292_v5  ;;  %5689 = vmatprep.subr.mxu1 %v8292_v5 }
 0x45f   :  { %5649 = vmatpush3.msra.mxu0 %v7583_v2  ;;  %5690 = vmatpush3.msra.mxu1 %v7625_v24 }
 0x460   :  { %5650 = vmatprep.subr.mxu0 %v8292_v5  ;;  %5691 = vmatprep.subr.mxu1 %v8292_v5 }
 0x461   :  { %5651 = vmatpush3.msra.mxu0 %v7600_v13  ;;  %5692 = vmatpush3.msra.mxu1 %v7643_v61 }
 0x462   :  { %5652 = vmatprep.subr.mxu0 %v8292_v5  ;;  %5693 = vmatprep.subr.mxu1 %v8292_v5 }
 0x463   :  { %5653 = vmatpush3.msra.mxu0 %v7610_v34  ;;  %5694 = vmatpush3.msra.mxu1 %v7659_v57 }
 0x464   :  { %5654 = vmatprep.subr.mxu0 %v8292_v5  ;;  %5695 = vmatprep.subr.mxu1 %v8292_v5 }
 0x465   :  { %5655 = vmatpush3.msra.mxu0 %v7623_v32  ;;  %5696 = vmatpush3.msra.mxu1 %v7670_v9 }
 0x466   :  { %5656 = vmatprep.subr.mxu0 %v8292_v5  ;;  %5697 = vmatprep.subr.mxu1 %v8292_v5 }
 0x467   :  { %5657 = vmatpush3.msra.mxu0 %v7641_v63  ;;  %5698 = vmatpush3.msra.mxu1 %v7687_v60 }
 0x468   :  { %5658 = vmatprep.subr.mxu0 %v8292_v5  ;;  %5699 = vmatprep.subr.mxu1 %v8292_v5 }
 0x469   :  { %5659 = vmatpush3.msra.mxu0 %v7656_v4  ;;  %5700 = vmatpush3.msra.mxu1 %v7700_v43 }
 0x46a   :  { %5660 = vmatprep.subr.mxu0 %v8292_v5  ;;  %5701 = vmatprep.subr.mxu1 %v8292_v5 }
 0x46b   :  { %5661 = vmatpush3.msra.mxu0 %v7674_v38  ;;  %5702 = vmatpush3.msra.mxu1 %v7718_v6 }
 0x46c   :  { %5662 = vmatprep.subr.mxu0 %v8292_v5  ;;  %5703 = vmatprep.subr.mxu1 %v8292_v5 }
 0x46d   :  { %5663 = vmatpush3.msra.mxu0 %v7685_v51  ;;  %5704 = vmatpush3.msra.mxu1 %v7734_v21 }
 0x46e   :  { %5664 = vmatprep.subr.mxu0 %v8292_v5  ;;  %5706 = vmatmul.mubr.f32.vlgmr.msra.gmra.mxu1 %v3053_v15 }
 0x46f   :  { %5741 = vmatprep.subr.mxu1 %v8292_v5  ;;  %5665 = vmatpush3.msra.mxu0 %v7698_v56 }
 0x470   :  { %5742 = vmatpush3.msra.mxu1 %v7538_v41  ;;  %5666 = vmatprep.subr.mxu0 %v8292_v5  ;;  %v8298_v41 = vand.u32 4294901760, %v7641_v63 }
 0x471   :  { %5743 = vmatprep.subr.mxu1 %v8292_v5  ;;  %5667 = vmatpush3.msra.mxu0 %v7716_v55 }
 0x472   :  { %5744 = vmatpush3.msra.mxu1 %v7546_v37  ;;  %5668 = vmatprep.subr.mxu0 %v8292_v5  ;;  %v8300_v37 = vand.u32 4294901760, %v7674_v38 }
 0x473   :  { %5745 = vmatprep.subr.mxu1 %v8292_v5  ;;  %5669 = vmatpush3.msra.mxu0 %v7731_v50 }
 0x474   :  { %5746 = vmatpush3.msra.mxu1 %v7557_v31  ;;  %5670 = vmatprep.subr.mxu0 %v8292_v5  ;;  %v8303_v31 = vand.u32 4294901760, %v7716_v55  ;;  %v79_v55 = vld [vmem:[%s8138_s1 + $0x20a] sm:$0xff] }
 0x475   :  { %5747 = vmatprep.subr.mxu1 %v8292_v5  ;;  %5671 = vmatpush3.msra.mxu0 %v7744_v27 }
 0x476   :  { %5672 = vmatprep.mubr.msk.f32.mxu0 %vm5978_vm2, %v8292_v5  ;;  %5748 = vmatpush3.msra.mxu1 %v7571_v35 }
 0x477   :  { %5673 = vmatmul.mubr.f32.vlgmr.msra.gmra.mxu0 %v7766_v18  ;;  %5708 = vmatprep.subr.mxu0 %v8292_v5 }
 0x478   :  { %5749 = vmatprep.subr.mxu1 %v8292_v5  ;;  %5709 = vmatpush3.msra.mxu0 %v3066_v47  ;;  %v8301_v47 = vand.u32 4294901760, %v7685_v51  ;;  %v82_v51 = vld [vmem:[%s8138_s1 + $0x222] sm:$0xff] }
 0x479   :  { %5750 = vmatpush3.msra.mxu1 %v7586_v59  ;;  %5710 = vmatprep.subr.mxu0 %v8292_v5  ;;  %v3635_v56 = vand.u32 4294901760, %v82_v51 }
 0x47a   :  { %5751 = vmatprep.subr.mxu1 %v8292_v5  ;;  %5711 = vmatpush3.msra.mxu0 %v3073_v7  ;;  %v8304_v7 = vand.u32 4294901760, %v7731_v50 }
 0x47b   :  { %5752 = vmatpush3.msra.mxu1 %v7596_v12  ;;  %5712 = vmatprep.subr.mxu0 %v8292_v5  ;;  %v7942_v54 = vsub.f32 %v82_v51, %v3635_v56 }
 0x47c   :  { %5753 = vmatprep.subr.mxu1 %v8292_v5  ;;  %5713 = vmatpush3.msra.mxu0 %v3080_v29 }
 0x47d   :  { %5754 = vmatpush3.msra.mxu1 %v7612_v25  ;;  %5714 = vmatprep.subr.mxu0 %v8292_v5  ;;  %v4621_v25 = vld [vmem:[%s8138_s1 + $0x209] ss:$0 sm:$0xff]  ;;  %v3716_v27 = vand.u32 4294901760, %v7942_v54 }
 0x47e   :  { %5755 = vmatprep.subr.mxu1 %v8292_v5  ;;  %5715 = vmatpush3.msra.mxu0 %v3087_v33 }
 0x47f   :  { %5756 = vmatpush3.msra.mxu1 %v7625_v24  ;;  %5716 = vmatprep.subr.mxu0 %v8292_v5  ;;  %v3717_v17 = vsub.f32 %v7942_v54, %v3716_v27 }
 0x480   :  { %5757 = vmatprep.subr.mxu1 %v8292_v5  ;;  %5717 = vmatpush3.msra.mxu0 %v3094_v49 }
 0x481   :  { %5758 = vmatpush3.msra.mxu1 %v7643_v61  ;;  %5718 = vmatprep.subr.mxu0 %v8292_v5  ;;  %v3718_v39 = vand.u32 4294901760, %v3717_v17 }
 0x482   :  { %5759 = vmatprep.subr.mxu1 %v8292_v5  ;;  %5719 = vmatpush3.msra.mxu0 %v3101_v20 }
 0x483   :  { %5760 = vmatpush3.msra.mxu1 %v7659_v57  ;;  %5720 = vmatprep.subr.mxu0 %v8292_v5 }
 0x484   :  { %5761 = vmatprep.subr.mxu1 %v8292_v5  ;;  %5721 = vmatpush3.msra.mxu0 %v3108_v1 }
 0x485   :  { %5762 = vmatpush3.msra.mxu1 %v7670_v9  ;;  %5722 = vmatprep.subr.mxu0 %v8292_v5 }
 0x486   :  { %5763 = vmatprep.subr.mxu1 %v8292_v5  ;;  %5723 = vmatpush3.msra.mxu0 %v8298_v41  ;;  %v85_v41 = vld [vmem:[%s8138_s1 + $0x23a] sm:$0xff] }
 0x487   :  { %5764 = vmatpush3.msra.mxu1 %v7687_v60  ;;  %5724 = vmatprep.subr.mxu0 %v8292_v5  ;;  %v81_v60 = vld [vmem:[%s8138_s1 + $0x21a] sm:$0xff] }
 0x488   :  { %5765 = vmatprep.subr.mxu1 %v8292_v5  ;;  %5725 = vmatpush3.msra.mxu0 %v8299_v48  ;;  %v84_v48 = vld [vmem:[%s8138_s1 + $0x232] sm:$0xff] }
 0x489   :  { %5766 = vmatpush3.msra.mxu1 %v7700_v43  ;;  %5726 = vmatprep.subr.mxu0 %v8292_v5  ;;  %v7933_v43 = vand.u32 4294901760, %v81_v60 }
 0x48a   :  { %5767 = vmatprep.subr.mxu1 %v8292_v5  ;;  %5727 = vmatpush3.msra.mxu0 %v8300_v37  ;;  %v8039_v37 = vand.u32 4294901760, %v86_v42 }
 0x48b   :  { %5768 = vmatpush3.msra.mxu1 %v7718_v6  ;;  %5728 = vmatprep.subr.mxu0 %v8292_v5  ;;  %v7940_v6 = vand.u32 4294901760, %v79_v55  ;;  %v7945_v50 = vsub.f32 %v81_v60, %v7933_v43 }
 0x48c   :  { %5769 = vmatprep.subr.mxu1 %v8292_v5  ;;  %5729 = vmatpush3.msra.mxu0 %v8301_v47  ;;  %v8041_v47 = vand.u32 4294901760, %v85_v41 }
 0x48d   :  { %5770 = vmatpush3.msra.mxu1 %v7734_v21  ;;  %5771 = vmatprep.mubr.msk.f32.mxu1 %vm5978_vm2, %v8292_v5  ;;  %v7948_v21 = vsub.f32 %v80_v16, %v7935_v0  ;;  %v7951_v23 = vsub.f32 %v79_v55, %v7940_v6  ;;  %v3723_v44 = vand.u32 4294901760, %v7945_v50 }
 0x48e   :  { %5730 = vmatprep.subr.mxu0 %v8292_v5  ;;  %5772 = vmatmul.mubr.f32.vlgmr.msra.gmra.mxu1 %v7763_v53 }
 0x48f   :  { %5731 = vmatpush3.msra.mxu0 %v8302_v10  ;;  %5738 = vmatprep.mubr.msk.f32.mxu0 %vm5978_vm2, %v8292_v5  ;;  %v3730_v52 = vand.u32 4294901760, %v7948_v21  ;;  %v3737_v19 = vand.u32 4294901760, %v7951_v23  ;;  %v3724_v26 = vsub.f32 %v7945_v50, %v3723_v44  ;;  %v8043_v10 = vand.u32 4294901760, %v84_v48 }
 0x490   :  { %5732 = vmatprep.subr.mxu0 %v8292_v5  ;;  %5785 = vmatprep.subr.mxu1 %v8292_v5 }
 0x491   :  { %5733 = vmatpush3.msra.mxu0 %v8303_v31  ;;  %5793 = vmatprep.mubr.msk.f32.mxu1 %vm5978_vm2, %v8292_v5  ;;  %v3731_v11 = vsub.f32 %v7948_v21, %v3730_v52  ;;  %v3725_v46 = vand.u32 4294901760, %v3724_v26  ;;  %v3738_v40 = vsub.f32 %v7951_v23, %v3737_v19  ;;  %v83_v31 = vld [vmem:[%s8138_s1 + $0x22a] sm:$0xff]  ;;  %s5984_s1 = smov [#allocation3]  }
 0x492   :  { %5734 = vmatprep.subr.mxu0 %v8292_v5  ;;  %5786 = vmatpush3.msra.mxu1 %v3718_v39  ;;  %s4593_s20 = sshll.u32 %s5984_s1, 4  ;;  %s4594_s20 = int_to_ptr.vmem [resolvable:$true] %s4593_s20 }
 0x493   :  { %5735 = vmatpush3.msra.mxu0 %v8304_v7  ;;  %v3732_v62 = vand.u32 4294901760, %v3731_v11  ;;  %5787 = vmatprep.subr.mxu1 %v8292_v5  ;;  %v3739_v14 = vand.u32 4294901760, %v3738_v40  ;;  %v8048_v7 = vand.u32 4294901760, %v83_v31  ;;  %s5955_s21 = scalar_lea.vmem %s4594_s20, 32  ;;  %p5960_p1 = scmp.lt.s32.totalorder %s4594_s20, %s4594_s20 }
 0x494   :  { %5736 = vmatprep.subr.mxu0 %v8292_v5  ;;  %5788 = vmatpush3.msra.mxu1 %v3725_v46  ;;  %p5956_p0 = scmp.ne.s32.totalorder %s4594_s20, %s5955_s21  ;;  %p5961_p2 = scmp.lt.s32.totalorder %s5955_s21, %s5955_s21 }
 0x495   :  { %5737 = vmatpush3.msra.mxu0 %v8305_v30  ;;  %5789 = vmatprep.subr.mxu1 %v8292_v5  ;;  %v8051_v30 = vsub.f32 %v86_v42, %v8039_v37 }
 0x496   :  { %5739 = vmatmul.mubr.f32.vlgmr.msra.gmra.mxu0 %v7763_v53  ;;  %5774 = vmatprep.subr.mxu0 %v8292_v5  ;;  %p5962_p3 = por %p5961_p2, %p5960_p1 }
 0x497   :  { %5782 = vmatprep.mubr.msk.f32.mxu0 %vm5978_vm2, %v8292_v5  ;;  %5775 = vmatpush3.msra.mxu0 %v3635_v56 }
 0x498   :  { %5776 = vmatprep.subr.mxu0 %v8292_v5  ;;  %5790 = vmatpush3.msra.mxu1 %v3732_v62  ;;  %p5963_p4 = pnand %p5962_p3, %p5956_p0 }
 0x499   :  { %5777 = vmatpush3.msra.mxu0 %v7933_v43  ;;  %5791 = vmatprep.subr.mxu1 %v8292_v5 }
 0x49a   :  { %5778 = vmatprep.subr.mxu0 %v8292_v5  ;;  %5792 = vmatpush3.msra.mxu1 %v3739_v14 }
 0x49b   :  { %5779 = vmatpush3.msra.mxu0 %v7935_v0  ;;  %5807 = vmatprep.subr.mxu1 %v8292_v5 }
 0x49c   :  { %5780 = vmatprep.subr.mxu0 %v8292_v5 }
 0x49d   :  { %5781 = vmatpush3.msra.mxu0 %v7940_v6 }
 0x49e   :  { %5796 = vmatprep.subr.mxu0 %v8292_v5 }
 0x510   :  { %v3203_v35 = vpop.f32.mrf.mxu1 }
 0x512   :  { %v5641_v29 = vpop.f32.mrf.mxu1 }
 0x513   :  { %v8057_v29 = vsub.f32 %v84_v48, %v8043_v10 }
 0x518   :  { %v3057_v2 = vpop.f32.mrf.mxu0 }
 0x519   :  { %v3058_v49 = vadd.f32 %v4621_v25, %v3057_v2  ;;  %v8061_v2 = vsub.f32 %v83_v31, %v8048_v7 }
 0x51a   :  { %v5608_v59 = vpop.f32.mrf.mxu0 }
 0x51b   :  { %v3204_v32 = vadd.f32 %v3203_v35, %v3058_v49  ;;  %v8054_v35 = vsub.f32 %v85_v41, %v8041_v47  ;;  %v4206_v59 = vand.u32 4294901760, %v8051_v30 }
 0x52e   :  { %v3393_v33 = vpop.f32.mrf.mxu1 }
 0x530   :  { %v5707_v12 = vpop.f32.mrf.mxu1 }
 0x531   :  { %v4220_v12 = vand.u32 4294901760, %v8057_v29 }
 0x533   :  { %v4221_v49 = vsub.f32 %v8057_v29, %v4220_v12 }
 0x537   :  { %v3305_v13 = vpop.f32.mrf.mxu0 }
 0x538   :  { %v3306_v1 = vadd.f32 %v3305_v13, %v3204_v32  ;;  %v4227_v13 = vand.u32 4294901760, %v8061_v2 }
 0x539   :  { %v5674_v34 = vpop.f32.mrf.mxu0 }
 0x53a   :  { %v3394_v63 = vadd.f32 %v3393_v33, %v3306_v1  ;;  %v4213_v33 = vand.u32 4294901760, %v8054_v35  ;;  %v4207_v34 = vsub.f32 %v8051_v30, %v4206_v59  ;;  %v4222_v1 = vand.u32 4294901760, %v4221_v49 }
 0x53c   :  { %v4214_v25 = vsub.f32 %v8054_v35, %v4213_v33 }
 0x53e   :  { %v4215_v32 = vand.u32 4294901760, %v4214_v25 }
 0x54e   :  { %v3595_v20 = vpop.f32.mrf.mxu1 }
 0x550   :  { %v5773_v24 = vpop.f32.mrf.mxu1 }
 0x551   :  { %v4228_v24 = vsub.f32 %v8061_v2, %v4227_v13 }
 0x556   :  { %v3509_v61 = vpop.f32.mrf.mxu0 }
 0x557   :  { %v3510_v4 = vadd.f32 %v3509_v61, %v3394_v63  ;;  %v4229_v63 = vand.u32 4294901760, %v4228_v24 }
 0x558   :  { %v5740_v57 = vpop.f32.mrf.mxu0 }
 0x559   :  { %v3596_v9 = vadd.f32 %v3595_v20, %v3510_v4  ;;  %v4208_v20 = vand.u32 4294901760, %v4207_v34 }
 0x55b   :  { %v3600_v38 = vsel %vm3599_vm11, %v3596_v9, -inf }
 0x55c   :  { %3601 = vmax.xlane.f32.xlu1 %v3600_v38 }
 0x5e5   :  { %v3602_v58 = vpop.xlane.xlu1 %3601 }
 0x5e6   :  { %v3603_v45 = vsub.f32 %v3596_v9, %v3602_v58 }
 0x5e8   :  { %v3604_v8 = vmul.f32 1.442695, %v3603_v45 }
 0x5ea   :  { %5951 = vpow2.f32 %v3604_v8 }
 0x5f7   :  { %v7980_v28 = vpop.eup %5951 }
 0x5f8   :  { %v3608_v3 = vsel %vm3606_vm12, %v7980_v28, 0 }
 0x5f9   :  { %v3679_v22 = vand.u32 4294901760, %v3608_v3 }
 0x5fb   :  { %v3680_v53 = vsub.f32 %v3608_v3, %v3679_v22  ;;  %5794 = vmatmul.mubr.f32.vlgmr.msra.gmra.mxu1 %v3679_v22 }
 0x5fc   :  { %5808 = vmatpush3.msra.mxu1 %v3635_v56  ;;  %5815 = vmatprep.mubr.msk.f32.mxu1 %vm5978_vm2, %v8292_v5 }
 0x5fd   :  { %5809 = vmatprep.subr.mxu1 %v8292_v5  ;;  %v3681_v18 = vand.u32 4294901760, %v3680_v53 }
 0x5fe   :  { %5810 = vmatpush3.msra.mxu1 %v7933_v43 }
 0x5ff   :  { %5811 = vmatprep.subr.mxu1 %v8292_v5  ;;  %v3682_v15 = vsub.f32 %v3680_v53, %v3681_v18 }
 0x600   :  { %5812 = vmatpush3.msra.mxu1 %v7935_v0 }
 0x601   :  { %5813 = vmatprep.subr.mxu1 %v8292_v5  ;;  %v3683_v36 = vand.u32 4294901760, %v3682_v15 }
 0x602   :  { %5814 = vmatpush3.msra.mxu1 %v7940_v6 }
 0x603   :  { %5816 = vmatmul.mubr.f32.vlgmr.msra.gmra.mxu1 %v3681_v18  ;;  %5829 = vmatprep.subr.mxu1 %v8292_v5 }
 0x604   :  { %5783 = vmatmul.mubr.f32.vlgmr.msra.gmra.mxu0 %v3683_v36  ;;  %5830 = vmatpush3.msra.mxu1 %v3635_v56 }
 0x605   :  { %5797 = vmatpush3.msra.mxu0 %v7942_v54  ;;  %5831 = vmatprep.subr.mxu1 %v8292_v5 }
 0x606   :  { %5798 = vmatprep.subr.mxu0 %v8292_v5  ;;  %5832 = vmatpush3.msra.mxu1 %v7933_v43 }
 0x607   :  { %5799 = vmatpush3.msra.mxu0 %v7945_v50  ;;  %5833 = vmatprep.subr.mxu1 %v8292_v5 }
 0x608   :  { %5800 = vmatprep.subr.mxu0 %v8292_v5  ;;  %5834 = vmatpush3.msra.mxu1 %v7935_v0 }
 0x609   :  { %5801 = vmatpush3.msra.mxu0 %v7948_v21  ;;  %5835 = vmatprep.subr.mxu1 %v8292_v5 }
 0x60a   :  { %5802 = vmatprep.subr.mxu0 %v8292_v5  ;;  %5804 = vmatprep.mubr.msk.f32.mxu0 %vm5978_vm2, %v8292_v5 }
 0x60b   :  { %5803 = vmatpush3.msra.mxu0 %v7951_v23  ;;  %5836 = vmatpush3.msra.mxu1 %v7940_v6 }
 0x60c   :  { %5837 = vmatprep.mubr.msk.f32.mxu1 %vm5978_vm2, %v8292_v5  ;;  %5805 = vmatmul.mubr.f32.vlgmr.msra.gmra.mxu0 %v3680_v53 }
 0x60d   :  { %5818 = vmatprep.subr.mxu0 %v8292_v5  ;;  %5838 = vmatmul.mubr.f32.vlgmr.msra.gmra.mxu1 %v3679_v22 }
 0x60e   :  { %5819 = vmatpush3.msra.mxu0 %v3716_v27  ;;  %5826 = vmatprep.mubr.msk.f32.mxu0 %vm5978_vm2, %v8292_v5 }
 0x60f   :  { %5820 = vmatprep.subr.mxu0 %v8292_v5  ;;  %5851 = vmatprep.subr.mxu1 %v8292_v5 }
 0x610   :  { %5821 = vmatpush3.msra.mxu0 %v3723_v44  ;;  %5859 = vmatprep.mubr.msk.f32.mxu1 %vm5978_vm2, %v8292_v5 }
 0x611   :  { %5822 = vmatprep.subr.mxu0 %v8292_v5  ;;  %5852 = vmatpush3.msra.mxu1 %v4208_v20 }
 0x612   :  { %5823 = vmatpush3.msra.mxu0 %v3730_v52  ;;  %5853 = vmatprep.subr.mxu1 %v8292_v5 }
 0x613   :  { %5824 = vmatprep.subr.mxu0 %v8292_v5  ;;  %5854 = vmatpush3.msra.mxu1 %v4215_v32 }
 0x614   :  { %5825 = vmatpush3.msra.mxu0 %v3737_v19  ;;  %5855 = vmatprep.subr.mxu1 %v8292_v5 }
 0x615   :  { %5827 = vmatmul.mubr.f32.vlgmr.msra.gmra.mxu0 %v3679_v22  ;;  %5840 = vmatprep.subr.mxu0 %v8292_v5 }
 0x616   :  { %5848 = vmatprep.mubr.msk.f32.mxu0 %vm5978_vm2, %v8292_v5  ;;  %5841 = vmatpush3.msra.mxu0 %v8039_v37 }
 0x617   :  { %5842 = vmatprep.subr.mxu0 %v8292_v5  ;;  %5856 = vmatpush3.msra.mxu1 %v4222_v1 }
 0x618   :  { %5843 = vmatpush3.msra.mxu0 %v8041_v47  ;;  %5857 = vmatprep.subr.mxu1 %v8292_v5 }
 0x619   :  { %5844 = vmatprep.subr.mxu0 %v8292_v5  ;;  %5858 = vmatpush3.msra.mxu1 %v4229_v63 }
 0x61a   :  { %5845 = vmatpush3.msra.mxu0 %v8043_v10  ;;  %5873 = vmatprep.subr.mxu1 %v8292_v5 }
 0x61b   :  { %5846 = vmatprep.subr.mxu0 %v8292_v5 }
 0x61c   :  { %5847 = vmatpush3.msra.mxu0 %v8048_v7 }
 0x61d   :  { %5862 = vmatprep.subr.mxu0 %v8292_v5 }
 0x6bb   :  { %v3776_v61 = vpop.f32.mrf.mxu1 }
 0x6bd   :  { %v5795_v4 = vpop.f32.mrf.mxu1 }
 0x6c3   :  { %v3933_v57 = vpop.f32.mrf.mxu1 }
 0x6c4   :  { %v3685_v9 = vpop.f32.mrf.mxu0 }
 0x6c5   :  { %v5817_v38 = vpop.f32.mrf.mxu1  ;;  %v3777_v56 = vadd.f32 %v3776_v61, %v3685_v9 }
 0x6c6   :  { %v5784_v51 = vpop.f32.mrf.mxu0 }
 0x6cc   :  { %v3856_v60 = vpop.f32.mrf.mxu0 }
 0x6cd   :  { %v4091_v16 = vpop.f32.mrf.mxu1  ;;  %v3857_v55 = vadd.f32 %v3856_v60, %v3777_v56 }
 0x6ce   :  { %v5806_v43 = vpop.f32.mrf.mxu0 }
 0x6cf   :  { %v5839_v0 = vpop.f32.mrf.mxu1  ;;  %v3934_v6 = vadd.f32 %v3933_v57, %v3857_v55 }
 0x6d5   :  { %v4016_v54 = vpop.f32.mrf.mxu0 }
 0x6d6   :  { %v4017_v50 = vadd.f32 %v4016_v54, %v3934_v6 }
 0x6d7   :  { %v5828_v21 = vpop.f32.mrf.mxu0 }
 0x6d8   :  { %v4092_v23 = vadd.f32 %v4091_v16, %v4017_v50 }
 0x6da   :  { %5953 = vrcp.f32 %v4092_v23 }
 0x6e7   :  { %v5954_v27 = vpop.eup %5953 }
 0x6e8   :  { %v4096_v44 = vmul.f32 %v5954_v27, %v7980_v28 }
 0x6ea   :  { %v4098_v52 = vsel %vm3606_vm12, %v4096_v44, 0 }
 0x6eb   :  { %v4169_v19 = vand.u32 4294901760, %v4098_v52 }
 0x6ed   :  { %v4170_v17 = vsub.f32 %v4098_v52, %v4169_v19  ;;  %5860 = vmatmul.mubr.f32.vlgmr.msra.gmra.mxu1 %v4169_v19 }
 0x6ee   :  { %5874 = vmatpush3.msra.mxu1 %v8039_v37  ;;  %5881 = vmatprep.mubr.msk.f32.mxu1 %vm5978_vm2, %v8292_v5 }
 0x6ef   :  { %5875 = vmatprep.subr.mxu1 %v8292_v5  ;;  %v4171_v26 = vand.u32 4294901760, %v4170_v17 }
 0x6f0   :  { %5876 = vmatpush3.msra.mxu1 %v8041_v47 }
 0x6f1   :  { %5877 = vmatprep.subr.mxu1 %v8292_v5  ;;  %v4172_v11 = vsub.f32 %v4170_v17, %v4171_v26 }
 0x6f2   :  { %5878 = vmatpush3.msra.mxu1 %v8043_v10 }
 0x6f3   :  { %5879 = vmatprep.subr.mxu1 %v8292_v5  ;;  %v4173_v39 = vand.u32 4294901760, %v4172_v11 }
 0x6f4   :  { %5880 = vmatpush3.msra.mxu1 %v8048_v7 }
 0x6f5   :  { %5882 = vmatmul.mubr.f32.vlgmr.msra.gmra.mxu1 %v4171_v26  ;;  %5895 = vmatprep.subr.mxu1 %v8292_v5 }
 0x6f6   :  { %5849 = vmatmul.mubr.f32.vlgmr.msra.gmra.mxu0 %v4173_v39  ;;  %5896 = vmatpush3.msra.mxu1 %v8039_v37 }
 0x6f7   :  { %5863 = vmatpush3.msra.mxu0 %v8051_v30  ;;  %5897 = vmatprep.subr.mxu1 %v8292_v5 }
 0x6f8   :  { %5864 = vmatprep.subr.mxu0 %v8292_v5  ;;  %5898 = vmatpush3.msra.mxu1 %v8041_v47 }
 0x6f9   :  { %5865 = vmatpush3.msra.mxu0 %v8054_v35  ;;  %5899 = vmatprep.subr.mxu1 %v8292_v5 }
 0x6fa   :  { %5866 = vmatprep.subr.mxu0 %v8292_v5  ;;  %5900 = vmatpush3.msra.mxu1 %v8043_v10 }
 0x6fb   :  { %5867 = vmatpush3.msra.mxu0 %v8057_v29  ;;  %5901 = vmatprep.subr.mxu1 %v8292_v5 }
 0x6fc   :  { %5868 = vmatprep.subr.mxu0 %v8292_v5  ;;  %5870 = vmatprep.mubr.msk.f32.mxu0 %vm5978_vm2, %v8292_v5 }
 0x6fd   :  { %5869 = vmatpush3.msra.mxu0 %v8061_v2  ;;  %5902 = vmatpush3.msra.mxu1 %v8048_v7 }
 0x6fe   :  { %5903 = vmatprep.mubr.msk.f32.mxu1 %vm5978_vm2, %v8292_v5  ;;  %5871 = vmatmul.mubr.f32.vlgmr.msra.gmra.mxu0 %v4170_v17 }
 0x6ff   :  { %5884 = vmatprep.subr.mxu0 %v8292_v5  ;;  %5904 = vmatmul.mubr.f32.vlgmr.msra.gmra.mxu1 %v4169_v19 }
 0x700   :  { %5885 = vmatpush3.msra.mxu0 %v4206_v59  ;;  %5892 = vmatprep.mubr.msk.f32.mxu0 %vm5978_vm2, %v8292_v5  ;;  %vm4585_vm2 = vcmask 58368  }
 0x701   :  { %5886 = vmatprep.subr.mxu0 %v8292_v5 }
 0x702   :  { %5887 = vmatpush3.msra.mxu0 %v4213_v33 }
 0x703   :  { %5888 = vmatprep.subr.mxu0 %v8292_v5 }
 0x704   :  { %5889 = vmatpush3.msra.mxu0 %v4220_v12 }
 0x705   :  { %5890 = vmatprep.subr.mxu0 %v8292_v5 }
 0x706   :  { %5891 = vmatpush3.msra.mxu0 %v4227_v13 }
 0x707   :  { %5893 = vmatmul.mubr.f32.vlgmr.msra.gmra.mxu0 %v4169_v19 }
 0x7ad   :  { %v4266_v46 = vpop.f32.mrf.mxu1 }
 0x7af   :  { %v5861_v40 = vpop.f32.mrf.mxu1 }
 0x7b5   :  { %v4423_v62 = vpop.f32.mrf.mxu1 }
 0x7b6   :  { %v4175_v14 = vpop.f32.mrf.mxu0 }
 0x7b7   :  { %v5883_v58 = vpop.f32.mrf.mxu1  ;;  %v4267_v3 = vadd.f32 %v4266_v46, %v4175_v14 }
 0x7b8   :  { %v5850_v45 = vpop.f32.mrf.mxu0 }
 0x7be   :  { %v4346_v8 = vpop.f32.mrf.mxu0 }
 0x7bf   :  { %v4581_v28 = vpop.f32.mrf.mxu1  ;;  %v4347_v18 = vadd.f32 %v4346_v8, %v4267_v3 }
 0x7c0   :  { %v5872_v22 = vpop.f32.mrf.mxu0 }
 0x7c1   :  { %v5905_v53 = vpop.f32.mrf.mxu1  ;;  %v4424_v15 = vadd.f32 %v4423_v62, %v4347_v18 }
 0x7c7   :  { %v4506_v36 = vpop.f32.mrf.mxu0 }
 0x7c8   :  { %v4507_v5 = vadd.f32 %v4506_v36, %v4424_v15 }
 0x7c9   :  { %v5894_v42 = vpop.f32.mrf.mxu0 }
 0x7ca   :  { %v4582_v41 = vadd.f32 %v4581_v28, %v4507_v5 }
 0x7cc   :  { %4586 = vst.msk [vmem:[#allocation3] sm:$0x3] %vm4585_vm2, %v4582_v41 }
 0x7cd   :  { %5966 = shalt.err (!%p5963_p4)
}
 0x7ce   :  { %4596 = dma.vmem_to_hbm [thread:$0]  %s4594_s20, 32, %s8139_s2, [#allocation4]  }
 0x7cf   :  { %5975 = dma.done.wait [#allocation4], 32  }
 0x7d0   :  { %5976 = vsyncadd [#allocation4], 4294967264 }
 0x7d1   :  { %4600 = vsyncpa [#allocation4], 1 }

</bundles_post_ra>
